<compile_context>
chip_gen: v6e
topology: v6e:2x2x1
jax: 0.10.0
libtpu: 0.0.40
codegen_flags: <defaults>
</compile_context>

<pallas_src>
import numpy as np

import jax
import jax.numpy as jnp
from jax.experimental import pallas as pl
from jax.experimental.pallas import tpu as pltpu

MAX_LEN = 128   # max chars per sentence (sublane axis)
S_TILE = 512    # sentences per grid step (lane axis); multiple of 128.
                # Raise (e.g. 2048-8192) for large corpora; footprint stays far
                # below v7x's 64 MiB VMEM even at 8192.


# ----------------------------------------------------------------------------
# Pallas kernel: per-sentence cleaning + length
# ----------------------------------------------------------------------------
def _clean_kernel(chars_ref, cleaned_ref, len_ref):
    # chars_ref: (MAX_LEN, S_TILE) uint8 — char position x sentence
    c8 = chars_ref[...]
    c = c8.astype(jnp.int32)                  # compute in 32-bit; VALU has slack
    L, S = c.shape
    pos = jax.lax.broadcasted_iota(jnp.int32, (L, S), 0)

    not_under = c != 95                       # '_'
    # pad (0) and every stripped whitespace char are <= 32 in ASCII, so a
    # single compare gives the "content" (survives strip + underscore removal)
    content = (c > 32) & not_under

    first = jnp.min(jnp.where(content, pos, L), axis=0, keepdims=True)    # (1, S)
    last = jnp.max(jnp.where(content, pos, -1), axis=0, keepdims=True)    # (1, S)

    # keep: non-pad, non-underscore chars inside the stripped window
    keep = (c != 0) & not_under & (pos >= first) & (pos <= last)

    cleaned_ref[...] = jnp.where(keep, c, 0).astype(jnp.uint8)
    counts = jnp.sum(keep.astype(jnp.int32), axis=0, keepdims=True)       # (1, S)
    # broadcast to 8 sublanes -> aligned (8, S_TILE) block, lane-dense stores
    len_ref[...] = jnp.broadcast_to(counts, (8, S))


def clean_sentences(chars_t, *, s_tile=S_TILE):
    """chars_t: (MAX_LEN, S_pad) uint8, 0-padded char codes (sentence = column).

    Returns (cleaned, lengths):
      cleaned: (MAX_LEN, S_pad) uint8  — removed chars zeroed
      lengths: (8, S_pad) int32        — row 0 = cleaned length per sentence
    """
    L, S = chars_t.shape
    assert chars_t.dtype == jnp.uint8
    assert L % 32 == 0 and s_tile % 128 == 0 and S % s_tile == 0
    nblk = S // s_tile
    return pl.pallas_call(
        _clean_kernel,
        out_shape=(jax.ShapeDtypeStruct((L, S), jnp.uint8),
                   jax.ShapeDtypeStruct((8, S), jnp.int32)),
        grid=(nblk,),
        in_specs=[pl.BlockSpec((L, s_tile), lambda i: (0, i))],
        out_specs=(pl.BlockSpec((L, s_tile), lambda i: (0, i)),
                   pl.BlockSpec((8, s_tile), lambda i: (0, i))),
        compiler_params=pltpu.CompilerParams(
            dimension_semantics=("parallel",)),
    )(chars_t)


# ----------------------------------------------------------------------------
# Wrapper reproducing SubsampleSents.forward, batched over many documents
# ----------------------------------------------------------------------------
def subsample_sents_forward_batch(texts, frac, randomize_order, min_sent_len=5,
                                  max_len=MAX_LEN, s_tile=S_TILE, rng_seeds=None):
    # host encode: flatten all sentences of all documents into one uint8 slab
    all_sents = []
    doc_bounds = []
    for t in texts:
        parts = t.split('.')
        doc_bounds.append((len(all_sents), len(all_sents) + len(parts)))
        all_sents.extend(parts)
    s_total = len(all_sents)
    s_pad = s_tile * max(1, -(-s_total // s_tile))

    arr = np.zeros((s_pad, max_len), dtype=np.uint8)
    for i, s in enumerate(all_sents):
        # TODO(synk): chars beyond max_len and non-latin-1 codepoints are not
        # representable in the fixed (MAX_LEN,) uint8 column layout.
        b = s.encode('latin-1', errors='replace')[:max_len]
        arr[i, :len(b)] = np.frombuffer(b, dtype=np.uint8)
    chars_t = jnp.asarray(np.ascontiguousarray(arr.T))    # (max_len, s_pad) uint8

    cleaned_dev, lens_dev = jax.block_until_ready(
        clean_sentences(chars_t, s_tile=s_tile))
    cleaned_np, lens_np = jax.device_get((cleaned_dev, lens_dev))  # single readback
    cleaned_np = cleaned_np.T                 # (s_pad, max_len) — row per sentence
    lens = lens_np[0]                         # (s_pad,)
    valid = lens >= min_sent_len              # validity derived on host

    # TODO(synk): variable-length string assembly, np.random.shuffle and
    # np.random.choice subsampling are data-dependent-shape / Python-string
    # ops with no Pallas equivalent; kept as host glue mirroring the module.
    outs = []
    for d, (lo, hi) in enumerate(doc_bounds):
        sents = [cleaned_np[i][cleaned_np[i] != 0].tobytes().decode('latin-1')
                 for i in range(lo, hi) if valid[i]]
        if rng_seeds is not None:
            np.random.seed(rng_seeds[d])
        if randomize_order:
            np.random.shuffle(sents)
        if frac < 1.0:
            num_sents_used = round(len(sents) * frac)
            idcs = list(range(len(sents)))
            idcs_used = sorted(np.random.choice(idcs, num_sents_used,
                                                replace=False))
            sents = [sents[i] for i in idcs_used]
        outs.append('. '.join(sents))
    return outs


def subsample_sents_forward(text, frac, randomize_order, min_sent_len=5):
    return subsample_sents_forward_batch([text], frac, randomize_order,
                                         min_sent_len)[0]


# ----------------------------------------------------------------------------
# Pure-python reference of the original forward (no torch needed)
# ----------------------------------------------------------------------------
def reference_forward(text, frac, randomize_order, min_sent_len=5):
    sents = [s.replace('_', '') for s in text.split('.')]
    sents = [s.strip() for s in sents]
    sents = [s for s in sents if len(s) >= min_sent_len]
    if randomize_order:
        np.random.shuffle(sents)
    if frac < 1.0:
        num_sents_used = round(len(sents) * frac)
        idcs = list(range(len(sents)))
        idcs_used = sorted(np.random.choice(idcs, num_sents_used, replace=False))
        sents = [sents[i] for i in idcs_used]
    return '. '.join(sents)


if __name__ == "__main__":
    # deterministic synthetic batch built from PRNGKey(0): 64 docs x 10 sents
    # -> 640 sentences -> S_pad = 1024 -> grid of 2 blocks of 512 sentences.
    key = jax.random.PRNGKey(0)
    num_docs, sents_per_doc, sent_chars = 64, 10, 12
    letters = np.asarray(
        jax.random.randint(key, (num_docs, sents_per_doc, sent_chars),
                           minval=97, maxval=123))
    texts = []
    for d in range(num_docs):
        pieces = []
        for i in range(sents_per_doc):
            s = ''.join(chr(int(v)) for v in letters[d, i])
            if i % 2 == 0:
                s = ' _' + s[:3] + '_ ' + s[3:] + ' '   # underscores + strip-able spaces
            if i % 5 == 3:
                s = s[:3]                               # too short -> filtered out
            pieces.append(s)
        texts.append('.'.join(pieces))

    frac, randomize_order, min_sent_len = 0.5, True, 5
    seeds = list(range(num_docs))

    outs_kernel = subsample_sents_forward_batch(
        texts, frac, randomize_order, min_sent_len, rng_seeds=seeds)

    outs_ref = []
    for d, t in enumerate(texts):
        np.random.seed(seeds[d])
        outs_ref.append(reference_forward(t, frac, randomize_order, min_sent_len))

    assert outs_kernel == outs_ref, (outs_kernel[0], outs_ref[0])
    print("KERNEL_OK")
</pallas_src>

<mosaic_0001>
module attributes {stable_mosaic.version = 11 : i64} {
  func.func @_clean_kernel(%arg0: i32, %arg1: memref<128x512xi8, #tpu.memory_space<vmem>>, %arg2: memref<128x512xi8, #tpu.memory_space<vmem>>, %arg3: memref<8x512xi32, #tpu.memory_space<vmem>>) attributes {dimension_semantics = [#tpu.dimension_semantics<parallel>], iteration_bounds = array<i64: 2>, scalar_prefetch = 0 : i64, scratch_operands = 0 : i64, tpu.core_type = #tpu.core_type<tc>, window_params = [{transform_indices = @transform_0, window_bounds = array<i64: 128, 512>}, {transform_indices = @transform_1, window_bounds = array<i64: 128, 512>}, {transform_indices = @transform_2, window_bounds = array<i64: 8, 512>}]} {
    %c0 = arith.constant 0 : index
    %c0_0 = arith.constant 0 : index
    %0 = vector.load %arg1[%c0, %c0_0] : memref<128x512xi8, #tpu.memory_space<vmem>>, vector<128x512xi8>
    %1 = arith.extui %0 : vector<128x512xi8> to vector<128x512xi32>
    %2 = tpu.iota {dimensions = array<i32: 0>} : vector<128x512xi32>
    %c95_i32 = arith.constant 95 : i32
    %3 = vector.broadcast %c95_i32 : i32 to vector<128x512xi32>
    %4 = arith.cmpi ne, %1, %3 : vector<128x512xi32>
    %c32_i32 = arith.constant 32 : i32
    %5 = vector.broadcast %c32_i32 : i32 to vector<128x512xi32>
    %6 = arith.cmpi sgt, %1, %5 : vector<128x512xi32>
    %7 = arith.andi %6, %4 : vector<128x512xi1>
    %c128_i32 = arith.constant 128 : i32
    %8 = vector.broadcast %c128_i32 : i32 to vector<128x512xi32>
    %9 = arith.select %7, %2, %8 : vector<128x512xi1>, vector<128x512xi32>
    %cst = arith.constant dense<2147483647> : vector<512xi32>
    %10 = vector.multi_reduction <minsi>, %9, %cst [0] : vector<128x512xi32> to vector<512xi32>
    %11 = vector.shape_cast %10 : vector<512xi32> to vector<1x512xi32>
    %c-1_i32 = arith.constant -1 : i32
    %12 = vector.broadcast %c-1_i32 : i32 to vector<128x512xi32>
    %13 = arith.select %7, %2, %12 : vector<128x512xi1>, vector<128x512xi32>
    %cst_1 = arith.constant dense<-2147483648> : vector<512xi32>
    %14 = vector.multi_reduction <maxsi>, %13, %cst_1 [0] : vector<128x512xi32> to vector<512xi32>
    %15 = vector.shape_cast %14 : vector<512xi32> to vector<1x512xi32>
    %c0_i32 = arith.constant 0 : i32
    %16 = vector.broadcast %c0_i32 : i32 to vector<128x512xi32>
    %17 = arith.cmpi ne, %1, %16 : vector<128x512xi32>
    %18 = arith.andi %17, %4 : vector<128x512xi1>
    %19 = vector.broadcast %11 : vector<1x512xi32> to vector<128x512xi32>
    %20 = arith.cmpi sge, %2, %19 : vector<128x512xi32>
    %21 = arith.andi %18, %20 : vector<128x512xi1>
    %22 = vector.broadcast %15 : vector<1x512xi32> to vector<128x512xi32>
    %23 = arith.cmpi sle, %2, %22 : vector<128x512xi32>
    %24 = arith.andi %21, %23 : vector<128x512xi1>
    %c0_i32_2 = arith.constant 0 : i32
    %25 = vector.broadcast %c0_i32_2 : i32 to vector<128x512xi32>
    %26 = arith.select %24, %1, %25 : vector<128x512xi1>, vector<128x512xi32>
    %27 = arith.trunci %26 : vector<128x512xi32> to vector<128x512xi8>
    %c0_3 = arith.constant 0 : index
    %c0_4 = arith.constant 0 : index
    %28 = vector.load %arg2[%c0_3, %c0_4] : memref<128x512xi8, #tpu.memory_space<vmem>>, vector<128x512xi8>
    tpu.vector_store %arg2[%c0_3, %c0_4], %27 {strides = array<i32>} : memref<128x512xi8, #tpu.memory_space<vmem>>, vector<128x512xi8>,
    %29 = arith.extui %24 : vector<128x512xi1> to vector<128x512xi32>
    %cst_5 = arith.constant dense<0> : vector<512xi32>
    %30 = vector.multi_reduction <add>, %29, %cst_5 [0] : vector<128x512xi32> to vector<512xi32>
    %31 = vector.shape_cast %30 : vector<512xi32> to vector<1x512xi32>
    %32 = vector.shape_cast %31 : vector<1x512xi32> to vector<1x512xi32>
    %33 = vector.broadcast %32 : vector<1x512xi32> to vector<8x512xi32>
    %c0_6 = arith.constant 0 : index
    %c0_7 = arith.constant 0 : index
    %34 = vector.load %arg3[%c0_6, %c0_7] : memref<8x512xi32, #tpu.memory_space<vmem>>, vector<8x512xi32>
    tpu.vector_store %arg3[%c0_6, %c0_7], %33 {strides = array<i32>} : memref<8x512xi32, #tpu.memory_space<vmem>>, vector<8x512xi32>,
    return
  }
  func.func @transform_0(%arg0: i32) -> (i32, i32) {
    %c0_i32 = arith.constant 0 : i32
    %c0_i32_0 = arith.constant 0 : i32
    return %c0_i32, %arg0 : i32, i32
  }
  func.func @transform_1(%arg0: i32) -> (i32, i32) {
    %c0_i32 = arith.constant 0 : i32
    %c0_i32_0 = arith.constant 0 : i32
    return %c0_i32, %arg0 : i32, i32
  }
  func.func @transform_2(%arg0: i32) -> (i32, i32) {
    %c0_i32 = arith.constant 0 : i32
    %c0_i32_0 = arith.constant 0 : i32
    return %c0_i32, %arg0 : i32, i32
  }
}

</mosaic_0001>

<bundles_post_ra>
// kernel: tpu_custom_call.1
= control target key start
LH: loop header
LB: loop body
LE: loop exit
PB: predicated region body
PF: predicated region fallthrough
CT: control target
= control target key end

     0   :  { %8 = vsyncpa [#allocation3], 0  ;;  %s6080_s0 = inlined_call_operand.hbm [shape: u8[128,1024], index: 0, kind: input, shape index: {}]   ;;  %s6081_s1 = inlined_call_operand.hbm [shape: u8[128,1024], index: 1, kind: output, shape index: {0}]   ;;  %s6082_s2 = inlined_call_operand.hbm [shape: s32[8,1024], index: 2, kind: output, shape index: {1}]  }
   0x1   :  { %10 = vsyncpa [#allocation3 + $0x1], 0 }
   0x2   :  { %11 = vsyncpa [#allocation4], 0 }
   0x3   :  { %13 = vsyncpa [#allocation4 + $0x1], 0 }
   0x4   :  { %14 = vsyncpa [#allocation7], 0 }
   0x5   :  { %16 = vsyncpa [#allocation7 + $0x1], 0  ;;  %s1999_s9 = smov 0   ;;  %s2001_s10 = smov 0  }
   0x6   :  { %s2003_s11 = smov 0   ;;  %s2005_s12 = smov 0  }
   0x7 LB: > { %s2020_s13 = sadd.s32 4294967295, %s1972_s12   ;;  %s1771_s14 = sadd.s32 4294967294, %s1972_s12   ;;  %s1972_s12 = sphi %s2005_s12, %s7711_s12   ;;  %s1968_s11 = sphi %s2003_s11, %s7710_s11   ;;  %s1964_s10 = sphi %s2001_s10, %s7709_s10   ;;  %s1960_s9 = sphi %s1999_s9, %s7708_s9  }
   0x8   : > { %s2024_s15 = sadd.s32 1, %s1972_s12   ;;  %s29_s16 = sadd.s32 1, %s1968_s11 }
   0x9   : > { %s26_s17 = ssub.s32 %s1972_s12, %s2024_s15  ;;  %p36_p0 = scmp.ne.s32.totalorder %s1968_s11, %s1964_s10 }
   0xa   : > { %p27_p1 = scmp.eq.s32.totalorder %s26_s17, 0  ;;  %p37_p2 = scmp.eq.s32.totalorder %s1972_s12, 0 }
   0xb   : > { %p42_p3 = scmp.ne.s32.totalorder %s1964_s10, %s1960_s9  ;;  %p43_p4 = scmp.eq.s32.totalorder %s2020_s13, 0 }
   0xc   : > { %s2036_s18 = scalar_select %p27_p1, %s1968_s11, %s29_s16  }
   0xd   : > { %p2038_p5 = por %p37_p2, %p36_p0  ;;  %p2042_p6 = por %p43_p4, %p42_p3 }
   0xe   : > { %p66_p7 = scmp.eq.s32.totalorder %s2020_s13, 1  ;;  %p72_p8 = scmp.eq.s32.totalorder %s1771_s14, 1 }
   0xf   : > { %s6341_s20 = scalar_select %p2042_p6, 1, 0 }
  0x10   : > { %p1809_p10 = scmp.lt.s32.totalorder %s1972_s12, 2  ;;  %p2049_p11 = por %p66_p7, %p36_p0 }
  0x11   : > { %p2053_p12 = por %p72_p8, %p42_p3  ;;  %s118_s23 = sand.u32 1, %s1968_s11  }
  0x12   : > { %s6342_s21 = scalar_select %p2049_p11, 1, 0 }
  0x13   : > { %s6343_s22 = scalar_select %p2053_p12, 1, 0 }
  0x14   : > { %s1789_s24 = sshll.u32 %s1972_s12, 9  ;;  %s1774_s25 = sshll.u32 %s118_s23, 7 }
  0x15   : > { %s2062_s28 = scalar_lea.hbm %s6080_s0, %s1789_s24  ;;  %s122_s29 = scalar_lea.vmem [#allocation2], %s1774_s25 }
  0x16   : > { %s129_s30 = sshll.u32 %s122_s29, 4  ;;  %p2066_p13 = pnand %p1809_p10, %p2038_p5  ;;  %s2070_s30 = int_to_ptr.vmem [resolvable:$true] %s129_s30 }
  0x17   : > { %s2073_s4 = scalar_lea.sflag [#allocation3], %s118_s23  ;;  %s1850_s5 = scalar_lea.hbm %s2062_s28, 2048 }
  0x18   : > { %p1851_p1 = scmp.ne.s32.totalorder %s2062_s28, %s1850_s5  ;;  %p1852_p2 = pneg %p2066_p13 }
  0x19   : > { %s1855_s8 = scalar_lea.hbm %s6080_s0, 4096  ;;  %p1856_p5 = scmp.lt.s32.totalorder %s2062_s28, %s6080_s0 }
  0x1a   : > { %p1853_p3 = pnand %p1852_p2, %p1851_p1  ;;  %p1857_p7 = scmp.lt.s32.totalorder %s1855_s8, %s1850_s5 }
  0x1c   : > { %p1854_p4 = pneg %p1853_p3  ;;  %p1858_p8 = por %p1857_p7, %p1856_p5 }
  0x1e   : > { %p1859_p10 = pnand %p1858_p8, %p1854_p4 }
  0x20   : > { %1862 = shalt.err (!%p1859_p10)
}
  0x21   : > { %s1863_s17 = scalar_lea.vmem %s2070_s30, 2048  ;;  %s1974_s19 = smov [#allocation2]  }
  0x22   : > { %p1864_p9 = scmp.ne.s32.totalorder %s2070_s30, %s1863_s17  ;;  %s1868_s23 = sshll.u32 %s1974_s19, 4  ;;  %s1869_s23 = int_to_ptr.vmem [resolvable:$false] %s1868_s23 }
  0x23   : > { %s1870_s24 = scalar_lea.vmem %s1869_s23, 4096  ;;  %p1871_p3 = scmp.lt.s32.totalorder %s2070_s30, %s1869_s23 }
  0x24   : > { %p1866_p0 = pnand %p1864_p9, %p1852_p2  ;;  %p1872_p12 = scmp.lt.s32.totalorder %s1870_s24, %s1863_s17 }
  0x26   : > { %p1867_p1 = pneg %p1866_p0  ;;  %p1873_p11 = por %p1872_p12, %p1871_p3 }
  0x28   : > { %p1874_p6 = pnand %p1873_p11, %p1867_p1 }
  0x2a   : > { %1877 = shalt.err (!%p1874_p6)
}
  0x2b   : > { %s1975_s25 = smov 1024   ;;  %s1976_s26 = smov 512  }
  0x2c   : > { %s1977_s27 = smov 32   ;;  %p137_p9 = scmp.lt.s32.totalorder %s1972_s12, 3 }
  0x2d   : > { %1801 = dma.hbm_to_vmem [thread:$0]  (!%p2066_p13), %s2062_s28, 2048, %s2070_s30, %s2073_s4, %s1975_s25, %s1976_s26, %s1977_s27  }
  0x2e   : > { %p6345_p0 = scmp.ge.s32.totalorder %s1972_s12, 1 }
  0x30   : > { %p138_p2 = pnand %p6345_p0, %p137_p9 }
  0x32   : > { %141 = sbr.rel (%p138_p2) target bundleno = 511 (0x1ff), region = 24 }
  0x37   : > { %s2098_s29 = sand.u32 1, %s1964_s10   ;;  %p6346_p6 = scmp.ne.s32.totalorder %s6341_s20, 0 }
  0x38   : > { %s1778_s5 = sshll.u32 %s2098_s29, 7  ;;  %s144_s6 = scalar_lea.sflag [#allocation3], %s2098_s29 }
  0x39   : > { %s2104_s7 = scalar_lea.vmem [#allocation2], %s1778_s5 }
  0x3a   : > { %1947 = dma.done.wait (%p6346_p6), %s144_s6, 2048  }
  0x3b   : > { %1949 = vsyncadd (%p6346_p6), %s144_s6, 4294965248  ;;  %v320_v0 = vlaneseq  ;;  %v2116_v3 = vld [vmem:[%s2104_s7] sm:$0xff]  ;;  %v2131_v8 = vld [vmem:[%s2104_s7 + $0x8] sm:$0xff]  ;;  %s4676_s20 = scalar_lea.vmem [#allocation5], %s1778_s5  ;;  %s1790_s28 = sshll.u32 %s2020_s13, 9 }
  0x3c   : > { %v2134_v9 = vld [vmem:[%s2104_s7 + $0x10] sm:$0xff]  ;;  %v2137_v10 = vld [vmem:[%s2104_s7 + $0x18] sm:$0xff]  ;;  %v192_v18 = vunpack.c.0.s8 %v2116_v3  ;;  %v2171_v22 = vld [vmem:[%s2104_s7 + $0x20] sm:$0xff]  ;;  %v193_v23 = vunpack.c.0.s8 %v2131_v8  ;;  %v196_v26 = vunpack.c.1.s8 %v2116_v3  ;;  %v197_v30 = vunpack.c.1.s8 %v2131_v8  ;;  %s1652_s30 = sshll.u32 %s4676_s20, 4  ;;  %s6012_s8 = scalar_lea.hbm %s6081_s1, %s1790_s28  ;;  %s6015_s30 = int_to_ptr.vmem [resolvable:$true] %s1652_s30 }
  0x3d   : > { %v2110_v1 = vshrl.u32 %v320_v0, 7  ;;  %v194_v24 = vunpack.c.0.s8 %v2134_v9  ;;  %v195_v25 = vunpack.c.0.s8 %v2137_v10  ;;  %v2178_v27 = vld [vmem:[%s2104_s7 + $0x28] sm:$0xff]  ;;  %v2181_v28 = vld [vmem:[%s2104_s7 + $0x30] sm:$0xff]  ;;  %v2184_v29 = vld [vmem:[%s2104_s7 + $0x38] sm:$0xff]  ;;  %v198_v31 = vunpack.c.1.s8 %v2134_v9  ;;  %s1634_s14 = scalar_lea.sflag [#allocation4], %s2098_s29  ;;  %s1878_s16 = scalar_lea.vmem %s6015_s30, 2048 }
  0x3e   : > { %v199_v32 = vunpack.c.1.s8 %v2137_v10  ;;  %v200_v33 = vunpack.c.2.s8 %v2116_v3  ;;  %v201_v34 = vunpack.c.2.s8 %v2131_v8  ;;  %v202_v35 = vunpack.c.2.s8 %v2134_v9  ;;  %v2199_v42 = vld [vmem:[%s2104_s7 + $0x40] sm:$0xff]  ;;  %v2206_v47 = vld [vmem:[%s2104_s7 + $0x48] sm:$0xff]  ;;  %v2209_v48 = vld [vmem:[%s2104_s7 + $0x50] sm:$0xff]  ;;  %p1879_p11 = scmp.ne.s32.totalorder %s6015_s30, %s1878_s16  ;;  %p7705_p12 = scmp.ne.s32.totalorder %s6342_s21, 0 }
  0x3f   : > { %v2113_v2 = vadd.s32 8, %v2110_v1  ;;  %v2119_v4 = vadd.s32 16, %v2110_v1  ;;  %v2122_v5 = vadd.s32 24, %v2110_v1  ;;  %v2125_v6 = vadd.s32 32, %v2110_v1  ;;  %v2212_v49 = vld [vmem:[%s2104_s7 + $0x58] sm:$0xff]  ;;  %v2227_v62 = vld [vmem:[%s2104_s7 + $0x60] sm:$0xff] }
  0x40   : > { %v2128_v7 = vadd.s32 40, %v2110_v1  ;;  %v2140_v11 = vadd.s32 48, %v2110_v1  ;;  %v2143_v12 = vadd.s32 56, %v2110_v1  ;;  %v2146_v13 = vadd.s32 64, %v2110_v1  ;;  %v2234_v54 = vld [vmem:[%s2104_s7 + $0x68] sm:$0xff]  ;;  %v2237_v57 = vld [vmem:[%s2104_s7 + $0x70] sm:$0xff]  ;;  %p1880_p13 = pnand %p1879_p11, %p7705_p12 }
  0x41   : > { %6347 = vst [vmem:[#allocation11_spill] sm:$0xff] %v2113_v2  ;;  %6348 = vst [vmem:[#allocation12_spill] sm:$0xff] %v2125_v6  ;;  %v2149_v14 = vadd.s32 72, %v2110_v1  ;;  %v2152_v15 = vadd.s32 80, %v2110_v1  ;;  %v2155_v16 = vadd.s32 88, %v2110_v1  ;;  %v2158_v17 = vadd.s32 96, %v2110_v1 }
  0x42   : > { %6349 = vst [vmem:[#allocation13_spill] sm:$0xff] %v2140_v11  ;;  %6350 = vst [vmem:[#allocation14_spill] sm:$0xff] %v2143_v12  ;;  %v2162_v19 = vadd.s32 104, %v2110_v1  ;;  %v2165_v20 = vadd.s32 112, %v2110_v1  ;;  %v2168_v21 = vadd.s32 120, %v2110_v1  ;;  %v203_v36 = vunpack.c.2.s8 %v2137_v10  ;;  %v2240_v58 = vld [vmem:[%s2104_s7 + $0x78] sm:$0xff]  ;;  %p1881_p4 = pneg %p1880_p13 }
  0x43   : > { %6351 = vst [vmem:[#allocation15_spill] sm:$0xff] %v2146_v13  ;;  %6352 = vst [vmem:[#allocation16_spill] sm:$0xff] %v2149_v14  ;;  %v204_v37 = vunpack.c.3.s8 %v2116_v3  ;;  %v205_v38 = vunpack.c.3.s8 %v2131_v8  ;;  %v206_v39 = vunpack.c.3.s8 %v2134_v9  ;;  %v207_v40 = vunpack.c.3.s8 %v2137_v10  ;;  %s1979_s17 = smov [#allocation5]  }
  0x44   : > { %6353 = vst [vmem:[#allocation17_spill] sm:$0xff] %v2152_v15  ;;  %6354 = vst [vmem:[#allocation18_spill] sm:$0xff] %v2155_v16  ;;  %v208_v41 = vunpack.c.0.s8 %v2171_v22  ;;  %v209_v43 = vunpack.c.0.s8 %v2178_v27  ;;  %v210_v44 = vunpack.c.0.s8 %v2181_v28  ;;  %v211_v45 = vunpack.c.0.s8 %v2184_v29  ;;  %s1882_s19 = sshll.u32 %s1979_s17, 4  ;;  %s1883_s19 = int_to_ptr.vmem [resolvable:$false] %s1882_s19 }
  0x45   : > { %6355 = vst [vmem:[#allocation19_spill] sm:$0xff] %v2158_v17  ;;  %6356 = vst [vmem:[#allocation20_spill] sm:$0xff] %v2162_v19  ;;  %v212_v46 = vunpack.c.1.s8 %v2171_v22  ;;  %v213_v50 = vunpack.c.1.s8 %v2178_v27  ;;  %v2271_v53 = vand.u32 255, %v192_v18  ;;  %v2275_v51 = vand.u32 255, %v193_v23  ;;  %s1884_s23 = scalar_lea.vmem %s1883_s19, 4096  ;;  %p1885_p5 = scmp.lt.s32.totalorder %s6015_s30, %s1883_s19 }
  0x46   : > { %6357 = vst [vmem:[#allocation21_spill] sm:$0xff] %v2165_v20  ;;  %6358 = vst [vmem:[#allocation22_spill] sm:$0xff] %v2168_v21  ;;  %v2279_v61 = vand.u32 255, %v194_v24  ;;  %v2283_v63 = vand.u32 255, %v195_v25  ;;  %v2287_v55 = vand.u32 255, %v196_v26  ;;  %v2291_v18 = vand.u32 255, %v197_v30  ;;  %p1886_p7 = scmp.lt.s32.totalorder %s1884_s23, %s1878_s16 }
  0x47   : > { %6359 = vst [vmem:[#allocation23_spill] sm:$0xff] %v2271_v53  ;;  %6360 = vst [vmem:[#allocation24_spill] sm:$0xff] %v2275_v51  ;;  %v2295_v23 = vand.u32 255, %v198_v31  ;;  %v2299_v24 = vand.u32 255, %v199_v32  ;;  %v2303_v25 = vand.u32 255, %v200_v33  ;;  %v2307_v26 = vand.u32 255, %v201_v34 }
  0x48   : > { %6361 = vst [vmem:[#allocation25_spill] sm:$0xff] %v2279_v61  ;;  %6362 = vst [vmem:[#allocation26_spill] sm:$0xff] %v2283_v63  ;;  %v2311_v30 = vand.u32 255, %v202_v35  ;;  %v2315_v31 = vand.u32 255, %v203_v36  ;;  %v2319_v32 = vand.u32 255, %v204_v37  ;;  %v2323_v33 = vand.u32 255, %v205_v38  ;;  %p1887_p8 = por %p1886_p7, %p1885_p5 }
  0x49   : > { %6363 = vst [vmem:[#allocation27_spill] sm:$0xff] %v2287_v55  ;;  %6364 = vst [vmem:[#allocation28_spill] sm:$0xff] %v2291_v18  ;;  %v2327_v34 = vand.u32 255, %v206_v39  ;;  %v2331_v35 = vand.u32 255, %v207_v40  ;;  %v2335_v36 = vand.u32 255, %v208_v41  ;;  %v2339_v3 = vand.u32 255, %v209_v43 }
  0x4a   : > { %6365 = vst [vmem:[#allocation29_spill] sm:$0xff] %v2295_v23  ;;  %6366 = vst [vmem:[#allocation30_spill] sm:$0xff] %v2299_v24  ;;  %v2343_v8 = vand.u32 255, %v210_v44  ;;  %v2347_v9 = vand.u32 255, %v211_v45  ;;  %v2351_v10 = vand.u32 255, %v212_v46  ;;  %v2355_v37 = vand.u32 255, %v213_v50  ;;  %p1888_p10 = pnand %p1887_p8, %p1881_p4 }
  0x4b   : > { %6367 = vst [vmem:[#allocation31_spill] sm:$0xff] %v2303_v25  ;;  %6368 = vst [vmem:[#allocation32_spill] sm:$0xff] %v2307_v26  ;;  %v6381_v38 = vunpack.c.1.s8 %v2181_v28  ;;  %v6383_v40 = vunpack.c.1.s8 %v2184_v29  ;;  %v6385_v43 = vunpack.c.2.s8 %v2171_v22  ;;  %v6387_v45 = vunpack.c.2.s8 %v2178_v27 }
  0x4c   : > { %6369 = vst [vmem:[#allocation33_spill] sm:$0xff] %v2311_v30  ;;  %6370 = vst [vmem:[#allocation34_spill] sm:$0xff] %v2315_v31  ;;  %v6389_v56 = vunpack.c.2.s8 %v2181_v28  ;;  %v6391_v0 = vunpack.c.2.s8 %v2184_v29  ;;  %v6393_v59 = vunpack.c.3.s8 %v2171_v22  ;;  %v6395_v60 = vunpack.c.3.s8 %v2178_v27 }
  0x4d   : > { %6371 = vst [vmem:[#allocation35_spill] sm:$0xff] %v2319_v32  ;;  %6372 = vst [vmem:[#allocation36_spill] sm:$0xff] %v2323_v33  ;;  %v2359_v39 = vand.u32 255, %v6381_v38  ;;  %v2363_v41 = vand.u32 255, %v6383_v40  ;;  %v2367_v44 = vand.u32 255, %v6385_v43  ;;  %v2371_v46 = vand.u32 255, %v6387_v45 }
  0x4e   : > { %6373 = vst [vmem:[#allocation37_spill] sm:$0xff] %v2327_v34  ;;  %6374 = vst [vmem:[#allocation38_spill] sm:$0xff] %v2331_v35  ;;  %v2375_v50 = vand.u32 255, %v6389_v56  ;;  %v2379_v38 = vand.u32 255, %v6391_v0  ;;  %v2383_v40 = vand.u32 255, %v6393_v59  ;;  %v2387_v43 = vand.u32 255, %v6395_v60 }
  0x4f   : > { %6375 = vst [vmem:[#allocation39_spill] sm:$0xff] %v2335_v36  ;;  %6376 = vst [vmem:[#allocation40_spill] sm:$0xff] %v2339_v3  ;;  %v6397_v52 = vunpack.c.3.s8 %v2181_v28  ;;  %v6399_v21 = vunpack.c.3.s8 %v2184_v29  ;;  %v6401_v20 = vunpack.c.0.s8 %v2199_v42  ;;  %v6403_v22 = vunpack.c.0.s8 %v2206_v47 }
  0x50   : > { %6377 = vst [vmem:[#allocation41_spill] sm:$0xff] %v2343_v8  ;;  %6378 = vst [vmem:[#allocation42_spill] sm:$0xff] %v2347_v9  ;;  %v6405_v27 = vunpack.c.0.s8 %v2209_v48  ;;  %v6407_v28 = vunpack.c.0.s8 %v2212_v49  ;;  %v6409_v29 = vunpack.c.1.s8 %v2199_v42  ;;  %v6411_v19 = vunpack.c.1.s8 %v2206_v47 }
  0x51   : > { %6379 = vst [vmem:[#allocation43_spill] sm:$0xff] %v2351_v10  ;;  %6380 = vst [vmem:[#allocation44_spill] sm:$0xff] %v2355_v37  ;;  %v2391_v45 = vand.u32 255, %v6397_v52  ;;  %v2395_v56 = vand.u32 255, %v6399_v21  ;;  %v2399_v0 = vand.u32 255, %v6401_v20  ;;  %v2403_v59 = vand.u32 255, %v6403_v22 }
  0x52   : > { %6382 = vst [vmem:[#allocation45_spill] sm:$0xff] %v2359_v39  ;;  %6384 = vst [vmem:[#allocation46_spill] sm:$0xff] %v2363_v41  ;;  %v2407_v60 = vand.u32 255, %v6405_v27  ;;  %v2411_v52 = vand.u32 255, %v6407_v28  ;;  %v2415_v21 = vand.u32 255, %v6409_v29  ;;  %v2419_v20 = vand.u32 255, %v6411_v19 }
  0x53   : > { %6386 = vst [vmem:[#allocation47_spill] sm:$0xff] %v2367_v44  ;;  %6388 = vst [vmem:[#allocation48_spill] sm:$0xff] %v2371_v46  ;;  %v6413_v17 = vunpack.c.1.s8 %v2209_v48  ;;  %vm6125_vm0 = vcmp.ne.s32.totalorder %v2271_v53, 95  ;;  %vm401_vm1 = vcmp.gt.s32.totalorder %v2271_v53, 32  ;;  %v6415_v27 = vunpack.c.1.s8 %v2212_v49 }
  0x54   : > { %6390 = vst [vmem:[#allocation49_spill] sm:$0xff] %v2375_v50  ;;  %6392 = vst [vmem:[#allocation50_spill] sm:$0xff] %v2379_v38  ;;  %v6417_v16 = vunpack.c.2.s8 %v2199_v42  ;;  %vm6120_vm2 = vcmp.ne.s32.totalorder %v2287_v55, 95  ;;  %vm405_vm3 = vcmp.gt.s32.totalorder %v2287_v55, 32  ;;  %v6419_v19 = vunpack.c.2.s8 %v2206_v47 }
  0x55   : > { %6394 = vst [vmem:[#allocation51_spill] sm:$0xff] %v2383_v40  ;;  %6396 = vst [vmem:[#allocation52_spill] sm:$0xff] %v2387_v43  ;;  %v2423_v22 = vand.u32 255, %v6413_v17  ;;  %v2429_v28 = vand.u32 255, %v6415_v27  ;;  %v6421_v15 = vunpack.c.2.s8 %v2209_v48  ;;  %v6423_v13 = vunpack.c.2.s8 %v2212_v49 }
  0x56   : > { %6398 = vst [vmem:[#allocation53_spill] sm:$0xff] %v2391_v45  ;;  %6400 = vst [vmem:[#allocation54_spill] sm:$0xff] %v2395_v56  ;;  %v2433_v29 = vand.u32 255, %v6417_v16  ;;  %v2439_v17 = vand.u32 255, %v6419_v19  ;;  %vm6123_vm4 = vcmp.ne.s32.totalorder %v2275_v51, 95  ;;  %vm402_vm5 = vcmp.gt.s32.totalorder %v2275_v51, 32 }
  0x57   : > { %6402 = vst [vmem:[#allocation55_spill] sm:$0xff] %v2399_v0  ;;  %6404 = vst [vmem:[#allocation56_spill] sm:$0xff] %v2403_v59  ;;  %v2443_v14 = vand.u32 255, %v6421_v15  ;;  %v2447_v27 = vand.u32 255, %v6423_v13  ;;  %v6431_v13 = vmov 0  ;;  %v6433_v15 = vunpack.c.3.s8 %v2212_v49 }
  0x58   : > { %6406 = vst [vmem:[#allocation57_spill] sm:$0xff] %v2407_v60  ;;  %6408 = vst [vmem:[#allocation58_spill] sm:$0xff] %v2411_v52  ;;  %vm6122_vm7 = vcmp.ne.s32.totalorder %v2279_v61, 95  ;;  %vm403_vm8 = vcmp.gt.s32.totalorder %v2279_v61, 32  ;;  %v6441_v49 = vunpack.c.0.s8 %v2237_v57  ;;  %vm6119_vm10 = vcmp.ne.s32.totalorder %v2291_v18, 95 }
  0x59   : > { %6410 = vst [vmem:[#allocation59_spill] sm:$0xff] %v2415_v21  ;;  %6412 = vst [vmem:[#allocation60_spill] sm:$0xff] %v2419_v20  ;;  %v6429_v20 = vunpack.c.3.s8 %v2209_v48  ;;  %v6437_v48 = vmov 0  ;;  %vm406_vm11 = vcmp.gt.s32.totalorder %v2291_v18, 32  ;;  %v6445_v55 = vunpack.c.1.s8 %v2227_v62 }
  0x5a   : > { %6414 = vst [vmem:[#allocation61_spill] sm:$0xff] %v2423_v22  ;;  %6416 = vst [vmem:[#allocation62_spill] sm:$0xff] %v2429_v28  ;;  %v6425_v28 = vunpack.c.3.s8 %v2199_v42  ;;  %v2471_v42 = vand.u32 255, %v6433_v15  ;;  %v2491_v15 = vand.u32 255, %v6441_v49  ;;  %vm6121_vm12 = vcmp.ne.s32.totalorder %v2295_v23, 95 }
  0x5b   : > { %6418 = vst [vmem:[#allocation63_spill] sm:$0xff] %v2433_v29  ;;  %6420 = vst [vmem:[#allocation64_spill] sm:$0xff] %v2439_v17  ;;  %v6427_v29 = vunpack.c.3.s8 %v2206_v47  ;;  %v2459_v19 = vand.u32 255, %v6429_v20  ;;  %v6435_v47 = vunpack.c.0.s8 %v2227_v62  ;;  %v6439_v20 = vunpack.c.0.s8 %v2234_v54 }
  0x5c   : > { %6422 = vst [vmem:[#allocation65_spill] sm:$0xff] %v2443_v14  ;;  %6424 = vst [vmem:[#allocation66_spill] sm:$0xff] %v2447_v27  ;;  %v2451_v16 = vand.u32 255, %v6425_v28  ;;  %vm407_vm13 = vcmp.gt.s32.totalorder %v2295_v23, 32  ;;  %vm6124_vm15 = vcmp.ne.s32.totalorder %v2303_v25, 95  ;;  %v6451_v51 = vunpack.c.1.s8 %v2234_v54 }
  0x5d   : > { %v2455_v22 = vand.u32 255, %v6427_v29  ;;  %6430 = vst [vmem:[#allocation69_spill] sm:$0xff] %v2459_v19  ;;  %vm2465_vm6 = vmand %vm401_vm1, %vm6125_vm0  ;;  %v2475_v28 = vand.u32 255, %v6435_v47  ;;  %v2487_v29 = vand.u32 255, %v6439_v20  ;;  %v6443_v47 = vunpack.c.0.s8 %v2240_v58 }
  0x5e   : > { %6426 = vst [vmem:[#allocation67_spill] sm:$0xff] %v2451_v16  ;;  %v6432_v13 = vsel %vm2465_vm6, 4294967295, %v6431_v13  ;;  %6434 = vst [vmem:[#allocation70_spill] sm:$0xff] %v2471_v42  ;;  %v6447_v20 = vmov 0  ;;  %vm409_vm1 = vcmp.gt.s32.totalorder %v2303_v25, 32  ;;  %v529_v49 = vsel %vm2465_vm6, %v2110_v1, 128 }
  0x5f   : > { %6428 = vst [vmem:[#allocation68_spill] sm:$0xff] %v2455_v22  ;;  %6436 = vst [vmem:[#allocation71_spill] sm:$0xff] %v2475_v28  ;;  %v2497_v53 = vand.u32 255, %v6443_v47  ;;  %v2501_v28 = vand.u32 255, %v6445_v55  ;;  %v6449_v55 = vmov 0  ;;  %v6455_v61 = vunpack.c.1.s8 %v2240_v58 }
  0x60   : > { %vm2481_vm9 = vmand %vm405_vm3, %vm6120_vm2  ;;  %6440 = vst [vmem:[#allocation72_spill] sm:$0xff] %v2487_v29  ;;  %v6457_v42 = vunpack.c.2.s8 %v2227_v62  ;;  %v6459_v22 = vmov 0  ;;  %v6469_v18 = vmov 0  ;;  %vm6479_vm0 = vcmp.ne.s32.totalorder %v2307_v26, 95 }
  0x61   : > { %v6438_v48 = vsel %vm2481_vm9, 4294967295, %v6437_v48  ;;  %6442 = vst [vmem:[#allocation73_spill] sm:$0xff] %v2491_v15  ;;  %6444 = vst [vmem:[#allocation74_spill] sm:$0xff] %v2497_v53  ;;  %v533_v47 = vsel %vm2481_vm9, %v2113_v2, 128  ;;  %v6453_v53 = vunpack.c.1.s8 %v2237_v57  ;;  %v2537_v29 = vand.u32 255, %v6455_v61 }
  0x62   : > { %6446 = vst [vmem:[#allocation75_spill] sm:$0xff] %v2501_v28  ;;  %vm2509_vm14 = vmand %vm402_vm5, %vm6123_vm4  ;;  %v2529_v28 = vand.u32 255, %v6451_v51  ;;  %v2541_v19 = vand.u32 255, %v6457_v42  ;;  %v6461_v51 = vunpack.c.2.s8 %v2234_v54 }
  0x63   : > { %v6448_v20 = vsel %vm2509_vm14, 4294967295, %v6447_v20  ;;  %vm2517_vm3 = vmand %vm403_vm8, %vm6122_vm7  ;;  %v2533_v15 = vand.u32 255, %v6453_v53  ;;  %6456 = vst [vmem:[#allocation78_spill] sm:$0xff] %v2537_v29  ;;  %v6465_v29 = vunpack.c.2.s8 %v2240_v58  ;;  %vm410_vm7 = vcmp.gt.s32.totalorder %v2307_v26, 32 }
  0x64   : > { %v6450_v55 = vsel %vm2517_vm3, 4294967295, %v6449_v55  ;;  %6452 = vst [vmem:[#allocation76_spill] sm:$0xff] %v2529_v28  ;;  %6458 = vst [vmem:[#allocation79_spill] sm:$0xff] %v2541_v19  ;;  %v2553_v53 = vand.u32 255, %v6461_v51  ;;  %v6467_v19 = vunpack.c.3.s8 %v2227_v62  ;;  %v6471_v51 = vunpack.c.3.s8 %v2234_v54 }
  0x65   : > { %6454 = vst [vmem:[#allocation77_spill] sm:$0xff] %v2533_v15  ;;  %vm2547_vm5 = vmand %vm406_vm11, %vm6119_vm10  ;;  %v6463_v15 = vunpack.c.2.s8 %v2237_v57  ;;  %v2561_v42 = vand.u32 255, %v6465_v29  ;;  %vm6134_vm11 = vcmp.ne.s32.totalorder %v2283_v63, 95  ;;  %vm404_vm10 = vcmp.gt.s32.totalorder %v2283_v63, 32 }
  0x66   : > { %v6460_v22 = vsel %vm2547_vm5, 4294967295, %v6459_v22  ;;  %6462 = vst [vmem:[#allocation80_spill] sm:$0xff] %v2553_v53  ;;  %v2565_v28 = vand.u32 255, %v6467_v19  ;;  %vm2571_vm8 = vmand %vm407_vm13, %vm6121_vm12  ;;  %v6473_v62 = vmov 0  ;;  %vm593_vm13 = vcmp.lt.s32.totalorder %v529_v49, %v533_v47 }
  0x67   : > { %v2557_v61 = vand.u32 255, %v6463_v15  ;;  %6466 = vst [vmem:[#allocation82_spill] sm:$0xff] %v2561_v42  ;;  %v6470_v18 = vsel %vm2571_vm8, 4294967295, %v6469_v18  ;;  %v2577_v15 = vand.u32 255, %v6471_v51  ;;  %vm2585_vm2 = vmand %vm409_vm1, %vm6124_vm15  ;;  %v530_v54 = vsel %vm2509_vm14, %v2110_v1, 128 }
  0x68   : > { %6468 = vst [vmem:[#allocation83_spill] sm:$0xff] %v2565_v28  ;;  %v6474_v62 = vsel %vm2585_vm2, 4294967295, %v6473_v62  ;;  %v534_v19 = vsel %vm2547_vm5, %v2113_v2, 128  ;;  %vm2603_vm12 = vmand %vm404_vm10, %vm6134_vm11  ;;  %v6475_v29 = vmov 0  ;;  %v531_v51 = vsel %vm2517_vm3, %v2110_v1, 128 }
  0x69   : > { %6464 = vst [vmem:[#allocation81_spill] sm:$0xff] %v2557_v61  ;;  %6472 = vst [vmem:[#allocation84_spill] sm:$0xff] %v2577_v15  ;;  %v6476_v29 = vsel %vm2603_vm12, 4294967295, %v6475_v29  ;;  %v535_v25 = vsel %vm2571_vm8, %v2113_v2, 128  ;;  %v537_v23 = vsel %vm2585_vm2, %v2119_v4, 128  ;;  %v594_v15 = vsel %vm593_vm13, %v529_v49, %v533_v47 }
  0x6a   : > { %v6477_v28 = vunpack.c.3.s8 %v2237_v57  ;;  %vm2626_vm1 = vmand %vm410_vm7, %vm6479_vm0  ;;  %v6480_v42 = vmov 0  ;;  %vm632_vm15 = vcmp.lt.s32.totalorder %v530_v54, %v534_v19  ;;  %v6482_v61 = vunpack.c.3.s8 %v2240_v58 }
  0x6b   : > { %v6481_v42 = vsel %vm2626_vm1, 4294967295, %v6480_v42  ;;  %vm6484_vm11 = vcmp.ne.s32.totalorder %v2311_v30, 95  ;;  %vm6485_vm2 = vcmp.gt.s32.totalorder %v2311_v30, 32  ;;  %v6486_v57 = vmov 0 }
  0x6c   : > { %v2618_v63 = vand.u32 255, %v6477_v28  ;;  %v2632_v49 = vand.u32 255, %v6482_v61  ;;  %vm2641_vm8 = vmand %vm6485_vm2, %vm6484_vm11  ;;  %vm412_vm7 = vcmp.gt.s32.totalorder %v2315_v31, 32  ;;  %vm6488_vm5 = vcmp.ne.s32.totalorder %v2319_v32, 95 }
  0x6d   : > { %v6487_v57 = vsel %vm2641_vm8, 4294967295, %v6486_v57  ;;  %vm6489_vm13 = vcmp.gt.s32.totalorder %v2319_v32, 32  ;;  %v6490_v58 = vmov 0  ;;  %vm595_vm10 = vcmp.lt.s32.totalorder %v594_v15, %v537_v23 }
  0x6e   : > { %6478 = vst [vmem:[#allocation85_spill] sm:$0xff] %v2618_v63  ;;  %6483 = vst [vmem:[#allocation86_spill] sm:$0xff] %v2632_v49  ;;  %vm671_vm4 = vcmp.lt.s32.totalorder %v531_v51, %v535_v25  ;;  %vm414_vm2 = vcmp.gt.s32.totalorder %v2323_v33, 32  ;;  %vm6492_vm11 = vcmp.ne.s32.totalorder %v2299_v24, 95  ;;  %vm6493_vm0 = vcmp.gt.s32.totalorder %v2299_v24, 32 }
  0x6f   : > { %vm2651_vm3 = vmand %vm6489_vm13, %vm6488_vm5  ;;  %v538_v47 = vsel %vm2626_vm1, %v2119_v4, 128  ;;  %v633_v61 = vsel %vm632_vm15, %v530_v54, %v534_v19  ;;  %vm415_vm14 = vcmp.gt.s32.totalorder %v2327_v34, 32  ;;  %vm6496_vm12 = vcmp.ne.s32.totalorder %v2315_v31, 95 }
  0x70   : > { %v6491_v58 = vsel %vm2651_vm3, 4294967295, %v6490_v58  ;;  %vm2661_vm9 = vmand %vm6493_vm0, %vm6492_vm11  ;;  %v539_v30 = vsel %vm2641_vm8, %v2119_v4, 128  ;;  %v596_v19 = vsel %vm595_vm10, %v594_v15, %v537_v23  ;;  %v672_v26 = vsel %vm671_vm4, %v531_v51, %v535_v25 }
  0x71   : > { %vm2674_vm3 = vmand %vm412_vm7, %vm6496_vm12  ;;  %vm6499_vm15 = vnez %v6491_v58  ;;  %vm6500_vm11 = vcmp.ne.s32.totalorder %v2323_v33, 95  ;;  %vm6503_vm12 = vnez %v6476_v29  ;;  %v536_v49 = vsel %vm2661_vm9, %v2113_v2, 128 }
  0x72   : > { %v541_v54 = vsel %vm6499_vm15, %v2122_v5, 128  ;;  %vm2687_vm13 = vmand %vm414_vm2, %vm6500_vm11  ;;  %v532_v24 = vsel %vm6503_vm12, %v2110_v1, 128  ;;  %vm634_vm7 = vcmp.lt.s32.totalorder %v633_v61, %v538_v47  ;;  %vm6504_vm11 = vcmp.ne.s32.totalorder %v2327_v34, 95 }
  0x73   : > { %vm2705_vm5 = vmand %vm415_vm14, %vm6504_vm11  ;;  %v6505_v23 = vmov 0  ;;  %vm6507_vm4 = vcmp.ne.s32.totalorder %v2335_v36, 95  ;;  %vm6508_vm0 = vcmp.gt.s32.totalorder %v2335_v36, 32  ;;  %v6509_v25 = vmov 0 }
  0x74   : > { %v6506_v23 = vsel %vm2705_vm5, 4294967295, %v6505_v23  ;;  %vm2716_vm8 = vmand %vm6508_vm0, %vm6507_vm4  ;;  %vm597_vm2 = vcmp.lt.s32.totalorder %v596_v19, %v541_v54  ;;  %vm673_vm1 = vcmp.lt.s32.totalorder %v672_v26, %v539_v30  ;;  %v542_v15 = vsel %vm2687_vm13, %v2122_v5, 128 }
  0x75   : > { %v6510_v25 = vsel %vm2716_vm8, 4294967295, %v6509_v25  ;;  %v635_v51 = vsel %vm634_vm7, %v633_v61, %v538_v47  ;;  %vm710_vm6 = vcmp.lt.s32.totalorder %v532_v24, %v536_v49  ;;  %v540_v36 = vsel %vm2674_vm3, %v2119_v4, 128 }
  0x76   : > { %vm6511_vm4 = vcmp.ne.s32.totalorder %v2331_v35, 95  ;;  %vm6512_vm14 = vcmp.gt.s32.totalorder %v2331_v35, 32  ;;  %v543_v47 = vsel %vm2705_vm5, %v2122_v5, 128  ;;  %v545_v61 = vsel %vm2716_vm8, %v2125_v6, 128 }
  0x77   : > { %vm2735_vm11 = vmand %vm6512_vm14, %vm6511_vm4  ;;  %v598_v33 = vsel %vm597_vm2, %v596_v19, %v541_v54  ;;  %v674_v63 = vsel %vm673_vm1, %v672_v26, %v539_v30  ;;  %vm6515_vm15 = vcmp.ne.s32.totalorder %v2339_v3, 95  ;;  %vm6516_vm14 = vcmp.gt.s32.totalorder %v2339_v3, 32 }
  0x78   : > { %vm2751_vm4 = vmand %vm6516_vm14, %vm6515_vm15  ;;  %v6517_v35 = vmov 0  ;;  %v711_v53 = vsel %vm710_vm6, %v532_v24, %v536_v49  ;;  %vm6519_vm5 = vnez %v6432_v13  ;;  %vm6520_vm1 = vnez %v6438_v48 }
  0x79   : > { %v6518_v35 = vsel %vm2751_vm4, 4294967295, %v6517_v35  ;;  %v749_v27 = vsel %vm6519_vm5, %v2110_v1, 4294967295  ;;  %v753_v26 = vsel %vm6520_vm1, %v2113_v2, 4294967295  ;;  %vm6521_vm7 = vcmp.ne.s32.totalorder %v2343_v8, 95 }
  0x7a   : > { %vm6522_vm15 = vcmp.gt.s32.totalorder %v2343_v8, 32  ;;  %v6523_v30 = vmov 0  ;;  %vm6525_vm6 = vnez %v6448_v20  ;;  %vm6526_vm5 = vnez %v6450_v55  ;;  %v6623_v8 = vld [vmem:[#allocation15_spill] sm:$0xff] }
  0x7b   : > { %vm2767_vm14 = vmand %vm6522_vm15, %vm6521_vm7  ;;  %v750_v24 = vsel %vm6525_vm6, %v2110_v1, 4294967295  ;;  %v751_v13 = vsel %vm6526_vm5, %v2110_v1, 4294967295  ;;  %vm6527_vm1 = vnez %v6460_v22  ;;  %vm6528_vm0 = vnez %v6470_v18 }
  0x7c   : > { %v6524_v30 = vsel %vm2767_vm14, 4294967295, %v6523_v30  ;;  %v754_v48 = vsel %vm6527_vm1, %v2113_v2, 4294967295  ;;  %v755_v49 = vsel %vm6528_vm0, %v2113_v2, 4294967295  ;;  %vm6529_vm2 = vcmp.ne.s32.totalorder %v2351_v10, 95 }
  0x7d   : > { %vm6530_vm6 = vcmp.gt.s32.totalorder %v2351_v10, 32  ;;  %v6531_v20 = vmov 0  ;;  %vm599_vm5 = vcmp.lt.s32.totalorder %v598_v33, %v545_v61  ;;  %vm675_vm8 = vcmp.lt.s32.totalorder %v674_v63, %v543_v47 }
  0x7e   : > { %vm2789_vm10 = vmand %vm6530_vm6, %vm6529_vm2  ;;  %v752_v22 = vsel %vm6503_vm12, %v2110_v1, 4294967295  ;;  %v756_v18 = vsel %vm2661_vm9, %v2113_v2, 4294967295  ;;  %v546_v55 = vsel %vm2751_vm4, %v2125_v6, 128  ;;  %vm6533_vm2 = vcmp.lt.s32.totalorder %v635_v51, %v542_v15 }
  0x7f   : > { %v6532_v20 = vsel %vm2789_vm10, 4294967295, %v6531_v20  ;;  %v637_v54 = vsel %vm6533_vm2, %v635_v51, %v542_v15  ;;  %vm712_vm6 = vcmp.lt.s32.totalorder %v711_v53, %v540_v36  ;;  %vm813_vm15 = vcmp.gt.s32.totalorder %v749_v27, %v753_v26 }
  0x80   : > { %v544_v29 = vsel %vm2735_vm11, %v2122_v5, 128  ;;  %v547_v28 = vsel %vm2767_vm14, %v2125_v6, 128  ;;  %vm6534_vm1 = vcmp.ne.s32.totalorder %v2347_v9, 95  ;;  %vm6535_vm0 = vcmp.gt.s32.totalorder %v2347_v9, 32 }
  0x81   : > { %vm2815_vm7 = vmand %vm6535_vm0, %vm6534_vm1  ;;  %v549_v15 = vsel %vm2789_vm10, %v2128_v7, 128  ;;  %v600_v51 = vsel %vm599_vm5, %v598_v33, %v545_v61  ;;  %v676_v10 = vsel %vm675_vm8, %v674_v63, %v543_v47  ;;  %vm6538_vm9 = vcmp.ne.s32.totalorder %v2355_v37, 95 }
  0x82   : > { %vm6539_vm12 = vcmp.gt.s32.totalorder %v2355_v37, 32  ;;  %v713_v9 = vsel %vm712_vm6, %v711_v53, %v540_v36  ;;  %vm6542_vm1 = vnez %v6474_v62  ;;  %v814_v2 = vsel %vm813_vm15, %v749_v27, %v753_v26 }
  0x83   : > { %vm2828_vm14 = vmand %vm6539_vm12, %vm6538_vm9  ;;  %v757_v3 = vsel %vm6542_vm1, %v2119_v4, 4294967295  ;;  %vm6543_vm2 = vcmp.ne.s32.totalorder %v2359_v39, 95  ;;  %vm6544_vm10 = vcmp.gt.s32.totalorder %v2359_v39, 32  ;;  %v6545_v63 = vmov 0 }
  0x84   : > { %vm2841_vm4 = vmand %vm6544_vm10, %vm6543_vm2  ;;  %vm6547_vm6 = vnez %v6481_v42  ;;  %vm6548_vm9 = vnez %v6487_v57  ;;  %vm6549_vm15 = vcmp.gt.s32.totalorder %v750_v24, %v754_v48  ;;  %vm6550_vm12 = vcmp.gt.s32.totalorder %v751_v13, %v755_v49 }
  0x85   : > { %v6546_v63 = vsel %vm2841_vm4, 4294967295, %v6545_v63  ;;  %v758_v33 = vsel %vm6547_vm6, %v2119_v4, 4294967295  ;;  %v759_v36 = vsel %vm6548_vm9, %v2119_v4, 4294967295  ;;  %v853_v27 = vsel %vm6549_vm15, %v750_v24, %v754_v48 }
  0x86   : > { %v892_v53 = vsel %vm6550_vm12, %v751_v13, %v755_v49  ;;  %vm6551_vm10 = vcmp.ne.s32.totalorder %v2367_v44, 95  ;;  %vm6552_vm2 = vcmp.gt.s32.totalorder %v2367_v44, 32  ;;  %v6553_v62 = vmov 0 }
  0x87   : > { %vm2859_vm5 = vmand %vm6552_vm2, %vm6551_vm10  ;;  %vm601_vm6 = vcmp.lt.s32.totalorder %v600_v51, %v549_v15  ;;  %vm677_vm0 = vcmp.lt.s32.totalorder %v676_v10, %v547_v28  ;;  %v760_v42 = vsel %vm2674_vm3, %v2119_v4, 4294967295  ;;  %vm6555_vm9 = vcmp.gt.s32.totalorder %v752_v22, %v756_v18 }
  0x88   : > { %v6554_v62 = vsel %vm2859_vm5, 4294967295, %v6553_v62  ;;  %v931_v57 = vsel %vm6555_vm9, %v752_v22, %v756_v18  ;;  %v550_v47 = vsel %vm2828_vm14, %v2128_v7, 128  ;;  %vm6556_vm10 = vcmp.lt.s32.totalorder %v637_v54, %v546_v55 }
  0x89   : > { %v639_v61 = vsel %vm6556_vm10, %v637_v54, %v546_v55  ;;  %vm714_vm2 = vcmp.lt.s32.totalorder %v713_v9, %v544_v29  ;;  %v548_v26 = vsel %vm2815_vm7, %v2125_v6, 128  ;;  %v551_v32 = vsel %vm2841_vm4, %v2128_v7, 128 }
  0x8a   : > { %vm6557_vm12 = vcmp.ne.s32.totalorder %v2363_v41, 95  ;;  %vm6558_vm15 = vcmp.gt.s32.totalorder %v2363_v41, 32  ;;  %v6559_v24 = vmov 0  ;;  %v553_v13 = vsel %vm2859_vm5, %v2140_v11, 128 }
  0x8b   : > { %vm2883_vm1 = vmand %vm6558_vm15, %vm6557_vm12  ;;  %v602_v48 = vsel %vm601_vm6, %v600_v51, %v549_v15  ;;  %v678_v49 = vsel %vm677_vm0, %v676_v10, %v547_v28  ;;  %vm6561_vm8 = vcmp.ne.s32.totalorder %v2371_v46, 95  ;;  %vm6562_vm15 = vcmp.gt.s32.totalorder %v2371_v46, 32 }
  0x8c   : > { %v6560_v24 = vsel %vm2883_vm1, 4294967295, %v6559_v24  ;;  %vm2898_vm12 = vmand %vm6562_vm15, %vm6561_vm8  ;;  %v6563_v22 = vmov 0  ;;  %v715_v18 = vsel %vm714_vm2, %v713_v9, %v544_v29  ;;  %vm6565_vm6 = vnez %v6491_v58 }
  0x8d   : > { %v6564_v22 = vsel %vm2898_vm12, 4294967295, %v6563_v22  ;;  %v761_v55 = vsel %vm6565_vm6, %v2122_v5, 4294967295  ;;  %vm6566_vm0 = vcmp.gt.s32.totalorder %v814_v2, %v757_v3  ;;  %vm6567_vm10 = vcmp.ne.s32.totalorder %v2375_v50, 95 }
  0x8e   : > { %v816_v10 = vsel %vm6566_vm0, %v814_v2, %v757_v3  ;;  %vm6568_vm5 = vcmp.gt.s32.totalorder %v2375_v50, 32  ;;  %v762_v9 = vsel %vm2687_vm13, %v2122_v5, 4294967295  ;;  %vm6571_vm2 = vnez %v6506_v23 }
  0x8f   : > { %vm2912_vm8 = vmand %vm6568_vm5, %vm6567_vm10  ;;  %v763_v2 = vsel %vm6571_vm2, %v2122_v5, 4294967295  ;;  %vm6572_vm15 = vcmp.gt.s32.totalorder %v853_v27, %v758_v33  ;;  %vm6573_vm6 = vcmp.gt.s32.totalorder %v892_v53, %v759_v36  ;;  %vm6574_vm5 = vcmp.ne.s32.totalorder %v2383_v40, 95 }
  0x90   : > { %v855_v3 = vsel %vm6572_vm15, %v853_v27, %v758_v33  ;;  %v894_v58 = vsel %vm6573_vm6, %v892_v53, %v759_v36  ;;  %vm6575_vm10 = vcmp.gt.s32.totalorder %v2383_v40, 32  ;;  %v6576_v29 = vmov 0 }
  0x91   : > { %vm2930_vm3 = vmand %vm6575_vm10, %vm6574_vm5  ;;  %vm603_vm13 = vcmp.lt.s32.totalorder %v602_v48, %v553_v13  ;;  %vm679_vm4 = vcmp.lt.s32.totalorder %v678_v49, %v551_v32  ;;  %v764_v31 = vsel %vm2735_vm11, %v2122_v5, 4294967295  ;;  %vm6578_vm2 = vcmp.gt.s32.totalorder %v931_v57, %v760_v42 }
  0x92   : > { %v6577_v29 = vsel %vm2930_vm3, 4294967295, %v6576_v29  ;;  %v933_v23 = vsel %vm6578_vm2, %v931_v57, %v760_v42  ;;  %v554_v28 = vsel %vm2898_vm12, %v2140_v11, 128  ;;  %vm6579_vm5 = vcmp.lt.s32.totalorder %v639_v61, %v550_v47 }
  0x93   : > { %v641_v15 = vsel %vm6579_vm5, %v639_v61, %v550_v47  ;;  %vm716_vm10 = vcmp.lt.s32.totalorder %v715_v18, %v548_v26  ;;  %vm817_vm9 = vcmp.gt.s32.totalorder %v816_v10, %v761_v55  ;;  %v552_v51 = vsel %vm2883_vm1, %v2128_v7, 128 }
  0x94   : > { %v555_v34 = vsel %vm2912_vm8, %v2140_v11, 128  ;;  %v557_v33 = vsel %vm2930_vm3, %v2143_v12, 128  ;;  %v604_v36 = vsel %vm603_vm13, %v602_v48, %v553_v13  ;;  %v680_v27 = vsel %vm679_vm4, %v678_v49, %v551_v32  ;;  %v6593_v48 = vld [vmem:[#allocation60_spill] sm:$0xff] }
  0x95   : > { %vm6580_vm0 = vcmp.ne.s32.totalorder %v2387_v43, 95  ;;  %vm6581_vm12 = vcmp.gt.s32.totalorder %v2387_v43, 32  ;;  %v6582_v53 = vmov 0  ;;  %v717_v42 = vsel %vm716_vm10, %v715_v18, %v548_v26  ;;  %v6599_v18 = vld [vmem:[#allocation61_spill] sm:$0xff] }
  0x96   : > { %vm2959_vm1 = vmand %vm6581_vm12, %vm6580_vm0  ;;  %vm6584_vm11 = vnez %v6510_v25  ;;  %v818_v47 = vsel %vm817_vm9, %v816_v10, %v761_v55  ;;  %vm6585_vm15 = vcmp.ne.s32.totalorder %v2379_v38, 95  ;;  %vm6586_vm5 = vcmp.gt.s32.totalorder %v2379_v38, 32 }
  0x97   : > { %v6583_v53 = vsel %vm2959_vm1, 4294967295, %v6582_v53  ;;  %v765_v57 = vsel %vm6584_vm11, %v2125_v6, 4294967295  ;;  %vm2972_vm6 = vmand %vm6586_vm5, %vm6585_vm15  ;;  %vm6589_vm12 = vnez %v6518_v35  ;;  %vm6590_vm0 = vnez %v6524_v30 }
  0x98   : > { %v766_v26 = vsel %vm6589_vm12, %v2125_v6, 4294967295  ;;  %v767_v25 = vsel %vm6590_vm0, %v2125_v6, 4294967295  ;;  %vm6591_vm9 = vcmp.gt.s32.totalorder %v855_v3, %v762_v9  ;;  %vm6592_vm10 = vcmp.gt.s32.totalorder %v894_v58, %v763_v2 }
  0x99   : > { %v857_v32 = vsel %vm6591_vm9, %v855_v3, %v762_v9  ;;  %v896_v13 = vsel %vm6592_vm10, %v894_v58, %v763_v2  ;;  %vm6594_vm15 = vcmp.ne.s32.totalorder %v2391_v45, 95  ;;  %vm6595_vm5 = vcmp.gt.s32.totalorder %v2391_v45, 32 }
  0x9a   : > { %vm2990_vm4 = vmand %vm6595_vm5, %vm6594_vm15  ;;  %v6596_v49 = vmov 0  ;;  %vm605_vm12 = vcmp.lt.s32.totalorder %v604_v36, %v557_v33  ;;  %vm681_vm2 = vcmp.lt.s32.totalorder %v680_v27, %v555_v34  ;;  %v768_v35 = vsel %vm2815_vm7, %v2125_v6, 4294967295  ;;  %v6610_v6 = vld [vmem:[#allocation63_spill] sm:$0xff] }
  0x9b   : > { %v6597_v49 = vsel %vm2990_vm4, 4294967295, %v6596_v49  ;;  %vm6598_vm0 = vcmp.gt.s32.totalorder %v933_v23, %v764_v31  ;;  %v558_v55 = vsel %vm2959_vm1, %v2143_v12, 128  ;;  %vm6600_vm10 = vcmp.lt.s32.totalorder %v641_v15, %v554_v28 }
  0x9c   : > { %v935_v30 = vsel %vm6598_vm0, %v933_v23, %v764_v31  ;;  %v643_v10 = vsel %vm6600_vm10, %v641_v15, %v554_v28  ;;  %vm718_vm15 = vcmp.lt.s32.totalorder %v717_v42, %v552_v51  ;;  %vm819_vm5 = vcmp.gt.s32.totalorder %v818_v47, %v765_v57 }
  0x9d   : > { %v556_v9 = vsel %vm2972_vm6, %v2140_v11, 128  ;;  %vm6601_vm0 = vcmp.ne.s32.totalorder %v2399_v0, 95  ;;  %vm6602_vm9 = vcmp.gt.s32.totalorder %v2399_v0, 32  ;;  %v6603_v19 = vmov 0 }
  0x9e   : > { %vm3011_vm3 = vmand %vm6602_vm9, %vm6601_vm0  ;;  %v559_v2 = vsel %vm2990_vm4, %v2143_v12, 128  ;;  %v606_v3 = vsel %vm605_vm12, %v604_v36, %v557_v33  ;;  %v682_v58 = vsel %vm681_vm2, %v680_v27, %v555_v34  ;;  %vm6605_vm13 = vcmp.ne.s32.totalorder %v2403_v59, 95  ;;  %v6618_v27 = vld [vmem:[#allocation62_spill] sm:$0xff] }
  0x9f   : > { %v6604_v19 = vsel %vm3011_vm3, 4294967295, %v6603_v19  ;;  %vm6606_vm11 = vcmp.gt.s32.totalorder %v2403_v59, 32  ;;  %v6607_v31 = vmov 0  ;;  %vm644_vm1 = vcmp.lt.s32.totalorder %v643_v10, %v558_v55 }
  0xa0   : > { %vm3022_vm7 = vmand %vm6606_vm11, %vm6605_vm13  ;;  %v719_v23 = vsel %vm718_vm15, %v717_v42, %v552_v51  ;;  %vm6609_vm9 = vnez %v6532_v20  ;;  %v820_v15 = vsel %vm819_vm5, %v818_v47, %v765_v57  ;;  %vm6611_vm12 = vcmp.ne.s32.totalorder %v2395_v56, 95 }
  0xa1   : > { %v6608_v31 = vsel %vm3022_vm7, 4294967295, %v6607_v31  ;;  %v769_v28 = vsel %vm6609_vm9, %v2128_v7, 4294967295  ;;  %vm6612_vm10 = vcmp.gt.s32.totalorder %v2395_v56, 32  ;;  %v770_v51 = vsel %vm2828_vm14, %v2128_v7, 4294967295 }
  0xa2   : > { %vm3035_vm4 = vmand %vm6612_vm10, %vm6611_vm12  ;;  %vm6615_vm13 = vnez %v6546_v63  ;;  %vm6616_vm11 = vcmp.gt.s32.totalorder %v857_v32, %v766_v26  ;;  %vm6617_vm15 = vcmp.gt.s32.totalorder %v896_v13, %v767_v25  ;;  %vm6619_vm10 = vcmp.ne.s32.totalorder %v2407_v60, 95 }
  0xa3   : > { %v771_v20 = vsel %vm6615_vm13, %v2128_v7, 4294967295  ;;  %v859_v33 = vsel %vm6616_vm11, %v857_v32, %v766_v26  ;;  %v898_v36 = vsel %vm6617_vm15, %v896_v13, %v767_v25  ;;  %vm6620_vm12 = vcmp.gt.s32.totalorder %v2407_v60, 32 }
  0xa4   : > { %vm3053_vm2 = vmand %vm6620_vm12, %vm6619_vm10  ;;  %v561_v63 = vsel %vm3011_vm3, %v6623_v8, 128  ;;  %vm683_vm14 = vcmp.lt.s32.totalorder %v682_v58, %v559_v2  ;;  %vm6624_vm13 = vnez %v6560_v24  ;;  %vm6625_vm11 = vcmp.gt.s32.totalorder %v935_v30, %v768_v35  ;;  %v6701_v24 = vld [vmem:[#allocation75_spill] sm:$0xff] }
  0xa5   : > { %v772_v57 = vsel %vm6624_vm13, %v2128_v7, 4294967295  ;;  %v937_v47 = vsel %vm6625_vm11, %v935_v30, %v768_v35  ;;  %v562_v26 = vsel %vm3022_vm7, %v6623_v8, 128  ;;  %v645_v25 = vsel %vm644_vm1, %v643_v10, %v558_v55 }
  0xa6   : > { %vm720_vm10 = vcmp.lt.s32.totalorder %v719_v23, %v556_v9  ;;  %v560_v32 = vsel %vm3035_vm4, %v2143_v12, 128  ;;  %vm6626_vm11 = vcmp.ne.s32.totalorder %v2411_v52, 95  ;;  %vm6627_vm15 = vcmp.gt.s32.totalorder %v2411_v52, 32  ;;  %v6686_v52 = vld [vmem:[#allocation73_spill] sm:$0xff] }
  0xa7   : > { %vm3077_vm0 = vmand %vm6627_vm15, %vm6626_vm11  ;;  %v563_v13 = vsel %vm3053_vm2, %v6623_v8, 128  ;;  %v684_v35 = vsel %vm683_vm14, %v682_v58, %v559_v2  ;;  %vm6630_vm13 = vcmp.ne.s32.totalorder %v2415_v21, 95  ;;  %vm6631_vm7 = vcmp.gt.s32.totalorder %v2415_v21, 32 }
  0xa8   : > { %vm3090_vm3 = vmand %vm6631_vm7, %vm6630_vm13  ;;  %v6632_v30 = vmov 0  ;;  %v721_v55 = vsel %vm720_vm10, %v719_v23, %v556_v9  ;;  %vm6634_vm11 = vnez %v6554_v62  ;;  %vm6635_vm14 = vcmp.gt.s32.totalorder %v820_v15, %v769_v28 }
  0xa9   : > { %v6633_v30 = vsel %vm3090_vm3, 4294967295, %v6632_v30  ;;  %v773_v10 = vsel %vm6634_vm11, %v2140_v11, 4294967295  ;;  %v822_v2 = vsel %vm6635_vm14, %v820_v15, %v769_v28  ;;  %vm6636_vm5 = vcmp.ne.s32.totalorder %v6593_v48, 95  ;;  %v6643_v15 = vld [vmem:[#allocation66_spill] sm:$0xff] }
  0xaa   : > { %vm6637_vm1 = vcmp.gt.s32.totalorder %v6593_v48, 32  ;;  %v6638_v58 = vmov 0  ;;  %vm6640_vm7 = vnez %v6564_v22  ;;  %v775_v62 = vsel %vm2912_vm8, %v2140_v11, 4294967295 }
  0xab   : > { %vm3103_vm9 = vmand %vm6637_vm1, %vm6636_vm5  ;;  %v774_v9 = vsel %vm6640_vm7, %v2140_v11, 4294967295  ;;  %vm6641_vm10 = vcmp.gt.s32.totalorder %v859_v33, %v770_v51  ;;  %vm6642_vm13 = vcmp.gt.s32.totalorder %v898_v36, %v771_v20  ;;  %vm6644_vm1 = vcmp.ne.s32.totalorder %v6599_v18, 95 }
  0xac   : > { %v6639_v58 = vsel %vm3103_vm9, 4294967295, %v6638_v58  ;;  %v861_v23 = vsel %vm6641_vm10, %v859_v33, %v770_v51  ;;  %v900_v28 = vsel %vm6642_vm13, %v898_v36, %v771_v20  ;;  %vm6645_vm12 = vcmp.gt.s32.totalorder %v6599_v18, 32  ;;  %v6649_v20 = vld [vmem:[#allocation68_spill] sm:$0xff] }
  0xad   : > { %vm3122_vm15 = vmand %vm6645_vm12, %vm6644_vm1  ;;  %v6646_v22 = vmov 0  ;;  %vm685_vm7 = vcmp.lt.s32.totalorder %v684_v35, %v563_v13  ;;  %v776_v54 = vsel %vm2972_vm6, %v2140_v11, 4294967295  ;;  %vm6648_vm8 = vcmp.gt.s32.totalorder %v937_v47, %v772_v57  ;;  %v6650_v33 = vld [vmem:[#allocation16_spill] sm:$0xff] }
  0xae   : > { %v6647_v22 = vsel %vm3122_vm15, 4294967295, %v6646_v22  ;;  %v939_v51 = vsel %vm6648_vm8, %v937_v47, %v772_v57  ;;  %v565_v36 = vsel %vm3090_vm3, %v6650_v33, 128  ;;  %vm6651_vm14 = vcmp.lt.s32.totalorder %v606_v3, %v561_v63 }
  0xaf   : > { %v608_v18 = vsel %vm6651_vm14, %v606_v3, %v561_v63  ;;  %vm722_vm12 = vcmp.lt.s32.totalorder %v721_v55, %v560_v32  ;;  %vm823_vm1 = vcmp.gt.s32.totalorder %v822_v2, %v773_v10  ;;  %v564_v48 = vsel %vm3077_vm0, %v6623_v8, 128  ;;  %v6653_v3 = vld [vmem:[#allocation69_spill] sm:$0xff] }
  0xb0   : > { %vm6652_vm11 = vcmp.lt.s32.totalorder %v645_v25, %v562_v26  ;;  %v566_v57 = vsel %vm3103_vm9, %v6650_v33, 128  ;;  %v567_v47 = vsel %vm3122_vm15, %v6650_v33, 128  ;;  %v686_v21 = vsel %vm685_vm7, %v684_v35, %v563_v13  ;;  %v6659_v35 = vld [vmem:[#allocation70_spill] sm:$0xff] }
  0xb1   : > { %v647_v61 = vsel %vm6652_vm11, %v645_v25, %v562_v26  ;;  %vm6654_vm5 = vcmp.ne.s32.totalorder %v6610_v6, 95  ;;  %vm6655_vm11 = vcmp.gt.s32.totalorder %v6610_v6, 32  ;;  %v6656_v63 = vmov 0 }
  0xb2   : > { %vm3152_vm6 = vmand %vm6655_vm11, %vm6654_vm5  ;;  %v723_v26 = vsel %vm722_vm12, %v721_v55, %v560_v32  ;;  %vm6658_vm9 = vnez %v6577_v29  ;;  %v824_v13 = vsel %vm823_vm1, %v822_v2, %v773_v10  ;;  %vm6660_vm10 = vcmp.ne.s32.totalorder %v6618_v27, 95  ;;  %v6668_v2 = vld [vmem:[#allocation71_spill] sm:$0xff] }
  0xb3   : > { %v6657_v63 = vsel %vm3152_vm6, 4294967295, %v6656_v63  ;;  %v777_v25 = vsel %vm6658_vm9, %v2143_v12, 4294967295  ;;  %vm6661_vm14 = vcmp.gt.s32.totalorder %v6618_v27, 32  ;;  %vm6664_vm5 = vnez %v6583_v53 }
  0xb4   : > { %vm3165_vm15 = vmand %vm6661_vm14, %vm6660_vm10  ;;  %v778_v32 = vsel %vm6664_vm5, %v2143_v12, 4294967295  ;;  %vm6665_vm9 = vnez %v6597_v49  ;;  %vm6666_vm12 = vcmp.gt.s32.totalorder %v861_v23, %v774_v9  ;;  %vm6667_vm1 = vcmp.gt.s32.totalorder %v900_v28, %v775_v62 }
  0xb5   : > { %v779_v29 = vsel %vm6665_vm9, %v2143_v12, 4294967295  ;;  %v863_v55 = vsel %vm6666_vm12, %v861_v23, %v774_v9  ;;  %v902_v10 = vsel %vm6667_vm1, %v900_v28, %v775_v62  ;;  %vm6669_vm10 = vcmp.ne.s32.totalorder %v2439_v17, 95  ;;  %v6674_v9 = vld [vmem:[#allocation72_spill] sm:$0xff]  ;;  %v6675_v62 = vld [vmem:[#allocation17_spill] sm:$0xff] }
  0xb6   : > { %vm6670_vm14 = vcmp.gt.s32.totalorder %v2439_v17, 32  ;;  %v6671_v27 = vmov 0  ;;  %vm648_vm5 = vcmp.lt.s32.totalorder %v647_v61, %v566_v57  ;;  %vm687_vm8 = vcmp.lt.s32.totalorder %v686_v21, %v567_v47 }
  0xb7   : > { %vm3183_vm7 = vmand %vm6670_vm14, %vm6669_vm10  ;;  %v780_v53 = vsel %vm3035_vm4, %v2143_v12, 4294967295  ;;  %vm6673_vm9 = vcmp.gt.s32.totalorder %v939_v51, %v776_v54  ;;  %v569_v23 = vsel %vm3152_vm6, %v6675_v62, 128  ;;  %vm6676_vm1 = vcmp.lt.s32.totalorder %v608_v18, %v565_v36 }
  0xb8   : > { %v6672_v27 = vsel %vm3183_vm7, 4294967295, %v6671_v27  ;;  %v941_v49 = vsel %vm6673_vm9, %v939_v51, %v776_v54  ;;  %v610_v28 = vsel %vm6676_vm1, %v608_v18, %v565_v36  ;;  %vm724_vm10 = vcmp.lt.s32.totalorder %v723_v26, %v564_v48  ;;  %v6805_v36 = vld [vmem:[#allocation22_spill] sm:$0xff] }
  0xb9   : > { %vm825_vm14 = vcmp.gt.s32.totalorder %v824_v13, %v777_v25  ;;  %v568_v17 = vsel %vm3165_vm15, %v6650_v33, 128  ;;  %vm6677_vm9 = vcmp.ne.s32.totalorder %v2443_v14, 95  ;;  %vm6678_vm12 = vcmp.gt.s32.totalorder %v2443_v14, 32 }
  0xba   : > { %vm3204_vm3 = vmand %vm6678_vm12, %vm6677_vm9  ;;  %v570_v18 = vsel %vm3183_vm7, %v6675_v62, 128  ;;  %v649_v54 = vsel %vm648_vm5, %v647_v61, %v566_v57  ;;  %v688_v51 = vsel %vm687_vm8, %v686_v21, %v567_v47  ;;  %vm6681_vm13 = vcmp.ne.s32.totalorder %v2451_v16, 95 }
  0xbb   : > { %vm6682_vm11 = vcmp.gt.s32.totalorder %v2451_v16, 32  ;;  %vm611_vm6 = vcmp.lt.s32.totalorder %v610_v28, %v569_v23  ;;  %v725_v14 = vsel %vm724_vm10, %v723_v26, %v564_v48  ;;  %vm6685_vm12 = vnez %v6604_v19 }
  0xbc   : > { %vm3215_vm4 = vmand %vm6682_vm11, %vm6681_vm13  ;;  %v781_v12 = vsel %vm6685_vm12, %v6623_v8, 4294967295  ;;  %v826_v11 = vsel %vm825_vm14, %v824_v13, %v777_v25  ;;  %vm6687_vm5 = vcmp.ne.s32.totalorder %v6643_v15, 95  ;;  %vm6688_vm1 = vcmp.gt.s32.totalorder %v6643_v15, 32  ;;  %v6699_v25 = vld [vmem:[#allocation74_spill] sm:$0xff] }
  0xbd   : > { %vm3228_vm7 = vmand %vm6688_vm1, %vm6687_vm5  ;;  %vm6691_vm13 = vnez %v6608_v31  ;;  %v783_v19 = vsel %vm3053_vm2, %v6623_v8, 4294967295  ;;  %vm6692_vm11 = vcmp.gt.s32.totalorder %v863_v55, %v778_v32  ;;  %vm6693_vm10 = vcmp.gt.s32.totalorder %v902_v10, %v779_v29  ;;  %v6700_v13 = vld [vmem:[#allocation18_spill] sm:$0xff] }
  0xbe   : > { %v782_v48 = vsel %vm6691_vm13, %v6623_v8, 4294967295  ;;  %v865_v61 = vsel %vm6692_vm11, %v863_v55, %v778_v32  ;;  %v904_v57 = vsel %vm6693_vm10, %v902_v10, %v779_v29  ;;  %vm6694_vm14 = vcmp.ne.s32.totalorder %v6649_v20, 95  ;;  %v6766_v10 = vld [vmem:[#allocation84_spill] sm:$0xff] }
  0xbf   : > { %vm6695_vm12 = vcmp.gt.s32.totalorder %v6649_v20, 32  ;;  %v6696_v47 = vmov 0  ;;  %v571_v31 = vsel %vm3204_vm3, %v6675_v62, 128  ;;  %v784_v42 = vsel %vm3077_vm0, %v6623_v8, 4294967295 }
  0xc0   : > { %vm3244_vm1 = vmand %vm6695_vm12, %vm6694_vm14  ;;  %vm6698_vm2 = vcmp.gt.s32.totalorder %v941_v49, %v780_v53  ;;  %v573_v32 = vsel %vm3215_vm4, %v6700_v13, 128  ;;  %v612_v29 = vsel %vm611_vm6, %v610_v28, %v569_v23  ;;  %vm726_vm11 = vcmp.lt.s32.totalorder %v725_v14, %v568_v17  ;;  %v6707_v23 = vld [vmem:[#allocation76_spill] sm:$0xff] }
  0xc1   : > { %v6697_v47 = vsel %vm3244_vm1, 4294967295, %v6696_v47  ;;  %v943_v26 = vsel %vm6698_vm2, %v941_v49, %v780_v53  ;;  %v572_v55 = vsel %vm3228_vm7, %v6675_v62, 128  ;;  %vm6702_vm8 = vcmp.ne.s32.totalorder %v6653_v3, 95 }
  0xc2   : > { %vm6703_vm9 = vcmp.gt.s32.totalorder %v6653_v3, 32  ;;  %v574_v53 = vsel %vm3244_vm1, %v6700_v13, 128  ;;  %vm6706_vm6 = vcmp.lt.s32.totalorder %v649_v54, %v570_v18  ;;  %vm6708_vm13 = vcmp.ne.s32.totalorder %v6659_v35, 95 }
  0xc3   : > { %vm3270_vm5 = vmand %vm6703_vm9, %vm6702_vm8  ;;  %v651_v49 = vsel %vm6706_vm6, %v649_v54, %v570_v18  ;;  %vm6709_vm12 = vcmp.gt.s32.totalorder %v6659_v35, 32  ;;  %v6710_v28 = vmov 0  ;;  %v727_v3 = vsel %vm726_vm11, %v725_v14, %v568_v17 }
  0xc4   : > { %vm3283_vm10 = vmand %vm6709_vm12, %vm6708_vm13  ;;  %vm6712_vm8 = vnez %v6633_v30  ;;  %vm6713_vm6 = vcmp.gt.s32.totalorder %v826_v11, %v781_v12  ;;  %vm6714_vm14 = vcmp.ne.s32.totalorder %v6668_v2, 95  ;;  %vm6715_vm2 = vcmp.gt.s32.totalorder %v6668_v2, 32 }
  0xc5   : > { %v6711_v28 = vsel %vm3283_vm10, 4294967295, %v6710_v28  ;;  %v785_v20 = vsel %vm6712_vm8, %v6650_v33, 4294967295  ;;  %v828_v18 = vsel %vm6713_vm6, %v826_v11, %v781_v12  ;;  %vm3296_vm0 = vmand %vm6715_vm2, %vm6714_vm14  ;;  %v6716_v54 = vmov 0 }
  0xc6   : > { %v6717_v54 = vsel %vm3296_vm0, 4294967295, %v6716_v54  ;;  %vm6718_vm13 = vnez %v6639_v58  ;;  %vm6719_vm11 = vnez %v6647_v22  ;;  %vm6720_vm12 = vcmp.gt.s32.totalorder %v865_v61, %v782_v48  ;;  %v6727_v22 = vld [vmem:[#allocation77_spill] sm:$0xff] }
  0xc7   : > { %v786_v35 = vsel %vm6718_vm13, %v6650_v33, 4294967295  ;;  %v787_v14 = vsel %vm6719_vm11, %v6650_v33, 4294967295  ;;  %v867_v17 = vsel %vm6720_vm12, %v865_v61, %v782_v48  ;;  %vm6721_vm8 = vcmp.gt.s32.totalorder %v904_v57, %v783_v19  ;;  %v6729_v61 = vld [vmem:[#allocation78_spill] sm:$0xff] }
  0xc8   : > { %v906_v11 = vsel %vm6721_vm8, %v904_v57, %v783_v19  ;;  %vm6722_vm9 = vcmp.ne.s32.totalorder %v6674_v9, 95  ;;  %vm6723_vm14 = vcmp.gt.s32.totalorder %v6674_v9, 32  ;;  %v6724_v12 = vmov 0 }
  0xc9   : > { %vm3313_vm2 = vmand %vm6723_vm14, %vm6722_vm9  ;;  %v788_v30 = vsel %vm3165_vm15, %v6650_v33, 4294967295  ;;  %vm6726_vm13 = vcmp.gt.s32.totalorder %v943_v26, %v784_v42  ;;  %v575_v48 = vsel %vm3270_vm5, %v6700_v13, 128  ;;  %vm6728_vm8 = vcmp.lt.s32.totalorder %v688_v51, %v571_v31  ;;  %v6738_v33 = vld [vmem:[#allocation79_spill] sm:$0xff] }
  0xca   : > { %v6725_v12 = vsel %vm3313_vm2, 4294967295, %v6724_v12  ;;  %v945_v58 = vsel %vm6726_vm13, %v943_v26, %v784_v42  ;;  %v690_v19 = vsel %vm6728_vm8, %v688_v51, %v571_v31  ;;  %vm728_vm9 = vcmp.lt.s32.totalorder %v727_v3, %v572_v55  ;;  %v6731_v42 = vld [vmem:[#allocation19_spill] sm:$0xff] }
  0xcb   : > { %vm829_vm14 = vcmp.gt.s32.totalorder %v828_v18, %v785_v20  ;;  %v576_v6 = vsel %vm3283_vm10, %v6700_v13, 128  ;;  %vm6730_vm15 = vcmp.lt.s32.totalorder %v612_v29, %v573_v32  ;;  %vm868_vm13 = vcmp.gt.s32.totalorder %v867_v17, %v786_v35 }
  0xcc   : > { %v614_v57 = vsel %vm6730_vm15, %v612_v29, %v573_v32  ;;  %vm907_vm12 = vcmp.gt.s32.totalorder %v906_v11, %v787_v14  ;;  %v577_v26 = vsel %vm3296_vm0, %v6731_v42, 128  ;;  %v578_v51 = vsel %vm3313_vm2, %v6731_v42, 128 }
  0xcd   : > { %vm6732_vm8 = vcmp.lt.s32.totalorder %v651_v49, %v574_v53  ;;  %vm6733_vm1 = vcmp.ne.s32.totalorder %v6686_v52, 95  ;;  %vm6734_vm11 = vcmp.gt.s32.totalorder %v6686_v52, 32  ;;  %v6735_v9 = vmov 0 }
  0xce   : > { %v653_v31 = vsel %vm6732_vm8, %v651_v49, %v574_v53  ;;  %vm3344_vm10 = vmand %vm6734_vm11, %vm6733_vm1  ;;  %vm691_vm15 = vcmp.lt.s32.totalorder %v690_v19, %v575_v48  ;;  %v729_v32 = vsel %vm728_vm9, %v727_v3, %v572_v55  ;;  %vm6737_vm0 = vnez %v6657_v63  ;;  %v6740_v3 = vld [vmem:[#allocation80_spill] sm:$0xff] }
  0xcf   : > { %v6736_v9 = vsel %vm3344_vm10, 4294967295, %v6735_v9  ;;  %v789_v29 = vsel %vm6737_vm0, %v6675_v62, 4294967295  ;;  %v830_v2 = vsel %vm829_vm14, %v828_v18, %v785_v20  ;;  %vm6739_vm6 = vnez %v6672_v27 }
  0xd0   : > { %v790_v53 = vsel %vm6739_vm6, %v6675_v62, 4294967295  ;;  %v791_v49 = vsel %vm3204_vm3, %v6675_v62, 4294967295  ;;  %v869_v52 = vsel %vm868_vm13, %v867_v17, %v786_v35  ;;  %v908_v16 = vsel %vm907_vm12, %v906_v11, %v787_v14  ;;  %v6746_v35 = vld [vmem:[#allocation81_spill] sm:$0xff] }
  0xd1   : > { %vm6741_vm11 = vcmp.ne.s32.totalorder %v6699_v25, 95  ;;  %vm6742_vm0 = vcmp.gt.s32.totalorder %v6699_v25, 32  ;;  %v792_v27 = vsel %vm3228_vm7, %v6675_v62, 4294967295  ;;  %vm6745_vm6 = vcmp.gt.s32.totalorder %v945_v58, %v788_v30 }
  0xd2   : > { %vm3364_vm9 = vmand %vm6742_vm0, %vm6741_vm11  ;;  %v947_v63 = vsel %vm6745_vm6, %v945_v58, %v788_v30  ;;  %v579_v34 = vsel %vm3344_vm10, %v6731_v42, 128  ;;  %v692_v55 = vsel %vm691_vm15, %v690_v19, %v575_v48  ;;  %vm730_vm12 = vcmp.lt.s32.totalorder %v729_v32, %v576_v6  ;;  %v6757_v30 = vld [vmem:[#allocation82_spill] sm:$0xff] }
  0xd3   : > { %vm831_vm13 = vcmp.gt.s32.totalorder %v830_v2, %v789_v29  ;;  %vm6747_vm1 = vcmp.ne.s32.totalorder %v6701_v24, 95  ;;  %vm6748_vm7 = vcmp.gt.s32.totalorder %v6701_v24, 32  ;;  %v6749_v21 = vmov 0 }
  0xd4   : > { %vm3383_vm2 = vmand %vm6748_vm7, %vm6747_vm1  ;;  %vm870_vm6 = vcmp.gt.s32.totalorder %v869_v52, %v790_v53  ;;  %vm909_vm3 = vcmp.gt.s32.totalorder %v908_v16, %v791_v49  ;;  %vm6751_vm8 = vcmp.ne.s32.totalorder %v6707_v23, 95  ;;  %vm6752_vm15 = vcmp.gt.s32.totalorder %v6707_v23, 32  ;;  %v6758_v23 = vld [vmem:[#allocation83_spill] sm:$0xff] }
  0xd5   : > { %v6750_v21 = vsel %vm3383_vm2, 4294967295, %v6749_v21  ;;  %vm3391_vm14 = vmand %vm6752_vm15, %vm6751_vm8  ;;  %v6753_v18 = vmov 0  ;;  %v580_v14 = vsel %vm3364_vm9, %v6731_v42, 128  ;;  %vm6755_vm0 = vcmp.lt.s32.totalorder %v614_v57, %v577_v26 }
  0xd6   : > { %v6754_v18 = vsel %vm3391_vm14, 4294967295, %v6753_v18  ;;  %v616_v17 = vsel %vm6755_vm0, %v614_v57, %v577_v26  ;;  %vm6756_vm1 = vcmp.lt.s32.totalorder %v653_v31, %v578_v51  ;;  %vm948_vm7 = vcmp.gt.s32.totalorder %v947_v63, %v792_v27 }
  0xd7   : > { %v655_v11 = vsel %vm6756_vm1, %v653_v31, %v578_v51  ;;  %vm693_vm10 = vcmp.lt.s32.totalorder %v692_v55, %v579_v34  ;;  %v731_v58 = vsel %vm730_vm12, %v729_v32, %v576_v6  ;;  %v793_v48 = vsel %vm3215_vm4, %v6700_v13, 4294967295 }
  0xd8   : > { %v832_v19 = vsel %vm831_vm13, %v830_v2, %v789_v29  ;;  %vm6759_vm15 = vnez %v6697_v47  ;;  %v795_v57 = vsel %vm3270_vm5, %v6700_v13, 4294967295  ;;  %v871_v26 = vsel %vm870_vm6, %v869_v52, %v790_v53  ;;  %v6764_v2 = vld [vmem:[#allocation20_spill] sm:$0xff]  ;;  %v6771_v29 = vld [vmem:[#allocation85_spill] sm:$0xff] }
  0xd9   : > { %v794_v24 = vsel %vm6759_vm15, %v6700_v13, 4294967295  ;;  %v910_v51 = vsel %vm909_vm3, %v908_v16, %v791_v49  ;;  %vm6760_vm0 = vcmp.ne.s32.totalorder %v6727_v22, 95  ;;  %vm6761_vm12 = vcmp.gt.s32.totalorder %v6727_v22, 32 }
  0xda   : > { %vm3415_vm1 = vmand %vm6761_vm12, %vm6760_vm0  ;;  %v581_v6 = vsel %vm3383_vm2, %v6764_v2, 128  ;;  %v582_v47 = vsel %vm3391_vm14, %v6764_v2, 128  ;;  %vm6765_vm4 = vnez %v6711_v28  ;;  %v949_v16 = vsel %vm948_vm7, %v947_v63, %v792_v27 }
  0xdb   : > { %v796_v52 = vsel %vm6765_vm4, %v6700_v13, 4294967295  ;;  %vm6767_vm6 = vcmp.ne.s32.totalorder %v6729_v61, 95  ;;  %vm6768_vm15 = vcmp.gt.s32.totalorder %v6729_v61, 32  ;;  %v6769_v31 = vmov 0  ;;  %v6863_v61 = vld [vmem:[#allocation36_spill] sm:$0xff] }
  0xdc   : > { %vm3435_vm0 = vmand %vm6768_vm15, %vm6767_vm6  ;;  %vm732_vm12 = vcmp.lt.s32.totalorder %v731_v58, %v580_v14  ;;  %vm833_vm8 = vcmp.gt.s32.totalorder %v832_v19, %v793_v48  ;;  %v694_v28 = vsel %vm693_vm10, %v692_v55, %v579_v34  ;;  %vm872_vm7 = vcmp.gt.s32.totalorder %v871_v26, %v794_v24  ;;  %v6777_v55 = vld [vmem:[#allocation86_spill] sm:$0xff] }
  0xdd   : > { %v6770_v31 = vsel %vm3435_vm0, 4294967295, %v6769_v31  ;;  %vm911_vm4 = vcmp.gt.s32.totalorder %v910_v51, %v795_v57  ;;  %v583_v32 = vsel %vm3415_vm1, %v6764_v2, 128  ;;  %vm617_vm5 = vcmp.lt.s32.totalorder %v616_v17, %v581_v6 }
  0xde   : > { %vm950_vm3 = vcmp.gt.s32.totalorder %v949_v16, %v796_v52  ;;  %vm6772_vm15 = vcmp.ne.s32.totalorder %v6738_v33, 95  ;;  %vm6773_vm14 = vcmp.gt.s32.totalorder %v6738_v33, 32  ;;  %v584_v49 = vsel %vm3435_vm0, %v6764_v2, 128 }
  0xdf   : > { %vm3449_vm2 = vmand %vm6773_vm14, %vm6772_vm15  ;;  %v733_v27 = vsel %vm732_vm12, %v731_v58, %v580_v14  ;;  %vm6776_vm10 = vnez %v6717_v54  ;;  %v834_v34 = vsel %vm833_vm8, %v832_v19, %v793_v48  ;;  %vm6778_vm11 = vcmp.ne.s32.totalorder %v6740_v3, 95 }
  0xe0   : > { %v797_v63 = vsel %vm6776_vm10, %v6731_v42, 4294967295  ;;  %vm6779_vm13 = vcmp.gt.s32.totalorder %v6740_v3, 32  ;;  %vm6782_vm15 = vnez %v6725_v12  ;;  %vm6783_vm12 = vnez %v6736_v9 }
  0xe1   : > { %vm3464_vm14 = vmand %vm6779_vm13, %vm6778_vm11  ;;  %v798_v13 = vsel %vm6782_vm15, %v6731_v42, 4294967295  ;;  %v799_v54 = vsel %vm6783_vm12, %v6731_v42, 4294967295  ;;  %v873_v14 = vsel %vm872_vm7, %v871_v26, %v794_v24  ;;  %v912_v58 = vsel %vm911_vm4, %v910_v51, %v795_v57  ;;  %v6788_v24 = vld [vmem:[#allocation21_spill] sm:$0xff] }
  0xe2   : > { %vm6784_vm10 = vcmp.ne.s32.totalorder %v6746_v35, 95  ;;  %vm6785_vm11 = vcmp.gt.s32.totalorder %v6746_v35, 32  ;;  %v6786_v48 = vmov 0  ;;  %vm695_vm6 = vcmp.lt.s32.totalorder %v694_v28, %v583_v32 }
  0xe3   : > { %vm3481_vm13 = vmand %vm6785_vm11, %vm6784_vm10  ;;  %v800_v9 = vsel %vm3364_vm9, %v6731_v42, 4294967295  ;;  %v951_v12 = vsel %vm950_vm3, %v949_v16, %v796_v52  ;;  %v585_v19 = vsel %vm3449_vm2, %v6788_v24, 128  ;;  %v618_v57 = vsel %vm617_vm5, %v616_v17, %v581_v6 }
  0xe4   : > { %v6787_v48 = vsel %vm3481_vm13, 4294967295, %v6786_v48  ;;  %vm734_vm7 = vcmp.lt.s32.totalorder %v733_v27, %v584_v49  ;;  %vm835_vm4 = vcmp.gt.s32.totalorder %v834_v34, %v797_v63  ;;  %vm6789_vm12 = vcmp.lt.s32.totalorder %v655_v11, %v582_v47 }
  0xe5   : > { %v657_v26 = vsel %vm6789_vm12, %v655_v11, %v582_v47  ;;  %vm874_vm10 = vcmp.gt.s32.totalorder %v873_v14, %v798_v13  ;;  %vm913_vm11 = vcmp.gt.s32.totalorder %v912_v58, %v799_v54  ;;  %vm6790_vm8 = vcmp.ne.s32.totalorder %v6757_v30, 95 }
  0xe6   : > { %vm6791_vm9 = vcmp.gt.s32.totalorder %v6757_v30, 32  ;;  %v6792_v20 = vmov 0  ;;  %v586_v17 = vsel %vm3464_vm14, %v6788_v24, 128  ;;  %v587_v51 = vsel %vm3481_vm13, %v6788_v24, 128 }
  0xe7   : > { %vm3499_vm0 = vmand %vm6791_vm9, %vm6790_vm8  ;;  %v696_v6 = vsel %vm695_vm6, %v694_v28, %v583_v32  ;;  %vm952_vm5 = vcmp.gt.s32.totalorder %v951_v12, %v800_v9  ;;  %vm6794_vm3 = vcmp.ne.s32.totalorder %v6758_v23, 95  ;;  %vm6795_vm12 = vcmp.gt.s32.totalorder %v6758_v23, 32 }
  0xe8   : > { %v6793_v20 = vsel %vm3499_vm0, 4294967295, %v6792_v20  ;;  %vm3513_vm15 = vmand %vm6795_vm12, %vm6794_vm3  ;;  %v6796_v11 = vmov 0  ;;  %vm619_vm8 = vcmp.lt.s32.totalorder %v618_v57, %v585_v19  ;;  %v735_v47 = vsel %vm734_vm7, %v733_v27, %v584_v49 }
  0xe9   : > { %v6797_v11 = vsel %vm3513_vm15, 4294967295, %v6796_v11  ;;  %vm6798_vm9 = vnez %v6750_v21  ;;  %v836_v16 = vsel %vm835_vm4, %v834_v34, %v797_v63  ;;  %vm6799_vm13 = vnez %v6754_v18 }
  0xea   : > { %v801_v52 = vsel %vm6798_vm9, %v6764_v2, 4294967295  ;;  %v802_v28 = vsel %vm6799_vm13, %v6764_v2, 4294967295  ;;  %v803_v32 = vsel %vm3415_vm1, %v6764_v2, 4294967295  ;;  %v875_v23 = vsel %vm874_vm10, %v873_v14, %v798_v13 }
  0xeb   : > { %v914_v42 = vsel %vm913_vm11, %v912_v58, %v799_v54  ;;  %vm6800_vm6 = vcmp.ne.s32.totalorder %v6766_v10, 95  ;;  %vm6801_vm3 = vcmp.gt.s32.totalorder %v6766_v10, 32  ;;  %vm658_vm12 = vcmp.lt.s32.totalorder %v657_v26, %v586_v17  ;;  %v6857_v10 = vld [vmem:[#allocation35_spill] sm:$0xff] }
  0xec   : > { %vm3530_vm7 = vmand %vm6801_vm3, %vm6800_vm6  ;;  %vm697_vm4 = vcmp.lt.s32.totalorder %v696_v6, %v587_v51  ;;  %vm6804_vm9 = vnez %v6770_v31  ;;  %v953_v18 = vsel %vm952_vm5, %v951_v12, %v800_v9  ;;  %v588_v13 = vsel %vm3499_vm0, %v6788_v24, 128 }
  0xed   : > { %v804_v21 = vsel %vm6804_vm9, %v6764_v2, 4294967295  ;;  %v589_v27 = vsel %vm3513_vm15, %v6805_v36, 128  ;;  %v620_v63 = vsel %vm619_vm8, %v618_v57, %v585_v19  ;;  %vm837_vm1 = vcmp.gt.s32.totalorder %v836_v16, %v801_v52  ;;  %v6853_v2 = vld [vmem:[#allocation34_spill] sm:$0xff] }
  0xee   : > { %vm876_vm13 = vcmp.gt.s32.totalorder %v875_v23, %v802_v28  ;;  %vm915_vm10 = vcmp.gt.s32.totalorder %v914_v42, %v803_v32  ;;  %vm6806_vm11 = vcmp.ne.s32.totalorder %v6771_v29, 95  ;;  %vm6807_vm6 = vcmp.gt.s32.totalorder %v6771_v29, 32 }
  0xef   : > { %vm3547_vm3 = vmand %vm6807_vm6, %vm6806_vm11  ;;  %v590_v34 = vsel %vm3530_vm7, %v6805_v36, 128  ;;  %v659_v54 = vsel %vm658_vm12, %v657_v26, %v586_v17  ;;  %v698_v14 = vsel %vm697_vm4, %v696_v6, %v587_v51  ;;  %vm954_vm5 = vcmp.gt.s32.totalorder %v953_v18, %v804_v21 }
  0xf0   : > { %vm6810_vm8 = vcmp.ne.s32.totalorder %v6777_v55, 95  ;;  %vm6811_vm9 = vcmp.gt.s32.totalorder %v6777_v55, 32  ;;  %vm621_vm0 = vcmp.lt.s32.totalorder %v620_v63, %v589_v27  ;;  %vm736_vm11 = vcmp.lt.s32.totalorder %v735_v47, %v588_v13 }
  0xf1   : > { %vm3558_vm15 = vmand %vm6811_vm9, %vm6810_vm8  ;;  %v805_v9 = vsel %vm3449_vm2, %v6788_v24, 4294967295  ;;  %v838_v12 = vsel %vm837_vm1, %v836_v16, %v801_v52  ;;  %v806_v19 = vsel %vm3464_vm14, %v6788_v24, 4294967295  ;;  %vm6814_vm12 = vnez %v6787_v48 }
  0xf2   : > { %v807_v57 = vsel %vm6814_vm12, %v6788_v24, 4294967295  ;;  %v877_v26 = vsel %vm876_vm13, %v875_v23, %v802_v28  ;;  %v916_v17 = vsel %vm915_vm10, %v914_v42, %v803_v32  ;;  %v591_v51 = vsel %vm3547_vm3, %v6805_v36, 128 }
  0xf3   : > { %vm660_vm4 = vcmp.lt.s32.totalorder %v659_v54, %v590_v34  ;;  %vm6815_vm6 = vnez %v6793_v20  ;;  %v955_v6 = vsel %vm954_vm5, %v953_v18, %v804_v21  ;;  %v592_v33 = vsel %vm3558_vm15, %v6805_v36, 128 }
  0xf4   : > { %v808_v53 = vsel %vm6815_vm6, %v6788_v24, 4294967295  ;;  %v622_v52 = vsel %vm621_vm0, %v620_v63, %v589_v27  ;;  %v737_v16 = vsel %vm736_vm11, %v735_v47, %v588_v13  ;;  %vm839_vm2 = vcmp.gt.s32.totalorder %v838_v12, %v805_v9  ;;  %v6841_v24 = vld [vmem:[#allocation31_spill] sm:$0xff] }
  0xf5   : > { %vm878_vm14 = vcmp.gt.s32.totalorder %v877_v26, %v806_v19  ;;  %vm917_vm1 = vcmp.gt.s32.totalorder %v916_v17, %v807_v57  ;;  %v661_v23 = vsel %vm660_vm4, %v659_v54, %v590_v34  ;;  %vm699_vm13 = vcmp.lt.s32.totalorder %v698_v14, %v591_v51 }
  0xf6   : > { %vm956_vm10 = vcmp.gt.s32.totalorder %v955_v6, %v808_v53  ;;  %v623_v42 = vrot.slane %v622_v52, 4  ;;  %vm738_vm8 = vcmp.lt.s32.totalorder %v737_v16, %v592_v33  ;;  %vm6816_vm9 = vnez %v6797_v11 }
  0xf7   : > { %v809_v48 = vsel %vm6816_vm9, %v6805_v36, 4294967295  ;;  %v840_v20 = vsel %vm839_vm2, %v838_v12, %v805_v9  ;;  %v810_v28 = vsel %vm3530_vm7, %v6805_v36, 4294967295  ;;  %v811_v47 = vsel %vm3547_vm3, %v6805_v36, 4294967295 }
  0xf8   : > { %v879_v32 = vsel %vm878_vm14, %v877_v26, %v806_v19  ;;  %v918_v21 = vsel %vm917_vm1, %v916_v17, %v807_v57  ;;  %v662_v18 = vrot.slane %v661_v23, 4  ;;  %v700_v13 = vsel %vm699_vm13, %v698_v14, %v591_v51 }
  0xf9   : > { %v812_v27 = vsel %vm3558_vm15, %v6805_v36, 4294967295  ;;  %v957_v63 = vsel %vm956_vm10, %v955_v6, %v808_v53  ;;  %v739_v11 = vsel %vm738_vm8, %v737_v16, %v592_v33  ;;  %vm841_vm0 = vcmp.gt.s32.totalorder %v840_v20, %v809_v48  ;;  %v6819_v36 = vld [vmem:[#allocation25_spill] sm:$0xff] }
  0xfa   : > { %vm880_vm5 = vcmp.gt.s32.totalorder %v879_v32, %v810_v28  ;;  %vm919_vm11 = vcmp.gt.s32.totalorder %v918_v21, %v811_v47  ;;  %vm624_vm12 = vcmp.lt.s32.totalorder %v622_v52, %v623_v42  ;;  %v701_v49 = vrot.slane %v700_v13, 4 }
  0xfb   : > { %vm958_vm7 = vcmp.gt.s32.totalorder %v957_v63, %v812_v27  ;;  %vm663_vm4 = vcmp.lt.s32.totalorder %v661_v23, %v662_v18  ;;  %v740_v34 = vrot.slane %v739_v11, 4  ;;  %v842_v31 = vsel %vm841_vm0, %v840_v20, %v809_v48 }
  0xfc   : > { %v881_v54 = vsel %vm880_vm5, %v879_v32, %v810_v28  ;;  %v920_v9 = vsel %vm919_vm11, %v918_v21, %v811_v47  ;;  %v625_v12 = vsel %vm624_vm12, %v622_v52, %v623_v42  ;;  %v959_v19 = vsel %vm958_vm7, %v957_v63, %v812_v27 }
  0xfd   : > { %v664_v14 = vsel %vm663_vm4, %v661_v23, %v662_v18  ;;  %vm702_vm3 = vcmp.lt.s32.totalorder %v700_v13, %v701_v49  ;;  %v843_v57 = vrot.slane %v842_v31, 4  ;;  %vm741_vm6 = vcmp.lt.s32.totalorder %v739_v11, %v740_v34 }
  0xfe   : > { %v882_v58 = vrot.slane %v881_v54, 4  ;;  %v921_v26 = vrot.slane %v920_v9, 4  ;;  %v626_v17 = vrot.slane %v625_v12, 2  ;;  %v960_v51 = vrot.slane %v959_v19, 4 }
  0xff   : > { %v665_v53 = vrot.slane %v664_v14, 2  ;;  %v703_v6 = vsel %vm702_vm3, %v700_v13, %v701_v49  ;;  %v742_v33 = vsel %vm741_vm6, %v739_v11, %v740_v34  ;;  %vm844_vm15 = vcmp.gt.s32.totalorder %v842_v31, %v843_v57  ;;  %v6817_v13 = vld [vmem:[#allocation23_spill] sm:$0xff]  ;;  %v6818_v11 = vld [vmem:[#allocation24_spill] sm:$0xff] }
 0x100   : > { %vm883_vm2 = vcmp.gt.s32.totalorder %v881_v54, %v882_v58  ;;  %vm922_vm14 = vcmp.gt.s32.totalorder %v920_v9, %v921_v26  ;;  %vm627_vm1 = vcmp.lt.s32.totalorder %v625_v12, %v626_v17  ;;  %v704_v16 = vrot.slane %v703_v6, 2 }
 0x101   : > { %vm961_vm13 = vcmp.gt.s32.totalorder %v959_v19, %v960_v51  ;;  %vm666_vm10 = vcmp.lt.s32.totalorder %v664_v14, %v665_v53  ;;  %v743_v52 = vrot.slane %v742_v33, 2  ;;  %v845_v42 = vsel %vm844_vm15, %v842_v31, %v843_v57  ;;  %v6828_v57 = vld [vmem:[#allocation28_spill] sm:$0xff] }
 0x102   : > { %v884_v23 = vsel %vm883_vm2, %v881_v54, %v882_v58  ;;  %v923_v48 = vsel %vm922_vm14, %v920_v9, %v921_v26  ;;  %v628_v20 = vsel %vm627_vm1, %v625_v12, %v626_v17  ;;  %v962_v28 = vsel %vm961_vm13, %v959_v19, %v960_v51  ;;  %v6820_v54 = vld [vmem:[#allocation26_spill] sm:$0xff]  ;;  %v6824_v12 = vld [vmem:[#allocation27_spill] sm:$0xff]  ;;  %v6832_v51 = vld [vmem:[#allocation29_spill] sm:$0xff] }
 0x103   : > { %v667_v47 = vsel %vm666_vm10, %v664_v14, %v665_v53  ;;  %vm705_vm8 = vcmp.lt.s32.totalorder %v703_v6, %v704_v16  ;;  %v846_v32 = vrot.slane %v845_v42, 2  ;;  %vm744_vm9 = vcmp.lt.s32.totalorder %v742_v33, %v743_v52  ;;  %v6885_v9 = vld [vmem:[#allocation11_spill] sm:$0xff] }
 0x104   : > { %v885_v21 = vrot.slane %v884_v23, 2  ;;  %v924_v18 = vrot.slane %v923_v48, 2  ;;  %vm969_vm0 = vcmp.ne.s32.totalorder %v6817_v13, 0  ;;  %v629_v27 = vrot.slane %v628_v20, 1  ;;  %v6916_v53 = vld [vmem:[#allocation43_spill] sm:$0xff] }
 0x105   : > { %v963_v63 = vrot.slane %v962_v28, 2  ;;  %vm970_vm5 = vcmp.ne.s32.totalorder %v6818_v11, 0  ;;  %v668_v49 = vrot.slane %v667_v47, 1  ;;  %v706_v34 = vsel %vm705_vm8, %v703_v6, %v704_v16  ;;  %v6836_v16 = vld [vmem:[#allocation30_spill] sm:$0xff] }
 0x106   : > { %vm971_vm11 = vcmp.ne.s32.totalorder %v6819_v36, 0  ;;  %v745_v31 = vsel %vm744_vm9, %v742_v33, %v743_v52  ;;  %vm847_vm12 = vcmp.gt.s32.totalorder %v845_v42, %v846_v32  ;;  %vm972_vm7 = vcmp.ne.s32.totalorder %v6820_v54, 0 }
 0x107   : > { %vm6821_vm4 = vcmp.ne.s32.totalorder %v6817_v13, 95  ;;  %vm886_vm6 = vcmp.gt.s32.totalorder %v884_v23, %v885_v21  ;;  %vm925_vm15 = vcmp.gt.s32.totalorder %v923_v48, %v924_v18  ;;  %vm6825_vm14 = vcmp.ne.s32.totalorder %v6818_v11, 95 }
 0x108   : > { %vm3598_vm3 = vmand %vm969_vm0, %vm6821_vm4  ;;  %v6826_v19 = vmov 0  ;;  %vm630_vm13 = vcmp.lt.s32.totalorder %v628_v20, %v629_v27  ;;  %v707_v14 = vrot.slane %v706_v34, 1  ;;  %vm964_vm10 = vcmp.gt.s32.totalorder %v962_v28, %v963_v63 }
 0x109   : > { %vm3605_vm1 = vmand %vm970_vm5, %vm6825_vm14  ;;  %vm974_vm8 = vcmp.ne.s32.totalorder %v6828_v57, 0  ;;  %vm6829_vm9 = vcmp.ne.s32.totalorder %v6819_v36, 95  ;;  %v6830_v58 = vmov 0  ;;  %vm669_vm4 = vcmp.lt.s32.totalorder %v667_v47, %v668_v49 }
 0x10a   : > { %v6827_v19 = vsel %vm3605_vm1, 4294967295, %v6826_v19  ;;  %vm3612_vm0 = vmand %vm971_vm11, %vm6829_vm9  ;;  %v746_v26 = vrot.slane %v745_v31, 1  ;;  %v848_v17 = vsel %vm847_vm12, %v845_v42, %v846_v32  ;;  %vm975_vm2 = vcmp.ne.s32.totalorder %v6832_v51, 0 }
 0x10b   : > { %v6831_v58 = vsel %vm3612_vm0, 4294967295, %v6830_v58  ;;  %vm6833_vm5 = vcmp.ne.s32.totalorder %v6820_v54, 95  ;;  %v887_v6 = vsel %vm886_vm6, %v884_v23, %v885_v21  ;;  %v926_v33 = vsel %vm925_vm15, %v923_v48, %v924_v18  ;;  %v6845_v18 = vld [vmem:[#allocation32_spill] sm:$0xff] }
 0x10c   : > { %vm3621_vm14 = vmand %vm972_vm7, %vm6833_vm5  ;;  %vm976_vm11 = vcmp.ne.s32.totalorder %v6836_v16, 0  ;;  %vm6837_vm9 = vcmp.ne.s32.totalorder %v6824_v12, 95  ;;  %vm6838_vm0 = vcmp.ne.s32.totalorder %v6824_v12, 0  ;;  %v3634_v42 = vsel %vm630_vm13, %v628_v20, %v629_v27 }
 0x10d   : > { %vm3630_vm1 = vmand %vm6838_vm0, %vm6837_vm9  ;;  %v965_v32 = vsel %vm964_vm10, %v962_v28, %v963_v63  ;;  %vm977_vm12 = vcmp.ne.s32.totalorder %v6841_v24, 0  ;;  %vm6842_vm7 = vcmp.ne.s32.totalorder %v6828_v57, 95  ;;  %v6843_v23 = vmov 0  ;;  %v6849_v63 = vld [vmem:[#allocation33_spill] sm:$0xff] }
 0x10e   : > { %vm3639_vm5 = vmand %vm974_vm8, %vm6842_vm7  ;;  %v3643_v48 = vsel %vm669_vm4, %v667_v47, %v668_v49  ;;  %vm708_vm6 = vcmp.lt.s32.totalorder %v706_v34, %v707_v14  ;;  %v849_v21 = vrot.slane %v848_v17, 1  ;;  %vm978_vm15 = vcmp.ne.s32.totalorder %v6845_v18, 0 }
 0x10f   : > { %v6844_v23 = vsel %vm3639_vm5, 4294967295, %v6843_v23  ;;  %vm6846_vm0 = vcmp.ne.s32.totalorder %v6832_v51, 95  ;;  %v6847_v20 = vmov 0  ;;  %vm747_vm13 = vcmp.lt.s32.totalorder %v745_v31, %v746_v26 }
 0x110   : > { %vm3648_vm9 = vmand %vm975_vm2, %vm6846_vm0  ;;  %v888_v28 = vrot.slane %v887_v6, 1  ;;  %v927_v27 = vrot.slane %v926_v33, 1  ;;  %vm979_vm10 = vcmp.ne.s32.totalorder %v6849_v63, 0  ;;  %vm6850_vm8 = vcmp.ne.s32.totalorder %v6836_v16, 95 }
 0x111   : > { %v6848_v20 = vsel %vm3648_vm9, 4294967295, %v6847_v20  ;;  %vm3657_vm4 = vmand %vm976_vm11, %vm6850_vm8  ;;  %v966_v49 = vrot.slane %v965_v32, 1  ;;  %vm6854_vm2 = vcmp.ne.s32.totalorder %v6841_v24, 95  ;;  %vm1097_vm9 = vcmp.ge.s32.totalorder %v2110_v1, %v3634_v42 }
 0x112   : > { %vm3664_vm0 = vmand %vm977_vm12, %vm6854_vm2  ;;  %v3670_v29 = vsel %vm708_vm6, %v706_v34, %v707_v14  ;;  %vm6858_vm11 = vcmp.ne.s32.totalorder %v6845_v18, 95  ;;  %v6859_v30 = vmov 0  ;;  %v3681_v35 = vsel %vm747_vm13, %v745_v31, %v746_v26  ;;  %v6871_v26 = vld [vmem:[#allocation37_spill] sm:$0xff] }
 0x113   : > { %vm3675_vm8 = vmand %vm978_vm15, %vm6858_vm11  ;;  %vm3683_vm12 = vcmp.gt.s32.totalorder %v848_v17, %v849_v21  ;;  %vm6864_vm2 = vcmp.ne.s32.totalorder %v6849_v63, 95  ;;  %v6865_v34 = vmov 0  ;;  %vm3696_vm11 = vcmp.gt.s32.totalorder %v887_v6, %v888_v28 }
 0x114   : > { %v6860_v30 = vsel %vm3675_vm8, 4294967295, %v6859_v30  ;;  %vm3690_vm5 = vmand %vm979_vm10, %vm6864_vm2  ;;  %vm3700_vm13 = vcmp.gt.s32.totalorder %v926_v33, %v927_v27  ;;  %vm6872_vm6 = vcmp.ne.s32.totalorder %v6853_v2, 95  ;;  %vm6873_vm10 = vcmp.ne.s32.totalorder %v6853_v2, 0  ;;  %v6880_v2 = vld [vmem:[#allocation38_spill] sm:$0xff] }
 0x115   : > { %v6866_v34 = vsel %vm3690_vm5, 4294967295, %v6865_v34  ;;  %vm3709_vm2 = vmand %vm6873_vm10, %vm6872_vm6  ;;  %v6874_v22 = vmov 0  ;;  %v6876_v62 = vmov 0  ;;  %vm3724_vm7 = vcmp.gt.s32.totalorder %v965_v32, %v966_v49 }
 0x116   : > { %v6875_v22 = vsel %vm3709_vm2, 4294967295, %v6874_v22  ;;  %vm3720_vm5 = vmand %vm3598_vm3, %vm1097_vm9  ;;  %vm6881_vm10 = vcmp.ne.s32.totalorder %v6857_v10, 95  ;;  %vm6882_vm2 = vcmp.ne.s32.totalorder %v6857_v10, 0  ;;  %vm6886_vm9 = vcmp.ge.s32.totalorder %v2110_v1, %v3643_v48  ;;  %v6890_v10 = vld [vmem:[#allocation39_spill] sm:$0xff] }
 0x117   : > { %v6877_v62 = vsel %vm3720_vm5, 4294967295, %v6876_v62  ;;  %vm3733_vm15 = vmand %vm6882_vm2, %vm6881_vm10  ;;  %vm6887_vm5 = vnez %v6827_v19  ;;  %v6888_v18 = vmov 0  ;;  %v3750_v24 = vsel %vm3683_vm12, %v848_v17, %v849_v21  ;;  %v6899_v21 = vld [vmem:[#allocation40_spill] sm:$0xff] }
 0x118   : > { %vm3744_vm8 = vmand %vm6887_vm5, %vm6886_vm9  ;;  %vm6891_vm10 = vcmp.ne.s32.totalorder %v6863_v61, 95  ;;  %vm6892_vm6 = vcmp.ne.s32.totalorder %v6863_v61, 0  ;;  %vm6895_vm9 = vcmp.ge.s32.totalorder %v2110_v1, %v3670_v29  ;;  %v3774_v19 = vsel %vm3696_vm11, %v887_v6, %v888_v28  ;;  %v6907_v28 = vld [vmem:[#allocation41_spill] sm:$0xff] }
 0x119   : > { %v6889_v18 = vsel %vm3744_vm8, 4294967295, %v6888_v18  ;;  %vm3757_vm3 = vmand %vm6892_vm6, %vm6891_vm10  ;;  %vm6896_vm8 = vnez %v6831_v58  ;;  %v3778_v17 = vsel %vm3700_vm13, %v926_v33, %v927_v27  ;;  %vm6900_vm10 = vcmp.ne.s32.totalorder %v6871_v26, 95  ;;  %v6908_v27 = vld [vmem:[#allocation42_spill] sm:$0xff] }
 0x11a   : > { %vm3768_vm12 = vmand %vm6896_vm8, %vm6895_vm9  ;;  %vm6901_vm5 = vcmp.ne.s32.totalorder %v6871_v26, 0  ;;  %vm6904_vm11 = vcmp.ge.s32.totalorder %v2110_v1, %v3681_v35  ;;  %v3802_v33 = vsel %vm3724_vm7, %v965_v32, %v966_v49  ;;  %vm6910_vm8 = vcmp.ne.s32.totalorder %v6880_v2, 0  ;;  %v7000_v26 = vld [vmem:[#allocation59_spill] sm:$0xff] }
 0x11b   : > { %vm3785_vm2 = vmand %vm6901_vm5, %vm6900_vm10  ;;  %vm6909_vm10 = vcmp.ne.s32.totalorder %v6880_v2, 95  ;;  %v6911_v14 = vmov 0  ;;  %v6914_v25 = vmov 0  ;;  %v6919_v32 = vmov 0 }
 0x11c   : > { %vm3796_vm13 = vmand %vm3621_vm14, %vm6904_vm11  ;;  %vm6913_vm11 = vcmp.ge.s32.totalorder %v6885_v9, %v3634_v42  ;;  %vm6922_vm9 = vnez %v6844_v23  ;;  %v6923_v52 = vmov 0  ;;  %v6927_v49 = vmov 0 }
 0x11d   : > { %vm3810_vm6 = vmand %vm6910_vm8, %vm6909_vm10  ;;  %vm6917_vm10 = vcmp.ne.s32.totalorder %v6890_v10, 95  ;;  %vm6930_vm8 = vnez %v6848_v20  ;;  %v6935_v31 = vmov 0  ;;  %v6945_v47 = vmov 0  ;;  %v7087_v20 = vld [vmem:[#allocation65_spill] sm:$0xff] }
 0x11e   : > { %v6912_v14 = vsel %vm3810_vm6, 4294967295, %v6911_v14  ;;  %vm3821_vm7 = vmand %vm3630_vm1, %vm6913_vm11  ;;  %vm6918_vm6 = vcmp.ne.s32.totalorder %v6890_v10, 0  ;;  %vm6921_vm11 = vcmp.ge.s32.totalorder %v6885_v9, %v3643_v48  ;;  %vm6952_vm5 = vnez %v6860_v30  ;;  %v6959_v30 = vld [vmem:[#allocation12_spill] sm:$0xff]  ;;  %v6987_v10 = vld [vmem:[#allocation58_spill] sm:$0xff] }
 0x11f   : > { %v6915_v25 = vsel %vm3821_vm7, 4294967295, %v6914_v25  ;;  %vm3832_vm14 = vmand %vm6918_vm6, %vm6917_vm10  ;;  %vm6925_vm10 = vcmp.ne.s32.totalorder %v6899_v21, 95  ;;  %v6953_v55 = vmov 0  ;;  %v6990_v63 = vmov 0 }
 0x120   : > { %v6920_v32 = vsel %vm3832_vm14, 4294967295, %v6919_v32  ;;  %vm3843_vm7 = vmand %vm6922_vm9, %vm6921_vm11  ;;  %vm6926_vm14 = vcmp.ne.s32.totalorder %v6899_v21, 0  ;;  %vm6929_vm11 = vcmp.ge.s32.totalorder %v6885_v9, %v3670_v29  ;;  %v6966_v21 = vmov 0 }
 0x121   : > { %v6924_v52 = vsel %vm3843_vm7, 4294967295, %v6923_v52  ;;  %vm3854_vm1 = vmand %vm6926_vm14, %vm6925_vm10  ;;  %vm6933_vm10 = vcmp.ne.s32.totalorder %v6907_v28, 95  ;;  %vm6948_vm14 = vcmp.ne.s32.totalorder %v6916_v53, 0  ;;  %v6997_v2 = vmov 0 }
 0x122   : > { %v6928_v49 = vsel %vm3854_vm1, 4294967295, %v6927_v49  ;;  %vm3865_vm7 = vmand %vm6930_vm8, %vm6929_vm11  ;;  %vm6934_vm1 = vcmp.ne.s32.totalorder %v6907_v28, 0  ;;  %vm6937_vm11 = vcmp.ge.s32.totalorder %v6885_v9, %v3681_v35  ;;  %v6942_v28 = vmov 0 }
 0x123   : > { %vm3876_vm9 = vmand %vm6934_vm1, %vm6933_vm10  ;;  %vm6940_vm1 = vcmp.ne.s32.totalorder %v6908_v27, 95  ;;  %vm6941_vm10 = vcmp.ne.s32.totalorder %v6908_v27, 0  ;;  %v6949_v27 = vmov 0  ;;  %vm6956_vm8 = vcmp.ne.s32.totalorder %v2355_v37, 0 }
 0x124   : > { %v6936_v31 = vsel %vm3876_vm9, 4294967295, %v6935_v31  ;;  %vm3887_vm6 = vmand %vm3657_vm4, %vm6937_vm11  ;;  %vm6944_vm4 = vcmp.ge.s32.totalorder %v2119_v4, %v3634_v42  ;;  %v7003_v8 = vmov 0  ;;  %v7006_v3 = vmov 0 }
 0x125   : > { %vm3897_vm9 = vmand %vm6941_vm10, %vm6940_vm1  ;;  %vm6947_vm10 = vcmp.ne.s32.totalorder %v6916_v53, 95  ;;  %v6957_v53 = vmov 0  ;;  %v7009_v58 = vmov 0  ;;  %v7015_v61 = vmov 0 }
 0x126   : > { %v6943_v28 = vsel %vm3897_vm9, 4294967295, %v6942_v28  ;;  %vm3908_vm11 = vmand %vm3664_vm0, %vm6944_vm4  ;;  %vm6951_vm4 = vcmp.ge.s32.totalorder %v2119_v4, %v3643_v48  ;;  %vm6964_vm0 = vcmp.ne.s32.totalorder %v2359_v39, 95  ;;  %v7062_v23 = vmov 0 }
 0x127   : > { %v6946_v47 = vsel %vm3908_vm11, 4294967295, %v6945_v47  ;;  %vm3919_vm9 = vmand %vm6948_vm14, %vm6947_vm10  ;;  %vm6960_vm10 = vcmp.ge.s32.totalorder %v2119_v4, %v3670_v29  ;;  %vm6961_vm14 = vnez %v6866_v34  ;;  %v6970_v34 = vmov 0 }
 0x128   : > { %v6950_v27 = vsel %vm3919_vm9, 4294967295, %v6949_v27  ;;  %vm3932_vm1 = vmand %vm6952_vm5, %vm6951_vm4  ;;  %vm6955_vm9 = vcmp.ne.s32.totalorder %v2355_v37, 95  ;;  %v6962_v37 = vmov 0  ;;  %vm6965_vm5 = vcmp.ne.s32.totalorder %v2359_v39, 0 }
 0x129   : > { %v6954_v55 = vsel %vm3932_vm1, 4294967295, %v6953_v55  ;;  %vm3943_vm11 = vmand %vm6956_vm8, %vm6955_vm9  ;;  %vm6968_vm8 = vcmp.ge.s32.totalorder %v2119_v4, %v3681_v35  ;;  %vm6969_vm9 = vnez %v6875_v22  ;;  %v6978_v22 = vmov 0 }
 0x12a   : > { %v6958_v53 = vsel %vm3943_vm11, 4294967295, %v6957_v53  ;;  %vm3958_vm1 = vmand %vm6961_vm14, %vm6960_vm10  ;;  %vm6973_vm14 = vnez %v6877_v62  ;;  %v6981_v62 = vmov 0  ;;  %vm6984_vm10 = vnez %v6889_v18  ;;  %v6992_v18 = vld [vmem:[#allocation13_spill] sm:$0xff] }
 0x12b   : > { %v6963_v37 = vsel %vm3958_vm1, 4294967295, %v6962_v37  ;;  %vm3969_vm11 = vmand %vm6965_vm5, %vm6964_vm0  ;;  %vm6972_vm5 = vcmp.le.s32.totalorder %v2110_v1, %v3750_v24  ;;  %v7259_v39 = vmov 0 }
 0x12c   : > { %v6967_v21 = vsel %vm3969_vm11, 4294967295, %v6966_v21  ;;  %vm3984_vm1 = vmand %vm6969_vm9, %vm6968_vm8  ;;  %vm6976_vm11 = vcmp.ne.s32.totalorder %v2363_v41, 95  ;;  %vm6977_vm9 = vcmp.ne.s32.totalorder %v2363_v41, 0 }
 0x12d   : > { %v6971_v34 = vsel %vm3984_vm1, 4294967295, %v6970_v34  ;;  %vm3995_vm4 = vmand %vm6973_vm14, %vm6972_vm5  ;;  %vm6980_vm14 = vcmp.ge.s32.totalorder %v2122_v5, %v3634_v42 }
 0x12e   : > { %vm4004_vm8 = vmand %vm6977_vm9, %vm6976_vm11  ;;  %vm6983_vm9 = vcmp.le.s32.totalorder %v2110_v1, %v3774_v19  ;;  %vm7001_vm11 = vcmp.ne.s32.totalorder %v2371_v46, 95 }
 0x12f   : > { %v6979_v22 = vsel %vm4004_vm8, 4294967295, %v6978_v22  ;;  %vm4017_vm5 = vmand %vm3733_vm15, %vm6980_vm14  ;;  %vm6988_vm8 = vcmp.ne.s32.totalorder %v2367_v44, 95  ;;  %vm6989_vm15 = vcmp.ne.s32.totalorder %v2367_v44, 0  ;;  %v6994_v44 = vmov 0 }
 0x130   : > { %v6982_v62 = vsel %vm4017_vm5, 4294967295, %v6981_v62  ;;  %vm4028_vm0 = vmand %vm6984_vm10, %vm6983_vm9  ;;  %vm6993_vm9 = vcmp.ge.s32.totalorder %v2122_v5, %v3643_v48  ;;  %vm7008_vm10 = vcmp.le.s32.totalorder %v2110_v1, %v3802_v33 }
 0x131   : > { %vm4037_vm14 = vmand %vm6989_vm15, %vm6988_vm8  ;;  %vm6996_vm15 = vcmp.le.s32.totalorder %v2110_v1, %v3778_v17  ;;  %v7020_v1 = vmov 0  ;;  %vm7023_vm8 = vcmp.le.s32.totalorder %v6885_v9, %v3750_v24 }
 0x132   : > { %v6991_v63 = vsel %vm4037_vm14, 4294967295, %v6990_v63  ;;  %vm4052_vm1 = vmand %vm3757_vm3, %vm6993_vm9  ;;  %vm7002_vm3 = vcmp.ne.s32.totalorder %v2371_v46, 0  ;;  %v7012_v46 = vld [vmem:[#allocation60_spill] sm:$0xff] }
 0x133   : > { %v6995_v44 = vsel %vm4052_vm1, 4294967295, %v6994_v44  ;;  %vm4063_vm5 = vmand %vm3768_vm12, %vm6996_vm15  ;;  %vm7005_vm1 = vcmp.ge.s32.totalorder %v2122_v5, %v3670_v29  ;;  %vm7013_vm15 = vcmp.ne.s32.totalorder %v2375_v50, 95 }
 0x134   : > { %v6998_v2 = vsel %vm4063_vm5, 4294967295, %v6997_v2  ;;  %vm4072_vm9 = vmand %vm7002_vm3, %vm7001_vm11  ;;  %vm7014_vm11 = vcmp.ne.s32.totalorder %v2375_v50, 0  ;;  %vm7018_vm3 = vcmp.ge.s32.totalorder %v2122_v5, %v3681_v35 }
 0x135   : > { %6999 = vst [vmem:[#allocation23_spill] sm:$0xff] %v6998_v2  ;;  %v7004_v8 = vsel %vm4072_vm9, 4294967295, %v7003_v8  ;;  %vm4083_vm12 = vmand %vm3785_vm2, %vm7005_vm1  ;;  %vm7034_vm1 = vnez %v6920_v32  ;;  %v7116_v32 = vmov 0 }
 0x136   : > { %v7007_v3 = vsel %vm4083_vm12, 4294967295, %v7006_v3  ;;  %vm4100_vm2 = vmand %vm3796_vm13, %vm7008_vm10  ;;  %vm7019_vm13 = vnez %v6912_v14  ;;  %v6281_v14 = vmov 0  }
 0x137   : > { %v7010_v58 = vsel %vm4100_vm2, 4294967295, %v7009_v58  ;;  %vm4109_vm12 = vmand %vm7014_vm11, %vm7013_vm15  ;;  %v1481_v50 = vsel %vm3995_vm4, 1, %v6281_v14  ;;  %vm7029_vm11 = vcmp.ne.s32.totalorder %v2379_v38, 0 }
 0x138   : > { %7011 = vst [vmem:[#allocation24_spill] sm:$0xff] %v7010_v58  ;;  %v7016_v61 = vsel %vm4109_vm12, 4294967295, %v7015_v61  ;;  %vm4120_vm10 = vmand %vm7019_vm13, %vm7018_vm3  ;;  %vm7024_vm12 = vnez %v6915_v25  ;;  %vm7028_vm13 = vcmp.ne.s32.totalorder %v2379_v38, 95  ;;  %v7035_v25 = vmov 0  ;;  %v7172_v58 = vld [vmem:[#allocation71_spill] sm:$0xff] }
 0x139   : > { %7017 = vst [vmem:[#allocation25_spill] sm:$0xff] %v7016_v61  ;;  %v7021_v1 = vsel %vm4120_vm10, 4294967295, %v7020_v1  ;;  %vm4135_vm9 = vmand %vm7024_vm12, %vm7023_vm8  ;;  %v7030_v61 = vmov 0  ;;  %vm7033_vm12 = vcmp.ge.s32.totalorder %v6959_v30, %v3634_v42  ;;  %vm7038_vm8 = vcmp.le.s32.totalorder %v6885_v9, %v3774_v19 }
 0x13a   : > { %7022 = vst [vmem:[#allocation26_spill] sm:$0xff] %v7021_v1  ;;  %vm4147_vm15 = vmand %vm7029_vm11, %vm7028_vm13  ;;  %v1485_v38 = vsel %vm4135_vm9, 1, %v6281_v14  ;;  %vm7044_vm11 = vcmp.ne.s32.totalorder %v2383_v40, 0  ;;  %vm7050_vm3 = vnez %v6928_v49  ;;  %v7051_v14 = vmov 0 }
 0x13b   : > { %v7031_v61 = vsel %vm4147_vm15, 4294967295, %v7030_v61  ;;  %vm4158_vm10 = vmand %vm7034_vm1, %vm7033_vm12  ;;  %vm7039_vm15 = vnez %v6924_v52  ;;  %vm7043_vm12 = vcmp.ne.s32.totalorder %v2383_v40, 95  ;;  %v7048_v52 = vld [vmem:[#allocation14_spill] sm:$0xff]  ;;  %v7055_v40 = vmov 0 }
 0x13c   : > { %7032 = vst [vmem:[#allocation27_spill] sm:$0xff] %v7031_v61  ;;  %v7036_v25 = vsel %vm4158_vm10, 4294967295, %v7035_v25  ;;  %vm4173_vm14 = vmand %vm7039_vm15, %vm7038_vm8  ;;  %v7045_v61 = vmov 0  ;;  %vm7049_vm8 = vcmp.ge.s32.totalorder %v6959_v30, %v3643_v48  ;;  %v7058_v49 = vmov 0  }
 0x13d   : > { %7037 = vst [vmem:[#allocation28_spill] sm:$0xff] %v7036_v25  ;;  %vm4185_vm13 = vmand %vm7044_vm11, %vm7043_vm12  ;;  %vm7054_vm12 = vcmp.le.s32.totalorder %v6885_v9, %v3778_v17  ;;  %vm7061_vm11 = vcmp.ne.s32.totalorder %v2387_v43, 0  ;;  %v7067_v1 = vmov 0  ;;  %v7074_v25 = vld [vmem:[#allocation64_spill] sm:$0xff] }
 0x13e   : > { %v7046_v61 = vsel %vm4185_vm13, 4294967295, %v7045_v61  ;;  %vm4196_vm10 = vmand %vm7050_vm3, %vm7049_vm8  ;;  %vm7060_vm8 = vcmp.ne.s32.totalorder %v2387_v43, 95  ;;  %v7071_v43 = vmov 0  ;;  %vm7076_vm3 = vcmp.ne.s32.totalorder %v2391_v45, 0 }
 0x13f   : > { %7047 = vst [vmem:[#allocation29_spill] sm:$0xff] %v7046_v61  ;;  %v7052_v14 = vsel %vm4196_vm10, 4294967295, %v7051_v14  ;;  %vm4209_vm15 = vmand %vm3865_vm7, %vm7054_vm12  ;;  %v1482_v61 = vsel %vm4028_vm0, 1, %v7058_v49  ;;  %vm7065_vm12 = vcmp.ge.s32.totalorder %v6959_v30, %v3670_v29  ;;  %vm7066_vm10 = vnez %v6936_v31 }
 0x140   : > { %7053 = vst [vmem:[#allocation30_spill] sm:$0xff] %v7052_v14  ;;  %v7056_v40 = vsel %vm4209_vm15, 4294967295, %v7055_v40  ;;  %v1486_v14 = vsel %vm4173_vm14, 1, %v7058_v49  ;;  %vm4224_vm1 = vmand %vm7061_vm11, %vm7060_vm8  ;;  %vm7070_vm11 = vcmp.le.s32.totalorder %v6885_v9, %v3802_v33  ;;  %v1353_v31 = vsel %vm3995_vm4, %v6817_v13, 0 }
 0x141   : > { %7057 = vst [vmem:[#allocation11_spill] sm:$0xff] %v7056_v40  ;;  %v7063_v23 = vsel %vm4224_vm1, 4294967295, %v7062_v23  ;;  %vm4235_vm13 = vmand %vm7066_vm10, %vm7065_vm12  ;;  %vm7075_vm12 = vcmp.ne.s32.totalorder %v2391_v45, 95  ;;  %v7077_v9 = vmov 0  ;;  %vm7079_vm4 = vcmp.ge.s32.totalorder %v6959_v30, %v3681_v35  ;;  %v7189_v45 = vld [vmem:[#allocation72_spill] sm:$0xff] }
 0x142   : > { %7064 = vst [vmem:[#allocation12_spill] sm:$0xff] %v7063_v23  ;;  %v7068_v1 = vsel %vm4235_vm13, 4294967295, %v7067_v1  ;;  %vm4246_vm8 = vmand %vm3887_vm6, %vm7070_vm11  ;;  %v1545_v23 = vadd.s32 %v1485_v38, %v1481_v50  ;;  %vm7080_vm11 = vnez %v6943_v28  ;;  %v1354_v38 = vsel %vm4028_vm0, %v6818_v11, 0  ;;  %v7140_v50 = vld [vmem:[#allocation32_spill] sm:$0xff] }
 0x143   : > { %7069 = vst [vmem:[#allocation13_spill] sm:$0xff] %v7068_v1  ;;  %v7072_v43 = vsel %vm4246_vm8, 4294967295, %v7071_v43  ;;  %v1357_v1 = vsel %vm4135_vm9, %v6824_v12, 0  ;;  %vm4261_vm7 = vmand %vm7076_vm3, %vm7075_vm12  ;;  %vm7083_vm3 = vcmp.le.s32.totalorder %v2119_v4, %v3750_v24  ;;  %vm7084_vm12 = vnez %v6946_v47 }
 0x144   : > { %7073 = vst [vmem:[#allocation14_spill] sm:$0xff] %v7072_v43  ;;  %v7078_v9 = vsel %vm4261_vm7, 4294967295, %v7077_v9  ;;  %vm4272_vm9 = vmand %vm7080_vm11, %vm7079_vm4  ;;  %v1355_v13 = vsel %vm4063_vm5, %v6819_v36, 0  ;;  %v1358_v12 = vsel %vm4173_vm14, %v6828_v57, 0  ;;  %v1359_v28 = vsel %vm4209_vm15, %v6832_v51, 0 }
 0x145   : > { %vm4283_vm7 = vmand %vm7084_vm12, %vm7083_vm3  ;;  %vm7088_vm11 = vcmp.ne.s32.totalorder %v2395_v56, 95  ;;  %vm7089_vm3 = vcmp.ne.s32.totalorder %v2395_v56, 0  ;;  %vm7092_vm14 = vcmp.ge.s32.totalorder %v2128_v7, %v3634_v42  ;;  %vm7093_vm10 = vnez %v6950_v27 }
 0x146   : > { %vm4304_vm12 = vmand %vm7089_vm3, %vm7088_vm11  ;;  %vm7096_vm4 = vcmp.le.s32.totalorder %v2119_v4, %v3774_v19  ;;  %vm7097_vm11 = vnez %v6954_v55  ;;  %v1356_v57 = vsel %vm4100_vm2, %v6820_v54, 0  ;;  %v1360_v51 = vsel %vm4246_vm8, %v6836_v16, 0  ;;  %v7104_v54 = vld [vmem:[#allocation15_spill] sm:$0xff] }
 0x147   : > { %vm4315_vm6 = vmand %vm7093_vm10, %vm7092_vm14  ;;  %v1489_v27 = vsel %vm4283_vm7, 1, %v7058_v49  ;;  %v1566_v47 = vadd.s32 %v1486_v14, %v1482_v61  ;;  %vm7101_vm14 = vcmp.ne.s32.totalorder %v2399_v0, 0  ;;  %v7102_v55 = vmov 0  ;;  %v7113_v14 = vld [vmem:[#allocation67_spill] sm:$0xff] }
 0x148   : > { %vm4324_vm3 = vmand %vm7097_vm11, %vm7096_vm4  ;;  %vm7100_vm4 = vcmp.ne.s32.totalorder %v2399_v0, 95  ;;  %vm7105_vm8 = vcmp.ge.s32.totalorder %v2128_v7, %v3643_v48  ;;  %vm7106_vm15 = vnez %v6958_v53  ;;  %v7107_v61 = vmov 0  ;;  %v7127_v0 = vld [vmem:[#allocation68_spill] sm:$0xff]  ;;  %v7156_v16 = vld [vmem:[#allocation35_spill] sm:$0xff] }
 0x149   : > { %vm4342_vm11 = vmand %vm7101_vm14, %vm7100_vm4  ;;  %vm7109_vm14 = vcmp.le.s32.totalorder %v2119_v4, %v3778_v17  ;;  %vm7110_vm0 = vnez %v6963_v37  ;;  %v4370_v53 = vpack.c.b16 %v1357_v1, %v1353_v31  ;;  %v1490_v6 = vsel %vm4324_vm3, 1, %v7058_v49  ;;  %v7126_v31 = vld [vmem:[#allocation31_spill] sm:$0xff]  ;;  %v7178_v1 = vld [vmem:[#allocation25_spill] sm:$0xff] }
 0x14a   : > { %v7103_v55 = vsel %vm4342_vm11, 4294967295, %v7102_v55  ;;  %vm4353_vm2 = vmand %vm7106_vm15, %vm7105_vm8  ;;  %vm7114_vm8 = vcmp.ne.s32.totalorder %v2403_v59, 95  ;;  %vm7115_vm4 = vcmp.ne.s32.totalorder %v2403_v59, 0  ;;  %v7120_v37 = vmov 0 }
 0x14b   : > { %v7108_v61 = vsel %vm4353_vm2, 4294967295, %v7107_v61  ;;  %vm4366_vm5 = vmand %vm7110_vm0, %vm7109_vm14  ;;  %vm7118_vm14 = vcmp.ge.s32.totalorder %v2128_v7, %v3670_v29  ;;  %vm7119_vm2 = vnez %v6967_v21  ;;  %v1361_v21 = vsel %vm4283_vm7, %v7126_v31, 0 }
 0x14c   : > { %vm4380_vm10 = vmand %vm7115_vm4, %vm7114_vm8  ;;  %vm7122_vm4 = vcmp.le.s32.totalorder %v2119_v4, %v3802_v33  ;;  %vm7123_vm8 = vnez %v6971_v34  ;;  %v4409_v43 = vpack.c.b16 %v1358_v12, %v1354_v38  ;;  %v4411_v40 = vpack.c.b16 %v1359_v28, %v1355_v13  ;;  %v7141_v38 = vld [vmem:[#allocation33_spill] sm:$0xff] }
 0x14d   : > { %v7117_v32 = vsel %vm4380_vm10, 4294967295, %v7116_v32  ;;  %vm4391_vm11 = vmand %vm7119_vm2, %vm7118_vm14  ;;  %v1546_v59 = vadd.s32 %v1545_v23, %v1489_v27  ;;  %vm7128_vm14 = vcmp.ne.s32.totalorder %v2407_v60, 95  ;;  %vm7129_vm15 = vcmp.ne.s32.totalorder %v2407_v60, 0  ;;  %v7142_v27 = vld [vmem:[#allocation69_spill] sm:$0xff]  ;;  %v7171_v23 = vld [vmem:[#allocation36_spill] sm:$0xff] }
 0x14e   : > { %v7121_v37 = vsel %vm4391_vm11, 4294967295, %v7120_v37  ;;  %vm4402_vm10 = vmand %vm7123_vm8, %vm7122_vm4  ;;  %v7130_v4 = vmov 0  ;;  %vm7132_vm7 = vcmp.ge.s32.totalorder %v2128_v7, %v3681_v35  ;;  %vm7133_vm8 = vnez %v6979_v22 }
 0x14f   : > { %vm4418_vm0 = vmand %vm7129_vm15, %vm7128_vm14  ;;  %v7134_v34 = vmov 0  ;;  %vm7136_vm15 = vcmp.le.s32.totalorder %v2122_v5, %v3750_v24  ;;  %vm7137_vm14 = vnez %v6982_v62  ;;  %v1362_v22 = vsel %vm4324_vm3, %v7140_v50, 0 }
 0x150   : > { %v7131_v4 = vsel %vm4418_vm0, 4294967295, %v7130_v4  ;;  %vm4429_vm11 = vmand %vm7133_vm8, %vm7132_vm7  ;;  %v1363_v13 = vsel %vm4366_vm5, %v7141_v38, 0  ;;  %v4450_v12 = vpack.c.b16 %v1360_v51, %v1356_v57  ;;  %v1491_v28 = vsel %vm4366_vm5, 1, %v7058_v49  ;;  %v7155_v51 = vld [vmem:[#allocation34_spill] sm:$0xff] }
 0x151   : > { %v7135_v34 = vsel %vm4429_vm11, 4294967295, %v7134_v34  ;;  %vm4440_vm0 = vmand %vm7137_vm14, %vm7136_vm15  ;;  %vm7143_vm8 = vcmp.ne.s32.totalorder %v6987_v10, 95  ;;  %vm7144_vm15 = vcmp.ne.s32.totalorder %v6987_v10, 0  ;;  %vm7147_vm2 = vcmp.ge.s32.totalorder %v6992_v18, %v3634_v42  ;;  %v7157_v10 = vld [vmem:[#allocation70_spill] sm:$0xff] }
 0x152   : > { %vm4460_vm14 = vmand %vm7144_vm15, %vm7143_vm8  ;;  %vm7148_vm4 = vnez %v6991_v63  ;;  %v7149_v11 = vmov 0  ;;  %vm7151_vm8 = vcmp.le.s32.totalorder %v2122_v5, %v3774_v19  ;;  %vm7152_vm15 = vnez %v6995_v44  ;;  %v7184_v57 = vld [vmem:[#allocation26_spill] sm:$0xff] }
 0x153   : > { %vm4471_vm11 = vmand %vm7148_vm4, %vm7147_vm2  ;;  %v1364_v63 = vsel %vm4402_vm10, %v7155_v51, 0  ;;  %v1365_v31 = vsel %vm4440_vm0, %v7156_v16, 0  ;;  %v1493_v50 = vsel %vm4440_vm0, 1, %v7058_v49  ;;  %v1567_v38 = vadd.s32 %v1566_v47, %v1490_v6  ;;  %v7162_v51 = vld [vmem:[#allocation16_spill] sm:$0xff]  ;;  %v7284_v6 = vld [vmem:[#allocation18_spill] sm:$0xff] }
 0x154   : > { %v7150_v11 = vsel %vm4471_vm11, 4294967295, %v7149_v11  ;;  %vm4482_vm7 = vmand %vm7152_vm15, %vm7151_vm8  ;;  %vm7158_vm4 = vcmp.ne.s32.totalorder %v7000_v26, 95  ;;  %vm7159_vm8 = vcmp.ne.s32.totalorder %v7000_v26, 0  ;;  %v7160_v44 = vmov 0 }
 0x155   : > { %vm4500_vm15 = vmand %vm7159_vm8, %vm7158_vm4  ;;  %vm7163_vm3 = vcmp.ge.s32.totalorder %v6992_v18, %v3643_v48  ;;  %vm7164_vm11 = vnez %v7004_v8  ;;  %v7165_v47 = vmov 0  ;;  %vm7167_vm4 = vcmp.le.s32.totalorder %v2122_v5, %v3778_v17 }
 0x156   : > { %v7161_v44 = vsel %vm4500_vm15, 4294967295, %v7160_v44  ;;  %vm4511_vm0 = vmand %vm7164_vm11, %vm7163_vm3  ;;  %vm7168_vm8 = vnez %v7007_v3  ;;  %v1366_v8 = vsel %vm4482_vm7, %v7171_v23, 0  ;;  %v1418_v16 = vpack.c.b16 %v1365_v31, %v1361_v21  ;;  %v7188_v23 = vld [vmem:[#allocation37_spill] sm:$0xff] }
 0x157   : > { %v7166_v47 = vsel %vm4511_vm0, 4294967295, %v7165_v47  ;;  %vm4522_vm15 = vmand %vm7168_vm8, %vm7167_vm4  ;;  %v1492_v26 = vsel %vm4402_vm10, 1, %v7058_v49  ;;  %v1494_v60 = vsel %vm4482_vm7, 1, %v7058_v49  ;;  %vm7173_vm3 = vcmp.ne.s32.totalorder %v7012_v46, 95 }
 0x158   : > { %vm7174_vm4 = vcmp.ne.s32.totalorder %v7012_v46, 0  ;;  %v7175_v3 = vmov 0  ;;  %vm7177_vm10 = vcmp.ge.s32.totalorder %v6992_v18, %v3670_v29  ;;  %vm7179_vm5 = vnez %v7178_v1 }
 0x159   : > { %vm4540_vm8 = vmand %vm7174_vm4, %vm7173_vm3  ;;  %v7180_v21 = vmov 0  ;;  %vm7183_vm3 = vcmp.le.s32.totalorder %v2122_v5, %v3802_v33  ;;  %vm7185_vm4 = vnez %v7184_v57  ;;  %v1367_v1 = vsel %vm4522_vm15, %v7188_v23, 0 }
 0x15a   : > { %v7176_v3 = vsel %vm4540_vm8, 4294967295, %v7175_v3  ;;  %vm4551_vm0 = vmand %vm7179_vm5, %vm7177_vm10  ;;  %v1421_v46 = vpack.c.b16 %v1366_v8, %v1362_v22  ;;  %v1495_v2 = vsel %vm4522_vm15, 1, %v7058_v49  ;;  %v1547_v56 = vadd.s32 %v1546_v59, %v1493_v50  ;;  %v7197_v22 = vld [vmem:[#allocation27_spill] sm:$0xff]  ;;  %v7203_v50 = vld [vmem:[#allocation28_spill] sm:$0xff] }
 0x15b   : > { %v7181_v21 = vsel %vm4551_vm0, 4294967295, %v7180_v21  ;;  %vm4562_vm11 = vmand %vm7185_vm4, %vm7183_vm3  ;;  %v7193_v5 = vmov 0  ;;  %vm7196_vm2 = vcmp.ge.s32.totalorder %v6992_v18, %v3681_v35  ;;  %vm7198_vm0 = vnez %v7197_v22  ;;  %v7207_v8 = vld [vmem:[#allocation38_spill] sm:$0xff] }
 0x15c   : > { %7182 = vst [vmem:[#allocation15_spill] sm:$0xff] %v7181_v21  ;;  %v7190_v21 = vld [vmem:[#allocation61_spill] sm:$0xff]  ;;  %vm4588_vm15 = vmand %vm7198_vm0, %vm7196_vm2  ;;  %v7199_v59 = vmov 0  ;;  %v1368_v57 = vsel %vm4562_vm11, %v7207_v8, 0  ;;  %v1419_v23 = vpack.c.b8 %v1418_v16, %v4370_v53  ;;  %v1424_v22 = vpack.c.b16 %v1367_v1, %v1363_v13  ;;  %v7222_v13 = vld [vmem:[#allocation30_spill] sm:$0xff] }
 0x15d   : > { %vm7191_vm10 = vcmp.ne.s32.totalorder %v7190_v21, 95  ;;  %vm7192_vm7 = vcmp.ne.s32.totalorder %v7190_v21, 0  ;;  %v7200_v59 = vsel %vm4588_vm15, 4294967295, %v7199_v59  ;;  %v1588_v21 = vadd.s32 %v1495_v2, %v1491_v28  ;;  %v7216_v53 = vld [vmem:[#allocation29_spill] sm:$0xff] }
 0x15e   : > { %vm4577_vm3 = vmand %vm7192_vm7, %vm7191_vm10  ;;  %7201 = vst [vmem:[#allocation32_spill] sm:$0xff] %v7200_v59  ;;  %vm7202_vm7 = vcmp.le.s32.totalorder %v6959_v30, %v3750_v24  ;;  %vm7204_vm10 = vnez %v7203_v50  ;;  %v7208_v59 = vld [vmem:[#allocation73_spill] sm:$0xff]  ;;  %v7212_v50 = vmov 0  ;;  %vm7217_vm15 = vnez %v7216_v53 }
 0x15f   : > { %v7194_v5 = vsel %vm4577_vm3, 4294967295, %v7193_v5  ;;  %vm4599_vm3 = vmand %vm7204_vm10, %vm7202_vm7  ;;  %vm7215_vm10 = vcmp.ge.s32.totalorder %v7048_v52, %v3634_v42  ;;  %v7218_v2 = vmov 0  ;;  %v1422_v16 = vpack.c.b8 %v1421_v46, %v4409_v43  ;;  %1465 = vst [vmem:[%s4676_s20] sm:$0xff] %v1419_v23  ;;  %v7241_v46 = vld [vmem:[#allocation75_spill] sm:$0xff] }
 0x160   : > { %7195 = vst [vmem:[#allocation31_spill] sm:$0xff] %v7194_v5  ;;  %v7209_v5 = vld [vmem:[#allocation62_spill] sm:$0xff]  ;;  %vm4623_vm8 = vmand %vm7217_vm15, %vm7215_vm10  ;;  %v1427_v1 = vpack.c.b16 %v1368_v57, %v1364_v63  ;;  %v1496_v8 = vsel %vm4562_vm11, 1, %v7058_v49  ;;  %v1568_v53 = vadd.s32 %v1567_v38, %v1494_v60  ;;  %v7235_v43 = vmov 0  ;;  %v7253_v60 = vld [vmem:[#allocation76_spill] sm:$0xff] }
 0x161   : > { %vm7210_vm0 = vcmp.ne.s32.totalorder %v7209_v5, 95  ;;  %vm7211_vm5 = vcmp.ne.s32.totalorder %v7209_v5, 0  ;;  %v7219_v2 = vsel %vm4623_vm8, 4294967295, %v7218_v2  ;;  %v7226_v5 = vld [vmem:[#allocation74_spill] sm:$0xff]  ;;  %v1425_v38 = vpack.c.b8 %v1424_v22, %v4411_v40  ;;  %1466 = vst [vmem:[%s4676_s20 + $0x8] sm:$0xff] %v1422_v16 }
 0x162   : > { %vm4612_vm4 = vmand %vm7211_vm5, %vm7210_vm0  ;;  %7220 = vst [vmem:[#allocation34_spill] sm:$0xff] %v7219_v2  ;;  %vm7221_vm5 = vcmp.le.s32.totalorder %v6959_v30, %v3774_v19  ;;  %vm7223_vm0 = vnez %v7222_v13  ;;  %v7227_v2 = vld [vmem:[#allocation63_spill] sm:$0xff]  ;;  %v7230_v13 = vmov 0  ;;  %v1609_v31 = vadd.s32 %v1496_v8, %v1492_v26 }
 0x163   : > { %v7213_v50 = vsel %vm4612_vm4, 4294967295, %v7212_v50  ;;  %vm4634_vm4 = vmand %vm7223_vm0, %vm7221_vm5  ;;  %vm7228_vm10 = vcmp.ne.s32.totalorder %v7227_v2, 95  ;;  %vm7229_vm2 = vcmp.ne.s32.totalorder %v7227_v2, 0  ;;  %vm7233_vm0 = vcmp.ge.s32.totalorder %v7048_v52, %v3643_v48  ;;  %1467 = vst [vmem:[%s4676_s20 + $0x10] sm:$0xff] %v1425_v38  ;;  %v7278_v38 = vld [vmem:[#allocation40_spill] sm:$0xff]  ;;  %v7279_v2 = vld [vmem:[#allocation78_spill] sm:$0xff] }
 0x164   : > { %7214 = vst [vmem:[#allocation33_spill] sm:$0xff] %v7213_v50  ;;  %vm4647_vm7 = vmand %vm7229_vm2, %vm7228_vm10  ;;  %v7232_v50 = vld [vmem:[#allocation17_spill] sm:$0xff]  ;;  %vm7237_vm2 = vcmp.le.s32.totalorder %v6959_v30, %v3778_v17  ;;  %v1497_v57 = vsel %vm4599_vm3, 1, %v7058_v49  ;;  %vm7246_vm5 = vcmp.ge.s32.totalorder %v7048_v52, %v3670_v29  ;;  %v7248_v26 = vmov 0 }
 0x165   : > { %v7231_v13 = vsel %vm4647_vm7, 4294967295, %v7230_v13  ;;  %vm4658_vm11 = vmand %vm4224_vm1, %vm7233_vm0  ;;  %vm7243_vm0 = vcmp.ne.s32.totalorder %v7074_v25, 0  ;;  %v1428_v22 = vpack.c.b8 %v1427_v1, %v4450_v12  ;;  %vm7258_vm15 = vcmp.ge.s32.totalorder %v7048_v52, %v3681_v35  ;;  %v7309_v12 = vld [vmem:[#allocation44_spill] sm:$0xff] }
 0x166   : > { %v7236_v43 = vsel %vm4658_vm11, 4294967295, %v7235_v43  ;;  %vm4669_vm10 = vmand %vm4235_vm13, %vm7237_vm2  ;;  %vm7242_vm13 = vcmp.ne.s32.totalorder %v7074_v25, 95  ;;  %vm7247_vm11 = vnez %v7078_v9  ;;  %v1498_v9 = vsel %vm4634_vm4, 1, %v7058_v49 }
 0x167   : > { %vm4687_vm2 = vmand %vm7243_vm0, %vm7242_vm13  ;;  %vm7250_vm13 = vcmp.le.s32.totalorder %v6959_v30, %v3802_v33  ;;  %v1499_v8 = vsel %vm4669_vm10, 1, %v7058_v49  ;;  %v7256_v30 = vmov 0  ;;  %v1548_v1 = vadd.s32 %v1547_v56, %v1497_v57  ;;  %1468 = vst [vmem:[%s4676_s20 + $0x18] sm:$0xff] %v1428_v22  ;;  %v7294_v22 = vld [vmem:[#allocation41_spill] sm:$0xff] }
 0x168   : > { %vm4698_vm7 = vmand %vm7247_vm11, %vm7246_vm5  ;;  %vm7254_vm11 = vcmp.ne.s32.totalorder %v7087_v20, 95  ;;  %v1589_v16 = vadd.s32 %v1588_v21, %v1499_v8  ;;  %vm7266_vm5 = vcmp.ne.s32.totalorder %v6643_v15, 0  ;;  %v7267_v25 = vmov 0  ;;  %v7277_v21 = vld [vmem:[#allocation39_spill] sm:$0xff] }
 0x169   : > { %v7249_v26 = vsel %vm4698_vm7, 4294967295, %v7248_v26  ;;  %vm4709_vm0 = vmand %vm4272_vm9, %vm7250_vm13  ;;  %vm7255_vm9 = vcmp.ne.s32.totalorder %v7087_v20, 0  ;;  %v7264_v20 = vld [vmem:[#allocation77_spill] sm:$0xff]  ;;  %v1370_v57 = vsel %vm4634_vm4, %v7278_v38, 0  ;;  %vm7285_vm4 = vcmp.ge.s32.totalorder %v7104_v54, %v3643_v48 }
 0x16a   : > { %vm4726_vm13 = vmand %vm7255_vm9, %vm7254_vm11  ;;  %vm7261_vm11 = vcmp.le.s32.totalorder %v2128_v7, %v3750_v24  ;;  %v1500_v41 = vsel %vm4709_vm0, 1, %v7058_v49  ;;  %v7287_v28 = vmov 0  ;;  %v7333_v23 = vmov 0 }
 0x16b   : > { %v7257_v30 = vsel %vm4726_vm13, 4294967295, %v7256_v30  ;;  %vm4737_vm7 = vmand %vm4304_vm12, %vm7258_vm15  ;;  %vm7265_vm15 = vcmp.ne.s32.totalorder %v6643_v15, 95  ;;  %v1569_v15 = vadd.s32 %v1568_v53, %v1498_v9  ;;  %vm7286_vm12 = vnez %v7117_v32  ;;  %v7295_v9 = vld [vmem:[#allocation43_spill] sm:$0xff]  ;;  %v7325_v53 = vld [vmem:[#allocation46_spill] sm:$0xff] }
 0x16c   : > { %v7260_v39 = vsel %vm4737_vm7, 4294967295, %v7259_v39  ;;  %vm4748_vm9 = vmand %vm4315_vm6, %vm7261_vm11  ;;  %vm7269_vm11 = vcmp.ge.s32.totalorder %v7104_v54, %v3634_v42  ;;  %vm7270_vm7 = vnez %v7103_v55  ;;  %v1369_v55 = vsel %vm4599_vm3, %v7277_v21, 0  ;;  %v7380_v36 = vld [vmem:[#allocation33_spill] sm:$0xff] }
 0x16d   : > { %vm4761_vm1 = vmand %vm7266_vm5, %vm7265_vm15  ;;  %vm7273_vm5 = vcmp.le.s32.totalorder %v2128_v7, %v3774_v19  ;;  %vm7274_vm15 = vnez %v7108_v61  ;;  %v1501_v8 = vsel %vm4748_vm9, 1, %v7058_v49  ;;  %v7282_v61 = vmov 0 }
 0x16e   : > { %v7268_v25 = vsel %vm4761_vm1, 4294967295, %v7267_v25  ;;  %vm4772_vm13 = vmand %vm7270_vm7, %vm7269_vm11  ;;  %vm7280_vm11 = vcmp.ne.s32.totalorder %v7113_v14, 95  ;;  %v1371_v32 = vsel %vm4669_vm10, %v7294_v22, 0  ;;  %v1373_v21 = vsel %vm4748_vm9, %v7295_v9, 0 }
 0x16f   : > { %vm4783_vm1 = vmand %vm7274_vm15, %vm7273_vm5  ;;  %vm7281_vm5 = vcmp.ne.s32.totalorder %v7113_v14, 0  ;;  %v1610_v38 = vadd.s32 %v1609_v31, %v1500_v41  ;;  %vm7301_vm9 = vcmp.ge.s32.totalorder %v7104_v54, %v3670_v29  ;;  %vm7302_vm7 = vnez %v7131_v4  ;;  %v7310_v41 = vld [vmem:[#allocation45_spill] sm:$0xff] }
 0x170   : > { %vm4802_vm15 = vmand %vm7281_vm5, %vm7280_vm11  ;;  %vm7290_vm11 = vcmp.le.s32.totalorder %v2128_v7, %v3778_v17  ;;  %vm7291_vm5 = vnez %v7121_v37  ;;  %v1502_v14 = vsel %vm4783_vm1, 1, %v7058_v49  ;;  %v7299_v37 = vmov 0 }
 0x171   : > { %v7283_v61 = vsel %vm4802_vm15, 4294967295, %v7282_v61  ;;  %vm4813_vm6 = vmand %vm7286_vm12, %vm7285_vm4  ;;  %vm7297_vm4 = vcmp.ne.s32.totalorder %v7127_v0, 95  ;;  %v1374_v4 = vsel %vm4783_vm1, %v7309_v12, 0  ;;  %vm7316_vm12 = vcmp.ge.s32.totalorder %v7104_v54, %v3681_v35 }
 0x172   : > { %v7288_v28 = vsel %vm4813_vm6, 4294967295, %v7287_v28  ;;  %vm4824_vm15 = vmand %vm7291_vm5, %vm7290_vm11  ;;  %vm7298_vm11 = vcmp.ne.s32.totalorder %v7127_v0, 0  ;;  %v1549_v0 = vadd.s32 %v1548_v1, %v1501_v8  ;;  %v7317_v1 = vmov 0  ;;  %v7324_v8 = vld [vmem:[#allocation42_spill] sm:$0xff] }
 0x173   : > { %7289 = vst [vmem:[#allocation35_spill] sm:$0xff] %v7288_v28  ;;  %v7296_v28 = vld [vmem:[#allocation79_spill] sm:$0xff]  ;;  %vm4842_vm5 = vmand %vm7298_vm11, %vm7297_vm4  ;;  %vm7305_vm4 = vcmp.le.s32.totalorder %v2128_v7, %v3802_v33  ;;  %vm7306_vm11 = vnez %v7135_v34  ;;  %v1375_v22 = vsel %vm4824_vm15, %v7310_v41, 0  ;;  %v1503_v9 = vsel %vm4824_vm15, 1, %v7058_v49  ;;  %v7311_v7 = vld [vmem:[#allocation80_spill] sm:$0xff] }
 0x174   : > { %v7300_v37 = vsel %vm4842_vm5, 4294967295, %v7299_v37  ;;  %vm4853_vm3 = vmand %vm7302_vm7, %vm7301_vm9  ;;  %vm7312_vm9 = vcmp.ne.s32.totalorder %v7142_v27, 95  ;;  %v7314_v34 = vmov 0  ;;  %v1372_v62 = vsel %vm4709_vm0, %v7324_v8, 0  ;;  %v7339_v8 = vld [vmem:[#allocation82_spill] sm:$0xff] }
 0x175   : > { %vm4864_vm5 = vmand %vm7306_vm11, %vm7305_vm4  ;;  %vm7313_vm4 = vcmp.ne.s32.totalorder %v7142_v27, 0  ;;  %v1590_v41 = vadd.s32 %v1589_v16, %v1503_v9  ;;  %vm7331_vm7 = vcmp.ge.s32.totalorder %v7162_v51, %v3634_v42  ;;  %vm7332_vm1 = vnez %v7161_v44  ;;  %v7405_v16 = vld [vmem:[#allocation50_spill] sm:$0xff] }
 0x176   : > { %vm4882_vm11 = vmand %vm7313_vm4, %vm7312_vm9  ;;  %vm7320_vm9 = vcmp.le.s32.totalorder %v6992_v18, %v3750_v24  ;;  %vm7321_vm4 = vnez %v7150_v11  ;;  %v1376_v12 = vsel %vm4864_vm5, %v7325_v53, 0  ;;  %v1504_v27 = vsel %vm4864_vm5, 1, %v7058_v49 }
 0x177   : > { %v7315_v34 = vsel %vm4882_vm11, 4294967295, %v7314_v34  ;;  %vm4893_vm15 = vmand %vm4460_vm14, %vm7316_vm12  ;;  %vm7327_vm12 = vcmp.ne.s32.totalorder %v7157_v10, 95  ;;  %v7329_v11 = vmov 0  ;;  %v4948_v31 = vpack.c.b16 %v1373_v21, %v1369_v55  ;;  %v7406_v55 = vld [vmem:[#allocation51_spill] sm:$0xff] }
 0x178   : > { %v7318_v1 = vsel %vm4893_vm15, 4294967295, %v7317_v1  ;;  %vm4904_vm10 = vmand %vm7321_vm4, %vm7320_vm9  ;;  %vm7328_vm9 = vcmp.ne.s32.totalorder %v7157_v10, 0  ;;  %v1570_v9 = vadd.s32 %v1569_v15, %v1502_v14  ;;  %vm7341_vm5 = vcmp.ne.s32.totalorder %v7172_v58, 0  ;;  %v7351_v14 = vld [vmem:[#allocation15_spill] sm:$0xff] }
 0x179   : > { %7319 = vst [vmem:[#allocation16_spill] sm:$0xff] %v7318_v1  ;;  %v7326_v1 = vld [vmem:[#allocation81_spill] sm:$0xff]  ;;  %vm4922_vm4 = vmand %vm7328_vm9, %vm7327_vm12  ;;  %vm7335_vm12 = vcmp.le.s32.totalorder %v6992_v18, %v3774_v19  ;;  %vm7336_vm9 = vnez %v7166_v47  ;;  %v1505_v44 = vsel %vm4904_vm10, 1, %v7058_v49  ;;  %v7342_v53 = vmov 0  ;;  %v7344_v47 = vld [vmem:[#allocation19_spill] sm:$0xff] }
 0x17a   : > { %v7330_v11 = vsel %vm4922_vm4, 4294967295, %v7329_v11  ;;  %vm4933_vm15 = vmand %vm7332_vm1, %vm7331_vm7  ;;  %vm7340_vm1 = vcmp.ne.s32.totalorder %v7172_v58, 95  ;;  %v7347_v15 = vmov 0  ;;  %v4984_v21 = vpack.c.b16 %v1374_v4, %v1370_v57  ;;  %v7372_v4 = vld [vmem:[#allocation47_spill] sm:$0xff] }
 0x17b   : > { %v7334_v23 = vsel %vm4933_vm15, 4294967295, %v7333_v23  ;;  %vm4944_vm14 = vmand %vm7336_vm9, %vm7335_vm12  ;;  %vm7345_vm9 = vcmp.ge.s32.totalorder %v7162_v51, %v3643_v48  ;;  %vm7346_vm15 = vnez %v7176_v3  ;;  %v4986_v58 = vpack.c.b16 %v1375_v22, %v1371_v32  ;;  %v7368_v32 = vld [vmem:[#allocation32_spill] sm:$0xff] }
 0x17c   : > { %vm4958_vm0 = vmand %vm7341_vm5, %vm7340_vm1  ;;  %vm7350_vm5 = vcmp.le.s32.totalorder %v6992_v18, %v3778_v17  ;;  %vm7352_vm1 = vnez %v7351_v14  ;;  %v1611_v3 = vadd.s32 %v1610_v38, %v1504_v27  ;;  %v1506_v10 = vsel %vm4944_vm14, 1, %v7058_v49  ;;  %v7362_v27 = vld [vmem:[#allocation31_spill] sm:$0xff]  ;;  %v7412_v38 = vld [vmem:[#allocation20_spill] sm:$0xff] }
 0x17d   : > { %v7343_v53 = vsel %vm4958_vm0, 4294967295, %v7342_v53  ;;  %vm4969_vm4 = vmand %vm7346_vm15, %vm7345_vm9  ;;  %vm7356_vm9 = vcmp.ne.s32.totalorder %v7189_v45, 95  ;;  %vm7357_vm7 = vcmp.ne.s32.totalorder %v7189_v45, 0  ;;  %v7358_v14 = vmov 0 }
 0x17e   : > { %v7348_v15 = vsel %vm4969_vm4, 4294967295, %v7347_v15  ;;  %vm4980_vm0 = vmand %vm7352_vm1, %vm7350_vm5  ;;  %vm7361_vm1 = vcmp.ge.s32.totalorder %v7162_v51, %v3670_v29  ;;  %vm7363_vm4 = vnez %v7362_v27  ;;  %v7364_v57 = vmov 0 }
 0x17f   : > { %7349 = vst [vmem:[#allocation36_spill] sm:$0xff] %v7348_v15  ;;  %v7355_v15 = vld [vmem:[#allocation83_spill] sm:$0xff]  ;;  %vm4996_vm12 = vmand %vm7357_vm7, %vm7356_vm9  ;;  %vm7367_vm7 = vcmp.le.s32.totalorder %v6992_v18, %v3802_v33  ;;  %vm7369_vm9 = vnez %v7368_v32  ;;  %v1377_v22 = vsel %vm4904_vm10, %v7372_v4, 0  ;;  %v5025_v27 = vpack.c.b16 %v1376_v12, %v1372_v62  ;;  %v7390_v4 = vld [vmem:[#allocation49_spill] sm:$0xff] }
 0x180   : > { %v7359_v14 = vsel %vm4996_vm12, 4294967295, %v7358_v14  ;;  %vm5007_vm11 = vmand %vm7363_vm4, %vm7361_vm1  ;;  %v1507_v45 = vsel %vm4980_vm0, 1, %v7058_v49  ;;  %vm7374_vm1 = vcmp.ne.s32.totalorder %v7208_v59, 95  ;;  %v7376_v18 = vmov 0  ;;  %v7420_v12 = vld [vmem:[#allocation52_spill] sm:$0xff] }
 0x181   : > { %7360 = vst [vmem:[#allocation25_spill] sm:$0xff] %v7359_v14  ;;  %v7365_v57 = vsel %vm5007_vm11, 4294967295, %v7364_v57  ;;  %vm5018_vm12 = vmand %vm7369_vm9, %vm7367_vm7  ;;  %v7373_v14 = vld [vmem:[#allocation84_spill] sm:$0xff]  ;;  %vm7375_vm7 = vcmp.ne.s32.totalorder %v7208_v59, 0  ;;  %vm7379_vm15 = vcmp.ge.s32.totalorder %v7162_v51, %v3681_v35  ;;  %vm7381_vm5 = vnez %v7380_v36 }
 0x182   : > { %7366 = vst [vmem:[#allocation26_spill] sm:$0xff] %v7365_v57  ;;  %v1550_v57 = vadd.s32 %v1549_v0, %v1505_v44  ;;  %vm5035_vm9 = vmand %vm7375_vm7, %vm7374_vm1  ;;  %v7382_v0 = vmov 0  ;;  %vm7385_vm1 = vcmp.le.s32.totalorder %v7048_v52, %v3750_v24  ;;  %v7389_v44 = vld [vmem:[#allocation48_spill] sm:$0xff]  ;;  %v1379_v36 = vsel %vm4980_vm0, %v7390_v4, 0 }
 0x183   : > { %v7377_v18 = vsel %vm5035_vm9, 4294967295, %v7376_v18  ;;  %vm5046_vm11 = vmand %vm7381_vm5, %vm7379_vm15  ;;  %v1378_v32 = vsel %vm4944_vm14, %v7389_v44, 0  ;;  %v1591_v59 = vadd.s32 %v1590_v41, %v1507_v45  ;;  %vm7393_vm5 = vcmp.ne.s32.totalorder %v7226_v5, 0  ;;  %v7479_v63 = vld [vmem:[#allocation16_spill] sm:$0xff] }
 0x184   : > { %7378 = vst [vmem:[#allocation37_spill] sm:$0xff] %v7377_v18  ;;  %v7383_v0 = vsel %vm5046_vm11, 4294967295, %v7382_v0  ;;  %vm5057_vm7 = vmand %vm4623_vm8, %vm7385_vm1  ;;  %v7391_v18 = vld [vmem:[#allocation85_spill] sm:$0xff]  ;;  %vm7392_vm8 = vcmp.ne.s32.totalorder %v7226_v5, 95  ;;  %v7394_v62 = vmov 0  ;;  %vm7396_vm0 = vcmp.ge.s32.totalorder %v7232_v50, %v3634_v42 }
 0x185   : > { %7384 = vst [vmem:[#allocation27_spill] sm:$0xff] %v7383_v0  ;;  %v1508_v0 = vsel %vm5018_vm12, 1, %v7058_v49  ;;  %vm5075_vm1 = vmand %vm7393_vm5, %vm7392_vm8  ;;  %vm7397_vm4 = vnez %v7231_v13  ;;  %v7398_v45 = vmov 0  ;;  %vm7401_vm8 = vcmp.le.s32.totalorder %v7048_v52, %v3774_v19 }
 0x186   : > { %v7395_v62 = vsel %vm5075_vm1, 4294967295, %v7394_v62  ;;  %vm5086_vm10 = vmand %vm7397_vm4, %vm7396_vm0  ;;  %vm7402_vm5 = vnez %v7236_v43  ;;  %v1380_v13 = vsel %vm5018_vm12, %v7405_v16, 0  ;;  %v1381_v44 = vsel %vm5057_vm7, %v7406_v55, 0 }
 0x187   : > { %v7399_v45 = vsel %vm5086_vm10, 4294967295, %v7398_v45  ;;  %vm5097_vm1 = vmand %vm7402_vm5, %vm7401_vm8  ;;  %v1509_v4 = vsel %vm5057_vm7, 1, %v7058_v49  ;;  %v1571_v5 = vadd.s32 %v1570_v9, %v1506_v10  ;;  %vm7408_vm0 = vcmp.ne.s32.totalorder %v7241_v46, 95 }
 0x188   : > { %7400 = vst [vmem:[#allocation28_spill] sm:$0xff] %v7399_v45  ;;  %v7407_v45 = vld [vmem:[#allocation86_spill] sm:$0xff]  ;;  %vm7409_vm8 = vcmp.ne.s32.totalorder %v7241_v46, 0  ;;  %v7410_v43 = vmov 0  ;;  %vm7413_vm15 = vcmp.ge.s32.totalorder %v7232_v50, %v3643_v48  ;;  %v7414_v10 = vmov 0 }
 0x189   : > { %vm5115_vm5 = vmand %vm7409_vm8, %vm7408_vm0  ;;  %vm7416_vm0 = vcmp.le.s32.totalorder %v7048_v52, %v3778_v17  ;;  %vm7417_vm8 = vnez %v7249_v26  ;;  %v1382_v40 = vsel %vm5097_vm1, %v7420_v12, 0  ;;  %v1430_v16 = vpack.c.b16 %v1381_v44, %v1377_v22 }
 0x18a   : > { %v7411_v43 = vsel %vm5115_vm5, 4294967295, %v7410_v43  ;;  %vm5126_vm7 = vmand %vm4687_vm2, %vm7413_vm15  ;;  %v1612_v55 = vadd.s32 %v1611_v3, %v1508_v0  ;;  %v1510_v46 = vsel %vm5097_vm1, 1, %v7058_v49  ;;  %vm7421_vm2 = vcmp.ne.s32.totalorder %v7253_v60, 95  ;;  %v7433_v0 = vld [vmem:[#allocation53_spill] sm:$0xff] }
 0x18b   : > { %v7415_v10 = vsel %vm5126_vm7, 4294967295, %v7414_v10  ;;  %vm5137_vm14 = vmand %vm7417_vm8, %vm7416_vm0  ;;  %vm7422_vm15 = vcmp.ne.s32.totalorder %v7253_v60, 0  ;;  %v7423_v26 = vmov 0  ;;  %vm7425_vm8 = vcmp.ge.s32.totalorder %v7232_v50, %v3670_v29 }
 0x18c   : > { %vm5151_vm4 = vmand %vm7422_vm15, %vm7421_vm2  ;;  %vm7426_vm12 = vnez %v7257_v30  ;;  %v7427_v3 = vmov 0  ;;  %vm7429_vm2 = vcmp.le.s32.totalorder %v7048_v52, %v3802_v33  ;;  %vm7430_vm15 = vnez %v7260_v39 }
 0x18d   : > { %v7424_v26 = vsel %vm5151_vm4, 4294967295, %v7423_v26  ;;  %vm5162_vm7 = vmand %vm7426_vm12, %vm7425_vm8  ;;  %v1383_v30 = vsel %vm5137_vm14, %v7433_v0, 0  ;;  %v1433_v41 = vpack.c.b16 %v1382_v40, %v1378_v32  ;;  %v1511_v44 = vsel %vm5137_vm14, 1, %v7058_v49  ;;  %v7445_v32 = vld [vmem:[#allocation54_spill] sm:$0xff] }
 0x18e   : > { %v7428_v3 = vsel %vm5162_vm7, 4294967295, %v7427_v3  ;;  %vm5173_vm4 = vmand %vm7430_vm15, %vm7429_vm2  ;;  %v1551_v12 = vadd.s32 %v1550_v57, %v1509_v4  ;;  %vm7434_vm12 = vcmp.ne.s32.totalorder %v7264_v20, 95  ;;  %vm7435_vm8 = vcmp.ne.s32.totalorder %v7264_v20, 0  ;;  %v7519_v57 = vld [vmem:[#allocation22_spill] sm:$0xff] }
 0x18f   : > { %vm5187_vm1 = vmand %vm7435_vm8, %vm7434_vm12  ;;  %v7436_v52 = vmov 0  ;;  %vm7438_vm15 = vcmp.ge.s32.totalorder %v7232_v50, %v3681_v35  ;;  %vm7439_vm0 = vnez %v7268_v25  ;;  %v7440_v39 = vmov 0 }
 0x190   : > { %v7437_v52 = vsel %vm5187_vm1, 4294967295, %v7436_v52  ;;  %vm5198_vm7 = vmand %vm7439_vm0, %vm7438_vm15  ;;  %vm7442_vm12 = vcmp.le.s32.totalorder %v7104_v54, %v3750_v24  ;;  %v1384_v25 = vsel %vm5173_vm4, %v7445_v32, 0  ;;  %v1431_v4 = vpack.c.b8 %v1430_v16, %v4948_v31  ;;  %v7462_v32 = vld [vmem:[#allocation21_spill] sm:$0xff] }
 0x191   : > { %v7441_v39 = vsel %vm5198_vm7, 4294967295, %v7440_v39  ;;  %vm5209_vm8 = vmand %vm4772_vm13, %vm7442_vm12  ;;  %v1436_v9 = vpack.c.b16 %v1383_v30, %v1379_v36  ;;  %v1592_v40 = vadd.s32 %v1591_v59, %v1511_v44  ;;  %vm7446_vm0 = vcmp.ne.s32.totalorder %v7279_v2, 95  ;;  %v7521_v31 = vld [vmem:[#allocation25_spill] sm:$0xff]  ;;  %v7559_v59 = vld [vmem:[#allocation62_spill] sm:$0xff] }
 0x192   : > { %vm7447_vm15 = vcmp.ne.s32.totalorder %v7279_v2, 0  ;;  %v7448_v0 = vmov 0  ;;  %vm7450_vm12 = vcmp.ge.s32.totalorder %v7284_v6, %v3634_v42  ;;  %vm7451_vm2 = vnez %v7283_v61  ;;  %1469 = vst [vmem:[%s4676_s20 + $0x20] sm:$0xff] %v1431_v4 }
 0x193   : > { %vm5221_vm14 = vmand %vm7447_vm15, %vm7446_vm0  ;;  %v7452_v56 = vmov 0  ;;  %vm7454_vm0 = vcmp.le.s32.totalorder %v7104_v54, %v3774_v19  ;;  %v1434_v36 = vpack.c.b8 %v1433_v41, %v4984_v21  ;;  %v1439_v16 = vpack.c.b16 %v1384_v25, %v1380_v13 }
 0x194   : > { %v7449_v0 = vsel %vm5221_vm14, 4294967295, %v7448_v0  ;;  %vm5232_vm7 = vmand %vm7451_vm2, %vm7450_vm12  ;;  %v1512_v61 = vsel %vm5173_vm4, 1, %v7058_v49  ;;  %v1572_v30 = vadd.s32 %v1571_v5, %v1510_v46  ;;  %vm7458_vm2 = vcmp.ne.s32.totalorder %v7296_v28, 95  ;;  %v7545_v5 = vld [vmem:[#allocation61_spill] sm:$0xff] }
 0x195   : > { %v7453_v56 = vsel %vm5232_vm7, 4294967295, %v7452_v56  ;;  %vm5243_vm15 = vmand %vm4813_vm6, %vm7454_vm0  ;;  %vm7459_vm12 = vcmp.ne.s32.totalorder %v7296_v28, 0  ;;  %v7460_v44 = vmov 0  ;;  %vm7463_vm0 = vcmp.ge.s32.totalorder %v7284_v6, %v3643_v48  ;;  %1470 = vst [vmem:[%s4676_s20 + $0x28] sm:$0xff] %v1434_v36 }
 0x196   : > { %vm5255_vm1 = vmand %vm7459_vm12, %vm7458_vm2  ;;  %vm7464_vm13 = vnez %v7300_v37  ;;  %v7465_v21 = vmov 0  ;;  %vm7467_vm2 = vcmp.le.s32.totalorder %v7104_v54, %v3778_v17  ;;  %v1437_v46 = vpack.c.b8 %v1436_v9, %v4986_v58 }
 0x197   : > { %v7461_v44 = vsel %vm5255_vm1, 4294967295, %v7460_v44  ;;  %vm5266_vm7 = vmand %vm7464_vm13, %vm7463_vm0  ;;  %v1613_v37 = vadd.s32 %v1612_v55, %v1512_v61  ;;  %v1513_v13 = vsel %vm5209_vm8, 1, %v7058_v49  ;;  %vm7470_vm13 = vcmp.ne.s32.totalorder %v7311_v7, 95  ;;  %v7609_v55 = vld [vmem:[#allocation66_spill] sm:$0xff] }
 0x198   : > { %v7466_v21 = vsel %vm5266_vm7, 4294967295, %v7465_v21  ;;  %vm5277_vm12 = vmand %vm4853_vm3, %vm7467_vm2  ;;  %vm7471_vm0 = vcmp.ne.s32.totalorder %v7311_v7, 0  ;;  %v7472_v22 = vmov 0  ;;  %vm7474_vm2 = vcmp.ge.s32.totalorder %v7284_v6, %v3670_v29  ;;  %1471 = vst [vmem:[%s4676_s20 + $0x30] sm:$0xff] %v1437_v46 }
 0x199   : > { %vm5290_vm4 = vmand %vm7471_vm0, %vm7470_vm13  ;;  %vm7475_vm6 = vnez %v7315_v34  ;;  %v7476_v58 = vmov 0  ;;  %vm7478_vm13 = vcmp.le.s32.totalorder %v7104_v54, %v3802_v33  ;;  %vm7480_vm0 = vnez %v7479_v63  ;;  %v7483_v34 = vld [vmem:[#allocation23_spill] sm:$0xff] }
 0x19a   : > { %v7473_v22 = vsel %vm5290_vm4, 4294967295, %v7472_v22  ;;  %vm5301_vm7 = vmand %vm7475_vm6, %vm7474_vm2  ;;  %v1440_v41 = vpack.c.b8 %v1439_v16, %v5025_v27  ;;  %vm7484_vm6 = vnez %v7483_v34  ;;  %v1514_v4 = vsel %vm5243_vm15, 1, %v7058_v49  ;;  %v7514_v34 = vld [vmem:[#allocation56_spill] sm:$0xff] }
 0x19b   : > { %v7477_v58 = vsel %vm5301_vm7, 4294967295, %v7476_v58  ;;  %vm5312_vm4 = vmand %vm7480_vm0, %vm7478_vm13  ;;  %v5321_v25 = vsel %vm7484_vm6, 1, %v7058_v49  ;;  %v1515_v54 = vsel %vm5277_vm12, 1, %v7058_v49  ;;  %vm7485_vm2 = vcmp.ne.s32.totalorder %v7326_v1, 95 }
 0x19c   : > { %vm7486_vm13 = vcmp.ne.s32.totalorder %v7326_v1, 0  ;;  %v7487_v27 = vmov 0  ;;  %vm7489_vm1 = vcmp.ge.s32.totalorder %v7284_v6, %v3681_v35  ;;  %vm7490_vm3 = vnez %v7330_v11  ;;  %v7497_v11 = vld [vmem:[#allocation24_spill] sm:$0xff]  ;;  %1472 = vst [vmem:[%s4676_s20 + $0x38] sm:$0xff] %v1440_v41 }
 0x19d   : > { %vm5333_vm0 = vmand %vm7486_vm13, %vm7485_vm2  ;;  %v7491_v9 = vmov 0  ;;  %vm7493_vm2 = vcmp.le.s32.totalorder %v7162_v51, %v3750_v24  ;;  %vm7494_vm13 = vnez %v7334_v23  ;;  %vm7498_vm6 = vnez %v7497_v11 }
 0x19e   : > { %v7488_v27 = vsel %vm5333_vm0, 4294967295, %v7487_v27  ;;  %vm5344_vm7 = vmand %vm7490_vm3, %vm7489_vm1  ;;  %v5363_v36 = vsel %vm7498_vm6, 1, %v7058_v49  ;;  %v1593_v16 = vadd.s32 %v1592_v40, %v1515_v54  ;;  %v1516_v61 = vsel %vm5312_vm4, 1, %v7058_v49 }
 0x19f   : > { %v7492_v9 = vsel %vm5344_vm7, 4294967295, %v7491_v9  ;;  %vm5355_vm0 = vmand %vm7494_vm13, %vm7493_vm2  ;;  %7499 = vst [vmem:[#allocation38_spill] sm:$0xff] %v5363_v36  ;;  %v1552_v63 = vadd.s32 %v1551_v12, %v1513_v13  ;;  %vm7500_vm1 = vcmp.ne.s32.totalorder %v7339_v8, 95  ;;  %vm7501_vm3 = vcmp.ne.s32.totalorder %v7339_v8, 0  ;;  %v7509_v12 = vld [vmem:[#allocation36_spill] sm:$0xff]  ;;  %v7513_v13 = vld [vmem:[#allocation55_spill] sm:$0xff] }
 0x1a0   : > { %vm5372_vm2 = vmand %vm7501_vm3, %vm7500_vm1  ;;  %v7502_v23 = vmov 0  ;;  %vm7504_vm6 = vcmp.ge.s32.totalorder %v7344_v47, %v3634_v42  ;;  %vm7505_vm14 = vnez %v7343_v53  ;;  %vm7508_vm1 = vcmp.le.s32.totalorder %v7162_v51, %v3774_v19 }
 0x1a1   : > { %v7503_v23 = vsel %vm5372_vm2, 4294967295, %v7502_v23  ;;  %vm5383_vm7 = vmand %vm7505_vm14, %vm7504_vm6  ;;  %vm7510_vm3 = vnez %v7509_v12  ;;  %v1385_v53 = vsel %vm5209_vm8, %v7513_v13, 0  ;;  %v1386_v54 = vsel %vm5243_vm15, %v7514_v34, 0  ;;  %v7530_v13 = vld [vmem:[#allocation57_spill] sm:$0xff] }
 0x1a2   : > { %vm5394_vm2 = vmand %vm7510_vm3, %vm7508_vm1  ;;  %v1517_v11 = vsel %vm5355_vm0, 1, %v7058_v49  ;;  %v1573_v8 = vadd.s32 %v1572_v30, %v1514_v4  ;;  %vm7515_vm14 = vcmp.ne.s32.totalorder %v7355_v15, 95  ;;  %vm7516_vm6 = vcmp.ne.s32.totalorder %v7355_v15, 0  ;;  %v7526_v30 = vld [vmem:[#allocation26_spill] sm:$0xff] }
 0x1a3   : > { %vm5412_vm1 = vmand %vm7516_vm6, %vm7515_vm14  ;;  %v7517_v12 = vmov 0  ;;  %vm7520_vm15 = vcmp.ge.s32.totalorder %v7344_v47, %v3643_v48  ;;  %vm7522_vm3 = vnez %v7521_v31  ;;  %vm7525_vm14 = vcmp.le.s32.totalorder %v7162_v51, %v3778_v17  ;;  %v7531_v31 = vld [vmem:[#allocation59_spill] sm:$0xff]  ;;  %v7558_v4 = vld [vmem:[#allocation58_spill] sm:$0xff] }
 0x1a4   : > { %v7518_v12 = vsel %vm5412_vm1, 4294967295, %v7517_v12  ;;  %vm5423_vm5 = vmand %vm7522_vm3, %vm7520_vm15  ;;  %vm7527_vm6 = vnez %v7526_v30  ;;  %v1387_v34 = vsel %vm5277_vm12, %v7530_v13, 0  ;;  %v1389_v15 = vsel %vm5355_vm0, %v7531_v31, 0  ;;  %v7544_v13 = vld [vmem:[#allocation60_spill] sm:$0xff]  ;;  %v7650_v30 = vld [vmem:[#allocation14_spill] sm:$0xff] }
 0x1a5   : > { %vm5434_vm1 = vmand %vm7527_vm6, %vm7525_vm14  ;;  %v1614_v1 = vadd.s32 %v1613_v37, %v1516_v61  ;;  %v1518_v7 = vsel %vm5394_vm2, 1, %v7058_v49  ;;  %vm7532_vm15 = vcmp.ne.s32.totalorder %v7373_v14, 95  ;;  %vm7533_vm3 = vcmp.ne.s32.totalorder %v7373_v14, 0 }
 0x1a6   : > { %vm5451_vm14 = vmand %vm7533_vm3, %vm7532_vm15  ;;  %vm7536_vm6 = vcmp.ge.s32.totalorder %v7344_v47, %v3670_v29  ;;  %vm7540_vm15 = vcmp.le.s32.totalorder %v7162_v51, %v3802_v33  ;;  %v1390_v31 = vsel %vm5394_vm2, %v7544_v13, 0  ;;  %v1391_v14 = vsel %vm5434_vm1, %v7545_v5, 0 }
 0x1a7   : > { %vm5462_vm0 = vmand %vm5035_vm9, %vm7536_vm6  ;;  %v1519_v28 = vsel %vm5434_vm1, 1, %v7058_v49  ;;  %v1553_v36 = vadd.s32 %v1552_v63, %v1517_v11  ;;  %vm7546_vm9 = vcmp.ne.s32.totalorder %v7391_v18, 95  ;;  %vm7551_vm13 = vnez %v7395_v62 }
 0x1a8   : > { %vm5473_vm3 = vmand %vm5046_vm11, %vm7540_vm15  ;;  %vm7547_vm11 = vcmp.ne.s32.totalorder %v7391_v18, 0  ;;  %vm7550_vm15 = vcmp.ge.s32.totalorder %v7344_v47, %v3681_v35  ;;  %v1388_v62 = vsel %vm5312_vm4, %v7558_v4, 0  ;;  %v1594_v5 = vadd.s32 %v1593_v16, %v1519_v28 }
 0x1a9   : > { %vm5490_vm6 = vmand %vm7547_vm11, %vm7546_vm9  ;;  %vm7554_vm9 = vcmp.le.s32.totalorder %v7232_v50, %v3750_v24  ;;  %v1392_v13 = vsel %vm5473_vm3, %v7559_v59, 0  ;;  %v1520_v18 = vsel %vm5473_vm3, 1, %v7058_v49  ;;  %v7562_v63 = vmov 0 }
 0x1aa   : > { %vm5501_vm12 = vmand %vm7551_vm13, %vm7550_vm15  ;;  %vm7560_vm13 = vcmp.ne.s32.totalorder %v7407_v45, 95  ;;  %vm7565_vm1 = vnez %v7411_v43  ;;  %v7566_v28 = vmov 0  ;;  %v5555_v16 = vpack.c.b16 %v1389_v15, %v1385_v53  ;;  %v7572_v43 = vld [vmem:[#allocation11_spill] sm:$0xff] }
 0x1ab   : > { %vm5512_vm11 = vmand %vm5086_vm10, %vm7554_vm9  ;;  %vm7561_vm10 = vcmp.ne.s32.totalorder %v7407_v45, 0  ;;  %vm7564_vm9 = vcmp.ge.s32.totalorder %v7412_v38, %v3634_v42  ;;  %v1574_v59 = vadd.s32 %v1573_v8, %v1518_v7  ;;  %vm7579_vm4 = vnez %v7428_v3 }
 0x1ac   : > { %vm5529_vm15 = vmand %vm7561_vm10, %vm7560_vm13  ;;  %vm7568_vm13 = vcmp.le.s32.totalorder %v7232_v50, %v3774_v19  ;;  %vm7569_vm10 = vnez %v7415_v10  ;;  %v1521_v4 = vsel %vm5512_vm11, 1, %v7058_v49  ;;  %v7576_v10 = vmov 0 }
 0x1ad   : > { %v7563_v63 = vsel %vm5529_vm15, 4294967295, %v7562_v63  ;;  %vm5540_vm2 = vmand %vm7565_vm1, %vm7564_vm9  ;;  %vm7573_vm1 = vnez %v7572_v43  ;;  %vm7574_vm9 = vcmp.ge.s32.totalorder %v7412_v38, %v3643_v48  ;;  %v5585_v7 = vpack.c.b16 %v1390_v31, %v1386_v54  ;;  %v7600_v31 = vld [vmem:[#allocation65_spill] sm:$0xff]  ;;  %v7610_v43 = vld [vmem:[#allocation67_spill] sm:$0xff] }
 0x1ae   : > { %v7567_v28 = vsel %vm5540_vm2, 4294967295, %v7566_v28  ;;  %vm5551_vm8 = vmand %vm7569_vm10, %vm7568_vm13  ;;  %v5560_v61 = vsel %vm7573_vm1, 1, %v7058_v49  ;;  %vm7575_vm13 = vnez %v7424_v26  ;;  %vm7578_vm1 = vcmp.le.s32.totalorder %v7232_v50, %v3778_v17 }
 0x1af   : > { %vm5570_vm10 = vmand %vm7575_vm13, %vm7574_vm9  ;;  %v5587_v8 = vpack.c.b16 %v1391_v14, %v1387_v34  ;;  %v1615_v26 = vadd.s32 %v1614_v1, %v1520_v18  ;;  %v1522_v53 = vsel %vm5551_vm8, 1, %v7058_v49  ;;  %vm7582_vm9 = vcmp.ge.s32.totalorder %v7412_v38, %v3670_v29  ;;  %v7590_v14 = vld [vmem:[#allocation63_spill] sm:$0xff]  ;;  %v7667_v1 = vld [vmem:[#allocation72_spill] sm:$0xff] }
 0x1b0   : > { %v7577_v10 = vsel %vm5570_vm10, 4294967295, %v7576_v10  ;;  %vm5581_vm2 = vmand %vm7579_vm4, %vm7578_vm1  ;;  %vm7583_vm13 = vnez %v7437_v52  ;;  %v7584_v3 = vmov 0  ;;  %vm7586_vm1 = vcmp.le.s32.totalorder %v7232_v50, %v3802_v33 }
 0x1b1   : > { %vm5597_vm3 = vmand %vm7583_vm13, %vm7582_vm9  ;;  %vm7587_vm10 = vnez %v7441_v39  ;;  %v1393_v18 = vsel %vm5512_vm11, %v7590_v14, 0  ;;  %v5615_v52 = vpack.c.b16 %v1392_v13, %v1388_v62  ;;  %v1523_v54 = vsel %vm5581_vm2, 1, %v7058_v49 }
 0x1b2   : > { %v7585_v3 = vsel %vm5597_vm3, 4294967295, %v7584_v3  ;;  %vm5608_vm15 = vmand %vm7587_vm10, %vm7586_vm1  ;;  %v1554_v34 = vadd.s32 %v1553_v36, %v1521_v4  ;;  %vm7591_vm9 = vcmp.ge.s32.totalorder %v7412_v38, %v3681_v35  ;;  %vm7592_vm13 = vnez %v7449_v0  ;;  %v7599_v36 = vld [vmem:[#allocation64_spill] sm:$0xff] }
 0x1b3   : > { %vm5625_vm10 = vmand %vm7592_vm13, %vm7591_vm9  ;;  %vm7595_vm11 = vcmp.le.s32.totalorder %v7284_v6, %v3750_v24  ;;  %vm7596_vm4 = vnez %v7453_v56  ;;  %v1394_v0 = vsel %vm5551_vm8, %v7599_v36, 0  ;;  %v1395_v11 = vsel %vm5581_vm2, %v7600_v31, 0 }
 0x1b4   : > { %vm5636_vm3 = vmand %vm7596_vm4, %vm7595_vm11  ;;  %v1595_v62 = vadd.s32 %v1594_v5, %v1523_v54  ;;  %v1524_v13 = vsel %vm5608_vm15, 1, %v7058_v49  ;;  %vm7601_vm9 = vcmp.ge.s32.totalorder %v7462_v32, %v3634_v42  ;;  %vm7602_vm4 = vnez %v7461_v44 }
 0x1b5   : > { %vm5654_vm13 = vmand %vm7602_vm4, %vm7601_vm9  ;;  %v7603_v56 = vmov 0  ;;  %vm7605_vm2 = vcmp.le.s32.totalorder %v7284_v6, %v3774_v19  ;;  %vm7606_vm11 = vnez %v7466_v21  ;;  %v1396_v44 = vsel %vm5608_vm15, %v7609_v55, 0 }
 0x1b6   : > { %v7604_v56 = vsel %vm5654_vm13, 4294967295, %v7603_v56  ;;  %vm5665_vm1 = vmand %vm7606_vm11, %vm7605_vm2  ;;  %v1397_v4 = vsel %vm5636_vm3, %v7610_v43, 0  ;;  %v1525_v15 = vsel %vm5636_vm3, 1, %v7058_v49  ;;  %v1575_v14 = vadd.s32 %v1574_v59, %v1522_v53  ;;  %v7619_v59 = vld [vmem:[#allocation68_spill] sm:$0xff] }
 0x1b7   : > { %vm7611_vm9 = vcmp.ge.s32.totalorder %v7462_v32, %v3643_v48  ;;  %vm7612_vm4 = vnez %v7473_v22  ;;  %v7613_v21 = vmov 0  ;;  %vm7615_vm11 = vcmp.le.s32.totalorder %v7284_v6, %v3778_v17 }
 0x1b8   : > { %vm5683_vm2 = vmand %vm7612_vm4, %vm7611_vm9  ;;  %vm7616_vm8 = vnez %v7477_v58  ;;  %v1398_v22 = vsel %vm5665_vm1, %v7619_v59, 0  ;;  %v1442_v53 = vpack.c.b16 %v1397_v4, %v1393_v18  ;;  %v1616_v54 = vadd.s32 %v1615_v26, %v1524_v13  ;;  %v7628_v18 = vld [vmem:[#allocation69_spill] sm:$0xff] }
 0x1b9   : > { %v7614_v21 = vsel %vm5683_vm2, 4294967295, %v7613_v21  ;;  %vm5694_vm13 = vmand %vm7616_vm8, %vm7615_vm11  ;;  %v1526_v39 = vsel %vm5665_vm1, 1, %v7058_v49  ;;  %vm7620_vm3 = vcmp.ge.s32.totalorder %v7462_v32, %v3670_v29  ;;  %vm7621_vm9 = vnez %v7488_v27 }
 0x1ba   : > { %vm5709_vm4 = vmand %vm7621_vm9, %vm7620_vm3  ;;  %vm7624_vm11 = vcmp.le.s32.totalorder %v7284_v6, %v3802_v33  ;;  %vm7625_vm15 = vnez %v7492_v9  ;;  %v1399_v27 = vsel %vm5694_vm13, %v7628_v18, 0  ;;  %v1445_v36 = vpack.c.b16 %v1398_v22, %v1394_v0 }
 0x1bb   : > { %vm5720_vm2 = vmand %vm7625_vm15, %vm7624_vm11  ;;  %v1527_v31 = vsel %vm5694_vm13, 1, %v7058_v49  ;;  %v1555_v13 = vadd.s32 %v1554_v34, %v1525_v15  ;;  %vm7629_vm1 = vcmp.ge.s32.totalorder %v7462_v32, %v3681_v35  ;;  %vm7630_vm3 = vnez %v7503_v23  ;;  %v7636_v34 = vld [vmem:[#allocation70_spill] sm:$0xff]  ;;  %v7658_v15 = vld [vmem:[#allocation71_spill] sm:$0xff] }
 0x1bc   : > { %vm5735_vm9 = vmand %vm7630_vm3, %vm7629_vm1  ;;  %vm7633_vm11 = vcmp.le.s32.totalorder %v7344_v47, %v3750_v24  ;;  %v1400_v23 = vsel %vm5720_vm2, %v7636_v34, 0  ;;  %v1443_v0 = vpack.c.b8 %v1442_v53, %v5555_v16  ;;  %v1448_v5 = vpack.c.b16 %v1399_v27, %v1395_v11  ;;  %v7672_v53 = vld [vmem:[#allocation73_spill] sm:$0xff] }
 0x1bd   : > { %vm5746_vm8 = vmand %vm5383_vm7, %vm7633_vm11  ;;  %v1596_v55 = vadd.s32 %v1595_v62, %v1527_v31  ;;  %vm7637_vm13 = vcmp.ge.s32.totalorder %v7519_v57, %v3634_v42  ;;  %vm7638_vm1 = vnez %v7518_v12  ;;  %vm7641_vm11 = vcmp.le.s32.totalorder %v7344_v47, %v3774_v19 }
 0x1be   : > { %vm5759_vm3 = vmand %vm7638_vm1, %vm7637_vm13  ;;  %v1446_v42 = vpack.c.b8 %v1445_v36, %v5585_v7  ;;  %v1451_v11 = vpack.c.b16 %v1400_v23, %v1396_v44  ;;  %v1528_v12 = vsel %vm5720_vm2, 1, %v7058_v49  ;;  %v1576_v62 = vadd.s32 %v1575_v14, %v1526_v39  ;;  %1473 = vst [vmem:[%s4676_s20 + $0x40] sm:$0xff] %v1443_v0  ;;  %v7676_v36 = vld [vmem:[#allocation75_spill] sm:$0xff] }
 0x1bf   : > { %vm5770_vm15 = vmand %vm5423_vm5, %vm7641_vm11  ;;  %vm7644_vm13 = vcmp.ge.s32.totalorder %v7519_v57, %v3643_v48  ;;  %vm7647_vm11 = vcmp.le.s32.totalorder %v7344_v47, %v3778_v17  ;;  %v1449_v48 = vpack.c.b8 %v1448_v5, %v5587_v8  ;;  %v1617_v43 = vadd.s32 %v1616_v54, %v1528_v12  ;;  %v7698_v8 = vld [vmem:[#allocation81_spill] sm:$0xff] }
 0x1c0   : > { %vm5783_vm1 = vmand %vm5451_vm14, %vm7644_vm13  ;;  %vm7651_vm14 = vnez %v7650_v30  ;;  %v1529_v4 = vsel %vm5746_vm8, 1, %v7058_v49  ;;  %vm7652_vm2 = vcmp.ge.s32.totalorder %v7519_v57, %v3670_v29  ;;  %v1401_v29 = vsel %vm5746_vm8, %v7658_v15, 0  ;;  %1474 = vst [vmem:[%s4676_s20 + $0x48] sm:$0xff] %v1446_v42 }
 0x1c1   : > { %vm5794_vm7 = vmand %vm5462_vm0, %vm7647_vm11  ;;  %v1488_v44 = vsel %vm7651_vm14, 1, %v7058_v49  ;;  %vm7655_vm11 = vcmp.le.s32.totalorder %v7344_v47, %v3802_v33  ;;  %v1452_v51 = vpack.c.b8 %v1451_v11, %v5615_v52  ;;  %v1530_v14 = vsel %vm5770_vm15, 1, %v7058_v49  ;;  %1475 = vst [vmem:[%s4676_s20 + $0x50] sm:$0xff] %v1449_v48  ;;  %v7688_v11 = vld [vmem:[#allocation38_spill] sm:$0xff] }
 0x1c2   : > { %vm5811_vm0 = vmand %vm5490_vm6, %vm7652_vm2  ;;  %v1531_v47 = vsel %vm5794_vm7, 1, %v7058_v49  ;;  %vm7660_vm6 = vnez %v7563_v63  ;;  %vm1288_vm8 = vcmp.le.s32.totalorder %v7519_v57, %v3802_v33  ;;  %vm7664_vm13 = vnez %v7567_v28 }
 0x1c3   : > { %vm5822_vm14 = vmand %vm5501_vm12, %vm7655_vm11  ;;  %vm7659_vm12 = vcmp.ge.s32.totalorder %v7519_v57, %v3681_v35  ;;  %vm7663_vm11 = vcmp.le.s32.totalorder %v7412_v38, %v3750_v24  ;;  %v1402_v35 = vsel %vm5770_vm15, %v7667_v1, 0  ;;  %v1597_v63 = vadd.s32 %v1596_v55, %v1531_v47  ;;  %1476 = vst [vmem:[%s4676_s20 + $0x58] sm:$0xff] %v1452_v51 }
 0x1c4   : > { %vm5842_vm2 = vmand %vm7660_vm6, %vm7659_vm12  ;;  %v1532_v59 = vsel %vm5822_vm14, 1, %v7058_v49  ;;  %v1556_v22 = vadd.s32 %v1555_v13, %v1529_v4  ;;  %vm7668_vm12 = vcmp.le.s32.totalorder %v7412_v38, %v3774_v19  ;;  %vm7669_vm6 = vnez %v7577_v10  ;;  %v7675_v10 = vld [vmem:[#allocation74_spill] sm:$0xff] }
 0x1c5   : > { %vm5853_vm5 = vmand %vm7664_vm13, %vm7663_vm11  ;;  %v1403_v54 = vsel %vm5794_vm7, %v7672_v53, 0  ;;  %v1618_v39 = vadd.s32 %v1617_v43, %v1532_v59  ;;  %v1577_v18 = vadd.s32 %v1576_v62, %v1530_v14  ;;  %vm7673_vm15 = vcmp.le.s32.totalorder %v7412_v38, %v3778_v17  ;;  %v7701_v14 = vld [vmem:[#allocation83_spill] sm:$0xff] }
 0x1c6   : > { %vm5869_vm13 = vmand %vm7669_vm6, %vm7668_vm12  ;;  %v1533_v26 = vsel %vm5853_vm5, 1, %v7058_v49  ;;  %vm7674_vm11 = vnez %v7585_v3  ;;  %v1404_v27 = vsel %vm5822_vm14, %v7675_v10, 0  ;;  %v1405_v31 = vsel %vm5853_vm5, %v7676_v36, 0 }
 0x1c7   : > { %vm1343_vm12 = vmand %vm7674_vm11, %vm7673_vm15  ;;  %v1534_v13 = vsel %vm5869_vm13, 1, %v7058_v49  ;;  %v1557_v9 = vadd.s32 %v1556_v22, %v1533_v26  ;;  %vm7677_vm7 = vcmp.le.s32.totalorder %v7412_v38, %v3802_v33  ;;  %v1406_v34 = vsel %vm5869_vm13, %v7253_v60, 0  ;;  %v7704_v22 = vld [vmem:[#allocation85_spill] sm:$0xff] }
 0x1c8   : > { %vm5899_vm6 = vmand %vm5625_vm10, %vm7677_vm7  ;;  %v1407_v23 = vsel %vm1343_vm12, %v7264_v20, 0  ;;  %v1535_v0 = vsel %vm1343_vm12, 1, %v7058_v49  ;;  %v1578_v5 = vadd.s32 %v1577_v18, %v1534_v13  ;;  %vm7680_vm5 = vcmp.le.s32.totalorder %v7462_v32, %v3750_v24 }
 0x1c9   : > { %vm7681_vm14 = vnez %v7604_v56  ;;  %v1408_v50 = vsel %vm5899_vm6, %v7279_v2, 0  ;;  %v1459_v55 = vpack.c.b16 %v1407_v23, %v1403_v54  ;;  %v1598_v60 = vadd.s32 %v1597_v63, %v1535_v0 }
 0x1ca   : > { %vm5913_vm15 = vmand %vm7681_vm14, %vm7680_vm5  ;;  %v1536_v20 = vsel %vm5899_vm6, 1, %v7058_v49  ;;  %vm7684_vm10 = vcmp.le.s32.totalorder %v7462_v32, %v3774_v19  ;;  %vm7685_vm13 = vnez %v7614_v21  ;;  %v1587_v42 = vadd.s32 %v5560_v61, %v5321_v25  ;;  %v7695_v61 = vld [vmem:[#allocation79_spill] sm:$0xff] }
 0x1cb   : > { %vm5928_vm11 = vmand %vm7685_vm13, %vm7684_vm10  ;;  %v1619_v16 = vadd.s32 %v1618_v39, %v1536_v20  ;;  %v1537_v2 = vsel %vm5913_vm15, 1, %v7058_v49  ;;  %v1608_v12 = vadd.s32 %v1488_v44, %v7688_v11  ;;  %vm7689_vm12 = vcmp.le.s32.totalorder %v7462_v32, %v3778_v17 }
 0x1cc   : > { %vm5943_vm7 = vmand %vm5709_vm4, %vm7689_vm12  ;;  %v1453_v62 = vpack.c.b16 %v1405_v31, %v1401_v29  ;;  %v1456_v7 = vpack.c.b16 %v1406_v34, %v1402_v35  ;;  %v1538_v48 = vsel %vm5928_vm11, 1, %v7058_v49  ;;  %v1558_v30 = vadd.s32 %v1557_v9, %v1537_v2 }
 0x1cd   : > { %vm7692_vm6 = vcmp.le.s32.totalorder %v7462_v32, %v3802_v33  ;;  %v1409_v58 = vsel %vm5913_vm15, %v7695_v61, 0  ;;  %v1462_v44 = vpack.c.b16 %v1408_v50, %v1404_v27  ;;  %v1539_v43 = vsel %vm5943_vm7, 1, %v7058_v49  ;;  %v7697_v32 = vld [vmem:[#allocation80_spill] sm:$0xff] }
 0x1ce   : > { %vm5955_vm5 = vmand %vm5735_vm9, %vm7692_vm6  ;;  %v1579_v4 = vadd.s32 %v1578_v5, %v1538_v48  ;;  %vm7696_vm4 = vcmp.le.s32.totalorder %v7519_v57, %v3750_v24  ;;  %v1410_v6 = vsel %vm5928_vm11, %v7697_v32, 0  ;;  %v1411_v15 = vsel %vm5943_vm7, %v7698_v8, 0  ;;  %v7700_v24 = vld [vmem:[#allocation82_spill] sm:$0xff] }
 0x1cf   : > { %vm1349_vm9 = vmand %vm5759_vm3, %vm7696_vm4  ;;  %v1599_v29 = vadd.s32 %v1598_v60, %v1539_v43  ;;  %v1540_v51 = vsel %vm5955_vm5, 1, %v7058_v49  ;;  %vm7699_vm14 = vcmp.le.s32.totalorder %v7519_v57, %v3774_v19  ;;  %v1412_v40 = vsel %vm5955_vm5, %v7700_v24, 0  ;;  %v7703_v19 = vld [vmem:[#allocation84_spill] sm:$0xff] }
 0x1d0   : > { %vm1350_vm15 = vmand %vm5783_vm1, %vm7699_vm14  ;;  %v1413_v47 = vsel %vm1349_vm9, %v7701_v14, 0  ;;  %v1620_v52 = vadd.s32 %v1619_v16, %v1540_v51  ;;  %v1541_v1 = vsel %vm1349_vm9, 1, %v7058_v49  ;;  %vm7702_vm3 = vcmp.le.s32.totalorder %v7519_v57, %v3778_v17 }
 0x1d1   : > { %vm1351_vm10 = vmand %vm5811_vm0, %vm7702_vm3  ;;  %v1414_v35 = vsel %vm1350_vm15, %v7703_v19, 0  ;;  %v1454_v41 = vpack.c.b16 %v1413_v47, %v1409_v58  ;;  %v1542_v63 = vsel %vm1350_vm15, 1, %v7058_v49  ;;  %v1559_v59 = vadd.s32 %v1558_v30, %v1541_v1 }
 0x1d2   : > { %vm1352_vm1 = vmand %vm5842_vm2, %vm1288_vm8  ;;  %v1415_v17 = vsel %vm1351_vm10, %v7704_v22, 0  ;;  %v1457_v28 = vpack.c.b16 %v1414_v35, %v1410_v6  ;;  %v1543_v37 = vsel %vm1351_vm10, 1, %v7058_v49  ;;  %v1580_v53 = vadd.s32 %v1579_v4, %v1542_v63 }
 0x1d3   : > { %v1416_v54 = vsel %vm1352_vm1, %v7407_v45, 0  ;;  %v1455_v39 = vpack.c.b8 %v1454_v41, %v1453_v62  ;;  %v1460_v26 = vpack.c.b16 %v1415_v17, %v1411_v15  ;;  %v1600_v18 = vadd.s32 %v1599_v29, %v1543_v37 }
 0x1d4   : > { %v1458_v10 = vpack.c.b8 %v1457_v28, %v1456_v7  ;;  %v1463_v33 = vpack.c.b16 %v1416_v54, %v1412_v40  ;;  %v1544_v57 = vsel %vm1352_vm1, 1, %v7058_v49  ;;  %v1560_v46 = vrot.slane %v1559_v59, 4 }
 0x1d5   : > { %v1461_v27 = vpack.c.b8 %v1460_v26, %v1459_v55  ;;  %1477 = vst [vmem:[%s4676_s20 + $0x60] sm:$0xff] %v1455_v39  ;;  %v1621_v45 = vadd.s32 %v1620_v52, %v1544_v57  ;;  %v1581_v36 = vrot.slane %v1580_v53, 4  ;;  %v1601_v31 = vadd.s32 %v1600_v18, %v1587_v42 }
 0x1d6   : > { %v1464_v49 = vpack.c.b8 %v1463_v33, %v1462_v44  ;;  %1478 = vst [vmem:[%s4676_s20 + $0x68] sm:$0xff] %v1458_v10  ;;  %v1561_v13 = vadd.s32 %v1560_v46, %v1559_v59 }
 0x1d7   : > { %1479 = vst [vmem:[%s4676_s20 + $0x70] sm:$0xff] %v1461_v27  ;;  %v1582_v9 = vadd.s32 %v1581_v36, %v1580_v53  ;;  %v1602_v3 = vrot.slane %v1601_v31, 4  ;;  %v1622_v34 = vadd.s32 %v1621_v45, %v1608_v12 }
 0x1d8   : > { %1480 = vst [vmem:[%s4676_s20 + $0x78] sm:$0xff] %v1464_v49  ;;  %v1562_v23 = vrot.slane %v1561_v13, 2 }
 0x1d9   : > { %v1583_v0 = vrot.slane %v1582_v9, 2  ;;  %v1603_v5 = vadd.s32 %v1602_v3, %v1601_v31  ;;  %v1623_v38 = vrot.slane %v1622_v34, 4 }
 0x1da   : > { %1891 = shalt.err (!%p1888_p10)
}
 0x1db   : > { %s1892_s24 = scalar_lea.hbm %s6012_s8, 2048  ;;  %s1896_s27 = scalar_lea.hbm %s6081_s1, 4096 }
 0x1dc   : > { %p1893_p1 = scmp.ne.s32.totalorder %s6012_s8, %s1892_s24  ;;  %p1897_p0 = scmp.lt.s32.totalorder %s6012_s8, %s6081_s1 }
 0x1dd   : > { %p1898_p2 = scmp.lt.s32.totalorder %s1896_s27, %s1892_s24 }
 0x1de   : > { %p1894_p3 = pnand %p1893_p1, %p7705_p12 }
 0x1df   : > { %p1899_p6 = por %p1898_p2, %p1897_p0 }
 0x1e0   : > { %p1895_p9 = pneg %p1894_p3 }
 0x1e2   : > { %p1900_p11 = pnand %p1899_p6, %p1895_p9 }
 0x1e4   : > { %1903 = shalt.err (!%p1900_p11)
}
 0x1e5   : > { %s1980_s7 = smov 512   ;;  %s1981_s20 = smov 1024   ;;  %v1563_v50 = vadd.s32 %v1562_v23, %v1561_v13  ;;  %v1584_v55 = vadd.s32 %v1583_v0, %v1582_v9  ;;  %v1604_v60 = vrot.slane %v1603_v5, 2  ;;  %v1624_v20 = vadd.s32 %v1623_v38, %v1622_v34 }
 0x1e6   : > { %s1982_s3 = smov 32   ;;  %s1780_s4 = sshll.u32 %s2098_s29, 5 }
 0x1e7   : > { %1794 = dma.vmem_to_hbm [thread:$0]  (%p7705_p12), %s6015_s30, 2048, %s6012_s8, %s1634_s14, %s1980_s7, %s1981_s20, %s1982_s3   ;;  %v1564_v56 = vrot.slane %v1563_v50, 1  ;;  %v1585_v16 = vrot.slane %v1584_v55, 1  ;;  %v1605_v2 = vadd.s32 %v1604_v60, %v1603_v5  ;;  %v1625_v42 = vrot.slane %v1624_v20, 2 }
 0x1e8   : > { %s172_s16 = scalar_lea.vmem [#allocation6], %s1780_s4  ;;  %s1667_s14 = scalar_lea.hbm %s6082_s2, %s1790_s28 }
 0x1e9   : > { %v1565_v11 = vadd.s32 %v1564_v56, %v1563_v50  ;;  %v1586_v12 = vadd.s32 %v1585_v16, %v1584_v55  ;;  %v1606_v21 = vrot.slane %v1605_v2, 1  ;;  %v1626_v62 = vadd.s32 %v1625_v42, %v1624_v20  ;;  %s1669_s17 = sshll.u32 %s172_s16, 4  ;;  %s1639_s19 = scalar_lea.sflag [#allocation7], %s2098_s29  ;;  %s1670_s17 = int_to_ptr.vmem [resolvable:$true] %s1669_s17 }
 0x1ea   : > { %s1904_s23 = scalar_lea.vmem %s1670_s17, 512  ;;  %s1983_s24 = smov [#allocation6]  }
 0x1eb   : > { %1629 = vst [vmem:[%s172_s16] sm:$0xff] %v1565_v11  ;;  %v1607_v7 = vadd.s32 %v1606_v21, %v1605_v2  ;;  %v1627_v48 = vrot.slane %v1626_v62, 1  ;;  %1630 = vst [vmem:[%s172_s16 + $0x8] sm:$0xff] %v1586_v12  ;;  %p1905_p13 = scmp.ne.s32.totalorder %s1670_s17, %s1904_s23  ;;  %s1908_s25 = sshll.u32 %s1983_s24, 4  ;;  %s1909_s25 = int_to_ptr.vmem [resolvable:$false] %s1908_s25 }
 0x1ec   : > { %s1910_s26 = scalar_lea.vmem %s1909_s25, 1024  ;;  %p1911_p7 = scmp.lt.s32.totalorder %s1670_s17, %s1909_s25 }
 0x1ed   : > { %v1628_v30 = vadd.s32 %v1627_v48, %v1626_v62  ;;  %1631 = vst [vmem:[%s172_s16 + $0x10] sm:$0xff] %v1607_v7  ;;  %p1906_p4 = pnand %p1905_p13, %p7705_p12  ;;  %p1912_p8 = scmp.lt.s32.totalorder %s1910_s26, %s1904_s23 }
 0x1ef   : > { %1632 = vst [vmem:[%s172_s16 + $0x18] sm:$0xff] %v1628_v30  ;;  %p1907_p5 = pneg %p1906_p4  ;;  %p1913_p10 = por %p1912_p8, %p1911_p7 }
 0x1f1   : > { %p1914_p1 = pnand %p1913_p10, %p1907_p5 }
 0x1f3   : > { %1917 = shalt.err (!%p1914_p1)
}
 0x1f4   : > { %s1918_s13 = scalar_lea.hbm %s1667_s14, 512  ;;  %s1922_s27 = scalar_lea.hbm %s6082_s2, 1024 }
 0x1f5   : > { %p1919_p3 = scmp.ne.s32.totalorder %s1667_s14, %s1918_s13  ;;  %p1923_p2 = scmp.lt.s32.totalorder %s1667_s14, %s6082_s2 }
 0x1f6   : > { %p1924_p6 = scmp.lt.s32.totalorder %s1922_s27, %s1918_s13 }
 0x1f7   : > { %p1920_p9 = pnand %p1919_p3, %p7705_p12 }
 0x1f8   : > { %p1925_p11 = por %p1924_p6, %p1923_p2 }
 0x1f9   : > { %p1921_p0 = pneg %p1920_p9 }
 0x1fb   : > { %p1926_p13 = pnand %p1925_p11, %p1921_p0 }
 0x1fd   : > { %1929 = shalt.err (!%p1926_p13)
}
 0x1fe   : > { %1795 = dma.vmem_to_hbm [thread:$0]  (%p7705_p12), %s1670_s17, 512, %s1667_s14, %s1639_s19  }
 0x1ff PF: > { %s1681_s7 = sand.u32 1, %s1960_s9   ;;  %p7706_p4 = scmp.ne.s32.totalorder %s6343_s22, 0 }
 0x200   : > { %p7707_p5 = scmp.ge.s32.totalorder %s1972_s12, 2  ;;  %s1682_s20 = scalar_lea.sflag [#allocation4], %s1681_s7 }
 0x202   : > { %p1803_p7 = pnand %p7707_p5, %p7706_p4 }
 0x204   : > { %p1804_p8 = pneg %p1803_p7 }
 0x206   : > { %1951 = dma.done.wait (%p1804_p8), %s1682_s20, 2048  }
 0x207   : > { %1953 = vsyncadd (%p1804_p8), %s1682_s20, 4294965248  ;;  %s1691_s3 = scalar_lea.sflag [#allocation7], %s1681_s7 }
 0x208   : > { %1955 = dma.done.wait (%p1804_p8), %s1691_s3, 512  }
 0x209   : > { %1957 = vsyncadd (%p1804_p8), %s1691_s3, 4294966784  ;;  %p19_p12 = scmp.ge.s32.totalorder %s2024_s15, 4   ;;  %s7708_s9 = smov %s1964_s10 }
 0x20a   : > { %s7709_s10 = smov %s1968_s11  ;;  %s7710_s11 = smov %s2036_s18 }
 0x20b   : > { %s7711_s12 = smov %s2024_s15  ;;  %21 = sbr.rel (!%p19_p12) target bundleno = 7 (0x7), region = 86 }
 0x210   :  { %1696 = vsyncpa [#allocation3], 1 }
 0x211   :  { %1698 = vsyncpa [#allocation3 + $0x1], 1 }
 0x212   :  { %1699 = vsyncpa [#allocation4], 1 }
 0x213   :  { %1701 = vsyncpa [#allocation4 + $0x1], 1 }
 0x214   :  { %1702 = vsyncpa [#allocation7], 1 }
 0x215   :  { %1704 = vsyncpa [#allocation7 + $0x1], 1 }

</bundles_post_ra>
